<compile_context>
chip_gen: v6e
topology: v6e:2x2x1
jax: 0.10.0
libtpu: 0.0.40
codegen_flags: <defaults>
</compile_context>

<pallas_src>
import functools

import jax
import jax.numpy as jnp
from jax.experimental import pallas as pl
from jax.experimental.pallas import tpu as pltpu

EPS = 1e-5
NEG_SLOPE = 0.01  # nn.LeakyReLU() default


# ----------------------------------------------------------------------------
# helpers
# ----------------------------------------------------------------------------
def _round_up(n, m):
    return ((n + m - 1) // m) * m


def _pick_tile(n, candidates=(256, 128, 64, 32, 16, 8)):
    for c in candidates:
        if n % c == 0:
            return c
    return n


def _point_tile(mp):
    # Large point tile so each MXU push has M = k * tp rows (review: 256-512).
    return min(512, _round_up(mp, 8))


def _leaky_relu(x):
    return jnp.where(x > 0.0, x, NEG_SLOPE * x)


# ----------------------------------------------------------------------------
# Pallas kernels
# ----------------------------------------------------------------------------
def _pdist_kernel(xq_ref, xk_ref, qn_ref, kn_ref, out_ref):
    # xq: (1, TN, C) bf16 query rows   xk: (1, N, C) bf16 all points (same batch)
    # qn: (1, TN, 1) f32  kn: (1, 1, N) f32  (precomputed squared norms)
    # out: (1, TN, N) f32 negative squared distances (same formula as torch knn)
    inner = jax.lax.dot_general(
        xq_ref[0], xk_ref[0], (((1,), (1,)), ((), ())),
        preferred_element_type=jnp.float32)              # (TN, N) = q @ k.T
    out_ref[0] = 2.0 * inner - qn_ref[0] - kn_ref[0]


def _edgeconv_kernel(nbr_ref, ctr_ref, wt_ref, wd_ref, scale_ref, shift_ref,
                     out_ref):
    # nbr: (k, TP, C) bf16 gathered neighbor features
    # ctr: (TP, C)    bf16 center features
    # wt : (C, Co)    bf16 weight half applied to (nbr - center) -> applied to nbr
    # wd : (C, Co)    bf16 (W_center - W_top): k-invariant center term
    # scale/shift: (1, Co) f32 folded BN affine (+ conv bias)
    # out: (TP, Co)   bf16
    # edge@W = (nbr - ctr)@W_top + ctr@W_ctr = nbr@W_top + ctr@(W_ctr - W_top)
    k, tp, c = nbr_ref.shape
    nbr2d = nbr_ref[...].reshape(k * tp, c)   # layout-preserving (tp % 8 == 0)
    y = jnp.dot(nbr2d, wt_ref[...], preferred_element_type=jnp.float32)  # (k*TP, Co)
    m = y[:tp]
    for j in range(1, k):                     # static unroll: elementwise max over k
        m = jnp.maximum(m, y[j * tp:(j + 1) * tp])
    cterm = jnp.dot(ctr_ref[...], wd_ref[...], preferred_element_type=jnp.float32)
    # BN affine + LeakyReLU applied once after the max (valid since scale > 0).
    z = (m + cterm) * scale_ref[...] + shift_ref[...]
    out_ref[...] = _leaky_relu(z).astype(out_ref.dtype)


def _conv5_pool_kernel(x_ref, w_ref, out_ref):
    # x: (1, TN, 512) bf16   w: (512, E) bf16   out: (1, 1, E) f32 running max
    @pl.when(pl.program_id(1) == 0)
    def _():
        out_ref[...] = jnp.full(out_ref.shape, -jnp.inf, out_ref.dtype)

    y = jnp.dot(x_ref[0], w_ref[...], preferred_element_type=jnp.float32)  # (TN, E)
    out_ref[0] = jnp.maximum(out_ref[0], jnp.max(y, axis=0, keepdims=True))


def _head_kernel(x_ref, w1_ref, b1_ref, w2_ref, b2_ref, w3_ref, b3_ref, out_ref):
    # linear1 -> (bn6 folded) -> lrelu -> linear2 -> (bn7 folded) -> lrelu -> linear3
    h = jnp.dot(x_ref[...], w1_ref[...], preferred_element_type=jnp.float32)
    h = _leaky_relu(h + b1_ref[...])
    h = jnp.dot(h.astype(jnp.bfloat16), w2_ref[...],
                preferred_element_type=jnp.float32)
    h = _leaky_relu(h + b2_ref[...])
    out_ref[...] = (jnp.dot(h.astype(jnp.bfloat16), w3_ref[...],
                            preferred_element_type=jnp.float32) + b3_ref[...])


# ----------------------------------------------------------------------------
# Pallas wrappers
# ----------------------------------------------------------------------------
def pairwise_neg_sqdist(x_bf, xx):
    """x_bf: (B, N, C) bf16, xx: (B, N) f32 squared norms -> (B, N, N) f32."""
    B, N, C = x_bf.shape
    tn = _pick_tile(N)
    qn = xx[:, :, None]          # (B, N, 1)
    kn = xx[:, None, :]          # (B, 1, N)
    return pl.pallas_call(
        _pdist_kernel,
        out_shape=jax.ShapeDtypeStruct((B, N, N), jnp.float32),
        grid=(B, N // tn),
        in_specs=[
            pl.BlockSpec((1, tn, C), lambda b, i: (b, i, 0)),
            pl.BlockSpec((1, N, C), lambda b, i: (b, 0, 0)),
            pl.BlockSpec((1, tn, 1), lambda b, i: (b, i, 0)),
            pl.BlockSpec((1, 1, N), lambda b, i: (b, 0, 0)),
        ],
        out_specs=pl.BlockSpec((1, tn, N), lambda b, i: (b, i, 0)),
        compiler_params=pltpu.CompilerParams(
            dimension_semantics=("parallel", "parallel")),
    )(x_bf, x_bf, qn, kn)


def edge_conv(nbr, ctr, w_top, w_diff, scale, shift, tp):
    """nbr: (k, Mp, C), ctr: (Mp, C) -> (Mp, Co) bf16 (Mp already padded to tp)."""
    k, mp, c = nbr.shape
    co = w_top.shape[1]
    return pl.pallas_call(
        _edgeconv_kernel,
        out_shape=jax.ShapeDtypeStruct((mp, co), jnp.bfloat16),
        grid=(mp // tp,),
        in_specs=[
            pl.BlockSpec((k, tp, c), lambda i: (0, i, 0)),
            pl.BlockSpec((tp, c), lambda i: (i, 0)),
            pl.BlockSpec((c, co), lambda i: (0, 0)),
            pl.BlockSpec((c, co), lambda i: (0, 0)),
            pl.BlockSpec((1, co), lambda i: (0, 0)),
            pl.BlockSpec((1, co), lambda i: (0, 0)),
        ],
        out_specs=pl.BlockSpec((tp, co), lambda i: (i, 0)),
        compiler_params=pltpu.CompilerParams(dimension_semantics=("parallel",)),
    )(nbr, ctr, w_top, w_diff, scale, shift)


def conv5_and_global_maxpool(x, w):
    """x: (B, N, 512) bf16, w: (512, E) bf16 -> (B, E) f32 (conv1x1 + max over N)."""
    B, N, C = x.shape
    E = w.shape[1]
    tn = _pick_tile(N)
    out = pl.pallas_call(
        _conv5_pool_kernel,
        out_shape=jax.ShapeDtypeStruct((B, 1, E), jnp.float32),
        grid=(B, N // tn),
        in_specs=[
            pl.BlockSpec((1, tn, C), lambda b, j: (b, j, 0)),
            pl.BlockSpec((C, E), lambda b, j: (0, 0)),
        ],
        out_specs=pl.BlockSpec((1, 1, E), lambda b, j: (b, 0, 0)),
        compiler_params=pltpu.CompilerParams(
            dimension_semantics=("parallel", "arbitrary")),
    )(x, w)
    return out[:, 0, :]


def mlp_head(x_bf, p):
    """x_bf: (B, 1024) bf16 -> (B, num_classes) f32."""
    B = x_bf.shape[0]
    num_classes = p["w3"].shape[1]
    args = [x_bf, p["w1"], p["b1"], p["w2"], p["b2"], p["w3"], p["b3"]]
    in_specs = [pl.BlockSpec(a.shape, lambda i: (0, 0)) for a in args]
    return pl.pallas_call(
        _head_kernel,
        out_shape=jax.ShapeDtypeStruct((B, num_classes), jnp.float32),
        grid=(1,),
        in_specs=in_specs,
        out_specs=pl.BlockSpec((B, num_classes), lambda i: (0, 0)),
    )(*args)


# ----------------------------------------------------------------------------
# JAX glue: graph-feature construction, parameters, forward
# ----------------------------------------------------------------------------
def build_graph_feature(x_pts, k, tp):
    """x_pts: (B, N, C) bf16 -> nbr (k, Mp_pad, C) bf16, ctr (Mp_pad, C) bf16."""
    B, N, C = x_pts.shape
    xx = jnp.sum(x_pts.astype(jnp.float32) ** 2, axis=-1)        # (B, N)
    pd = pairwise_neg_sqdist(x_pts, xx)                          # Pallas matmul hot path
    # TODO(synk): top-k neighbor selection + gather are data-dependent indexing,
    # done in plain JAX rather than inside the Pallas kernel.
    _, idx = jax.lax.top_k(pd, k)                                # (B, N, k) incl. self
    idx_t = jnp.transpose(idx, (2, 0, 1))                        # (k, B, N) tiny transpose
    b_idx = jnp.arange(B)[None, :, None]
    nbr = x_pts[b_idx, idx_t].reshape(k, B * N, C)               # gathered in target order
    ctr = x_pts.reshape(B * N, C)
    mp = B * N
    mp_pad = _round_up(mp, tp)
    if mp_pad != mp:
        nbr = jnp.pad(nbr, ((0, 0), (0, mp_pad - mp), (0, 0)))
        ctr = jnp.pad(ctr, ((0, mp_pad - mp), (0, 0)))
    return nbr, ctr


def init_params(key, num_classes=3):
    """Deterministic synthetic parameters (fresh-module BN stats, eval mode)."""
    keys = jax.random.split(key, 20)

    def nrm(kk, shape, s=0.1):
        return (s * jax.random.normal(kk, shape)).astype(jnp.float32)

    p = {}
    # (C seen by kernel (stage0 padded 3->8), real C, Cout, Cout padded to 128 lanes, bias?)
    cfgs = [
        (8, 3, 64, 128, True),        # conv1 / bn1
        (64, 64, 64, 128, False),     # conv2 / bn2
        (64, 64, 128, 128, False),    # conv3 / bn3
        (128, 128, 256, 256, False),  # conv4 / bn4
    ]
    ki = 0
    for i, (c_pad, c_real, co, co_pad, has_bias) in enumerate(cfgs):
        w_top = nrm(keys[ki], (c_real, co)); ki += 1   # multiplies (nbr - center)
        w_ctr = nrm(keys[ki], (c_real, co)); ki += 1   # multiplies center
        bias = nrm(keys[ki], (co,)) if has_bias else jnp.zeros((co,), jnp.float32)
        ki += 1
        gamma = jnp.ones((co,), jnp.float32); beta = jnp.zeros((co,), jnp.float32)
        mean = jnp.zeros((co,), jnp.float32); var = jnp.ones((co,), jnp.float32)
        scale = gamma / jnp.sqrt(var + EPS)
        # Applying the BN affine + LeakyReLU AFTER the max over k requires scale > 0.
        assert float(jnp.min(scale)) > 0.0
        shift = beta - mean * scale + bias * scale     # conv bias folded into shift
        w_diff = w_ctr - w_top                         # edge@W = nbr@w_top + ctr@w_diff

        def pad_w(w):
            full = jnp.zeros((c_pad, co_pad), jnp.float32)
            return full.at[:c_real, :co].set(w).astype(jnp.bfloat16)

        scale_p = jnp.ones((1, co_pad), jnp.float32).at[0, :co].set(scale)
        shift_p = jnp.zeros((1, co_pad), jnp.float32).at[0, :co].set(shift)
        p[f"ec{i}"] = (pad_w(w_top), pad_w(w_diff), scale_p, shift_p, co)

    p["w5"] = nrm(keys[ki], (512, 1024)).astype(jnp.bfloat16); ki += 1

    # MLP head with bn6 / bn7 (eval-mode) folded into the weights / biases.
    s6 = jnp.full((512,), 1.0, jnp.float32) / jnp.sqrt(1.0 + EPS)
    w1 = nrm(keys[ki], (1024, 512)); ki += 1
    p["w1"] = (w1 * s6[None, :]).astype(jnp.bfloat16)
    p["b1"] = jnp.zeros((1, 512), jnp.float32)                      # beta6 - mean6*s6 = 0
    s7 = jnp.full((256,), 1.0, jnp.float32) / jnp.sqrt(1.0 + EPS)
    w2 = nrm(keys[ki], (512, 256)); ki += 1
    b2 = nrm(keys[ki], (256,)); ki += 1
    p["w2"] = (w2 * s7[None, :]).astype(jnp.bfloat16)
    p["b2"] = (b2 * s7).reshape(1, -1)                              # (b2*s7 + t7), t7 = 0
    p["w3"] = nrm(keys[ki], (256, num_classes)).astype(jnp.bfloat16); ki += 1
    p["b3"] = nrm(keys[ki], (num_classes,)).reshape(1, -1); ki += 1
    return p


def dgcnn_forward(x, params, k=3):
    """x: (B, N, 3) point cloud (== torch input before its internal permute)."""
    B, N, _ = x.shape
    mp = B * N
    tp = _point_tile(mp)
    # Pad the stage-0 contraction dim 3 -> 8 (zero channels; ec0 weight rows are zero).
    cur = jnp.pad(x.astype(jnp.float32), ((0, 0), (0, 0), (0, 5))).astype(jnp.bfloat16)
    stage_outs = []
    for i in range(4):
        w_top, w_diff, scale, shift, co_real = params[f"ec{i}"]
        nbr, ctr = build_graph_feature(cur, k, tp)          # (k, Mp_pad, C), (Mp_pad, C)
        o = edge_conv(nbr, ctr, w_top, w_diff, scale, shift, tp)  # (Mp_pad, Co_pad) bf16
        o = o[:mp, :co_real].reshape(B, N, co_real)         # drop row / lane padding
        stage_outs.append(o)
        cur = o
    xcat = jnp.concatenate(stage_outs, axis=-1)             # (B, N, 64+64+128+256=512)
    emb = conv5_and_global_maxpool(xcat, params["w5"])      # (B, 1024) f32
    # dp1 / dp2 dropout are identity in eval mode.
    return mlp_head(emb.astype(jnp.bfloat16), params)       # (B, num_classes)


if __name__ == "__main__":
    key = jax.random.PRNGKey(0)
    pkey, xkey = jax.random.split(key)
    params = init_params(pkey, num_classes=3)

    B, N = 2, 16
    x = jax.random.normal(xkey, (B, N, 3), dtype=jnp.float32)

    fwd = jax.jit(functools.partial(dgcnn_forward, params=params, k=3))
    out = fwd(x)
    jax.block_until_ready(out)
    assert out.shape == (B, 3), out.shape
    assert bool(jnp.all(jnp.isfinite(out)))
    print("KERNEL_OK")
</pallas_src>

<mosaic_0001>
module attributes {stable_mosaic.version = 11 : i64} {
  func.func @_pdist_kernel(%arg0: i32, %arg1: i32, %arg2: memref<1x16x8xbf16, #tpu.memory_space<vmem>>, %arg3: memref<1x16x8xbf16, #tpu.memory_space<vmem>>, %arg4: memref<1x16x1xf32, #tpu.memory_space<vmem>>, %arg5: memref<1x1x16xf32, #tpu.memory_space<vmem>>, %arg6: memref<1x16x16xf32, #tpu.memory_space<vmem>>) attributes {dimension_semantics = [#tpu.dimension_semantics<parallel>, #tpu.dimension_semantics<parallel>], iteration_bounds = array<i64: 2, 1>, scalar_prefetch = 0 : i64, scratch_operands = 0 : i64, tpu.core_type = #tpu.core_type<tc>, window_params = [{transform_indices = @transform_0, window_bounds = array<i64: 1, 16, 8>}, {transform_indices = @transform_1, window_bounds = array<i64: 1, 16, 8>}, {transform_indices = @transform_2, window_bounds = array<i64: 1, 16, 1>}, {transform_indices = @transform_3, window_bounds = array<i64: 1, 1, 16>}, {transform_indices = @transform_4, window_bounds = array<i64: 1, 16, 16>}]} {
    %c0 = arith.constant 0 : index
    %c0_0 = arith.constant 0 : index
    %c0_1 = arith.constant 0 : index
    %0 = vector.load %arg2[%c0, %c0_0, %c0_1] : memref<1x16x8xbf16, #tpu.memory_space<vmem>>, vector<1x16x8xbf16>
    %1 = vector.shape_cast %0 : vector<1x16x8xbf16> to vector<16x8xbf16>
    %c0_2 = arith.constant 0 : index
    %c0_3 = arith.constant 0 : index
    %c0_4 = arith.constant 0 : index
    %2 = vector.load %arg3[%c0_2, %c0_3, %c0_4] : memref<1x16x8xbf16, #tpu.memory_space<vmem>>, vector<1x16x8xbf16>
    %3 = vector.shape_cast %2 : vector<1x16x8xbf16> to vector<16x8xbf16>
    %cst = arith.constant dense<0.000000e+00> : vector<16x16xf32>
    %4 = tpu.matmul %1, %3, %cst {dimension_numbers = #tpu.dot_dimension_numbers<[1], [1], [0], [0], [0, 0, 1, 0], [], []>} : vector<16x8xbf16>, vector<16x8xbf16>, vector<16x16xf32> -> vector<16x16xf32>
    %cst_5 = arith.constant 2.000000e+00 : f32
    %5 = vector.broadcast %cst_5 : f32 to vector<16x16xf32>
    %6 = arith.mulf %5, %4 : vector<16x16xf32>
    %c0_6 = arith.constant 0 : index
    %c0_7 = arith.constant 0 : index
    %c0_8 = arith.constant 0 : index
    %7 = vector.load %arg4[%c0_6, %c0_7, %c0_8] : memref<1x16x1xf32, #tpu.memory_space<vmem>>, vector<1x16x1xf32>
    %8 = vector.shape_cast %7 : vector<1x16x1xf32> to vector<16x1xf32>
    %9 = vector.broadcast %8 : vector<16x1xf32> to vector<16x16xf32>
    %10 = arith.subf %6, %9 : vector<16x16xf32>
    %c0_9 = arith.constant 0 : index
    %c0_10 = arith.constant 0 : index
    %c0_11 = arith.constant 0 : index
    %11 = vector.load %arg5[%c0_9, %c0_10, %c0_11] : memref<1x1x16xf32, #tpu.memory_space<vmem>>, vector<1x1x16xf32>
    %12 = vector.shape_cast %11 : vector<1x1x16xf32> to vector<1x16xf32>
    %13 = vector.broadcast %12 : vector<1x16xf32> to vector<16x16xf32>
    %14 = arith.subf %10, %13 : vector<16x16xf32>
    %c0_12 = arith.constant 0 : index
    %c0_13 = arith.constant 0 : index
    %c0_14 = arith.constant 0 : index
    %15 = vector.load %arg6[%c0_12, %c0_13, %c0_14] : memref<1x16x16xf32, #tpu.memory_space<vmem>>, vector<1x16x16xf32>
    %16 = vector.shape_cast %15 : vector<1x16x16xf32> to vector<16x16xf32>
    %17 = vector.shape_cast %14 : vector<16x16xf32> to vector<1x16x16xf32>
    tpu.vector_store %arg6[%c0_12, %c0_13, %c0_14], %17 {strides = array<i32>} : memref<1x16x16xf32, #tpu.memory_space<vmem>>, vector<1x16x16xf32>,
    return
  }
  func.func @transform_0(%arg0: i32, %arg1: i32) -> (i32, i32, i32) {
    %c0_i32 = arith.constant 0 : i32
    %c0_i32_0 = arith.constant 0 : i32
    return %arg0, %arg1, %c0_i32 : i32, i32, i32
  }
  func.func @transform_1(%arg0: i32, %arg1: i32) -> (i32, i32, i32) {
    %c0_i32 = arith.constant 0 : i32
    %c0_i32_0 = arith.constant 0 : i32
    %c0_i32_1 = arith.constant 0 : i32
    return %arg0, %c0_i32, %c0_i32_0 : i32, i32, i32
  }
  func.func @transform_2(%arg0: i32, %arg1: i32) -> (i32, i32, i32) {
    %c0_i32 = arith.constant 0 : i32
    %c0_i32_0 = arith.constant 0 : i32
    return %arg0, %arg1, %c0_i32 : i32, i32, i32
  }
  func.func @transform_3(%arg0: i32, %arg1: i32) -> (i32, i32, i32) {
    %c0_i32 = arith.constant 0 : i32
    %c0_i32_0 = arith.constant 0 : i32
    %c0_i32_1 = arith.constant 0 : i32
    return %arg0, %c0_i32, %c0_i32_0 : i32, i32, i32
  }
  func.func @transform_4(%arg0: i32, %arg1: i32) -> (i32, i32, i32) {
    %c0_i32 = arith.constant 0 : i32
    %c0_i32_0 = arith.constant 0 : i32
    return %arg0, %arg1, %c0_i32 : i32, i32, i32
  }
}

module attributes {stable_mosaic.version = 11 : i64} {
  func.func @_edgeconv_kernel(%arg0: i32, %arg1: memref<3x32x8xbf16, #tpu.memory_space<vmem>>, %arg2: memref<32x8xbf16, #tpu.memory_space<vmem>>, %arg3: memref<8x128xbf16, #tpu.memory_space<vmem>>, %arg4: memref<8x128xbf16, #tpu.memory_space<vmem>>, %arg5: memref<1x128xf32, #tpu.memory_space<vmem>>, %arg6: memref<1x128xf32, #tpu.memory_space<vmem>>, %arg7: memref<32x128xbf16, #tpu.memory_space<vmem>>) attributes {dimension_semantics = [#tpu.dimension_semantics<parallel>], iteration_bounds = array<i64: 1>, scalar_prefetch = 0 : i64, scratch_operands = 0 : i64, tpu.core_type = #tpu.core_type<tc>, window_params = [{transform_indices = @transform_0, window_bounds = array<i64: 3, 32, 8>}, {transform_indices = @transform_1, window_bounds = array<i64: 32, 8>}, {pipeline_mode = #tpu.pipeline_mode<synchronous>, transform_indices = @transform_2, window_bounds = array<i64: 8, 128>}, {pipeline_mode = #tpu.pipeline_mode<synchronous>, transform_indices = @transform_3, window_bounds = array<i64: 8, 128>}, {pipeline_mode = #tpu.pipeline_mode<synchronous>, transform_indices = @transform_4, window_bounds = array<i64: 1, 128>}, {pipeline_mode = #tpu.pipeline_mode<synchronous>, transform_indices = @transform_5, window_bounds = array<i64: 1, 128>}, {transform_indices = @transform_6, window_bounds = array<i64: 32, 128>}]} {
    %c0 = arith.constant 0 : index
    %c0_0 = arith.constant 0 : index
    %c0_1 = arith.constant 0 : index
    %0 = vector.load %arg1[%c0, %c0_0, %c0_1] : memref<3x32x8xbf16, #tpu.memory_space<vmem>>, vector<3x32x8xbf16>
    %1 = vector.shape_cast %0 : vector<3x32x8xbf16> to vector<96x8xbf16>
    %c0_2 = arith.constant 0 : index
    %c0_3 = arith.constant 0 : index
    %2 = vector.load %arg3[%c0_2, %c0_3] : memref<8x128xbf16, #tpu.memory_space<vmem>>, vector<8x128xbf16>
    %cst = arith.constant dense<0.000000e+00> : vector<96x128xf32>
    %3 = tpu.matmul %1, %2, %cst {dimension_numbers = #tpu.dot_dimension_numbers<[1], [0], [0], [1], [0, 0, 1, 1], [], []>} : vector<96x8xbf16>, vector<8x128xbf16>, vector<96x128xf32> -> vector<96x128xf32>
    %4 = vector.extract_strided_slice %3 {offsets = [0, 0], sizes = [32, 128], strides = [1, 1]} : vector<96x128xf32> to vector<32x128xf32>
    %5 = vector.extract_strided_slice %3 {offsets = [32, 0], sizes = [32, 128], strides = [1, 1]} : vector<96x128xf32> to vector<32x128xf32>
    %6 = arith.maximumf %4, %5 : vector<32x128xf32>
    %7 = vector.extract_strided_slice %3 {offsets = [64, 0], sizes = [32, 128], strides = [1, 1]} : vector<96x128xf32> to vector<32x128xf32>
    %8 = arith.maximumf %6, %7 : vector<32x128xf32>
    %c0_4 = arith.constant 0 : index
    %c0_5 = arith.constant 0 : index
    %9 = vector.load %arg2[%c0_4, %c0_5] : memref<32x8xbf16, #tpu.memory_space<vmem>>, vector<32x8xbf16>
    %c0_6 = arith.constant 0 : index
    %c0_7 = arith.constant 0 : index
    %10 = vector.load %arg4[%c0_6, %c0_7] : memref<8x128xbf16, #tpu.memory_space<vmem>>, vector<8x128xbf16>
    %cst_8 = arith.constant dense<0.000000e+00> : vector<32x128xf32>
    %11 = tpu.matmul %9, %10, %cst_8 {dimension_numbers = #tpu.dot_dimension_numbers<[1], [0], [0], [1], [0, 0, 1, 1], [], []>} : vector<32x8xbf16>, vector<8x128xbf16>, vector<32x128xf32> -> vector<32x128xf32>
    %12 = arith.addf %8, %11 : vector<32x128xf32>
    %c0_9 = arith.constant 0 : index
    %c0_10 = arith.constant 0 : index
    %13 = vector.load %arg5[%c0_9, %c0_10] : memref<1x128xf32, #tpu.memory_space<vmem>>, vector<1x128xf32>
    %14 = vector.broadcast %13 : vector<1x128xf32> to vector<32x128xf32>
    %15 = arith.mulf %12, %14 : vector<32x128xf32>
    %c0_11 = arith.constant 0 : index
    %c0_12 = arith.constant 0 : index
    %16 = vector.load %arg6[%c0_11, %c0_12] : memref<1x128xf32, #tpu.memory_space<vmem>>, vector<1x128xf32>
    %17 = vector.broadcast %16 : vector<1x128xf32> to vector<32x128xf32>
    %18 = arith.addf %15, %17 : vector<32x128xf32>
    %cst_13 = arith.constant 0.000000e+00 : f32
    %19 = vector.broadcast %cst_13 : f32 to vector<32x128xf32>
    %20 = arith.cmpf ogt, %18, %19 : vector<32x128xf32>
    %cst_14 = arith.constant 0.00999999977 : f32
    %21 = vector.broadcast %cst_14 : f32 to vector<32x128xf32>
    %22 = arith.mulf %21, %18 : vector<32x128xf32>
    %23 = arith.select %20, %18, %22 : vector<32x128xi1>, vector<32x128xf32>
    %24 = arith.truncf %23 : vector<32x128xf32> to vector<32x128xbf16>
    %c0_15 = arith.constant 0 : index
    %c0_16 = arith.constant 0 : index
    %25 = vector.load %arg7[%c0_15, %c0_16] : memref<32x128xbf16, #tpu.memory_space<vmem>>, vector<32x128xbf16>
    tpu.vector_store %arg7[%c0_15, %c0_16], %24 {strides = array<i32>} : memref<32x128xbf16, #tpu.memory_space<vmem>>, vector<32x128xbf16>,
    return
  }
  func.func @transform_0(%arg0: i32) -> (i32, i32, i32) {
    %c0_i32 = arith.constant 0 : i32
    %c0_i32_0 = arith.constant 0 : i32
    %c0_i32_1 = arith.constant 0 : i32
    return %c0_i32, %arg0, %c0_i32_0 : i32, i32, i32
  }
  func.func @transform_1(%arg0: i32) -> (i32, i32) {
    %c0_i32 = arith.constant 0 : i32
    %c0_i32_0 = arith.constant 0 : i32
    return %arg0, %c0_i32 : i32, i32
  }
  func.func @transform_2(%arg0: i32) -> (i32, i32) {
    %c0_i32 = arith.constant 0 : i32
    %c0_i32_0 = arith.constant 0 : i32
    %c0_i32_1 = arith.constant 0 : i32
    return %c0_i32, %c0_i32_0 : i32, i32
  }
  func.func @transform_3(%arg0: i32) -> (i32, i32) {
    %c0_i32 = arith.constant 0 : i32
    %c0_i32_0 = arith.constant 0 : i32
    %c0_i32_1 = arith.constant 0 : i32
    return %c0_i32, %c0_i32_0 : i32, i32
  }
  func.func @transform_4(%arg0: i32) -> (i32, i32) {
    %c0_i32 = arith.constant 0 : i32
    %c0_i32_0 = arith.constant 0 : i32
    %c0_i32_1 = arith.constant 0 : i32
    return %c0_i32, %c0_i32_0 : i32, i32
  }
  func.func @transform_5(%arg0: i32) -> (i32, i32) {
    %c0_i32 = arith.constant 0 : i32
    %c0_i32_0 = arith.constant 0 : i32
    %c0_i32_1 = arith.constant 0 : i32
    return %c0_i32, %c0_i32_0 : i32, i32
  }
  func.func @transform_6(%arg0: i32) -> (i32, i32) {
    %c0_i32 = arith.constant 0 : i32
    %c0_i32_0 = arith.constant 0 : i32
    return %arg0, %c0_i32 : i32, i32
  }
}

module attributes {stable_mosaic.version = 11 : i64} {
  func.func @_pdist_kernel(%arg0: i32, %arg1: i32, %arg2: memref<1x16x64xbf16, #tpu.memory_space<vmem>>, %arg3: memref<1x16x64xbf16, #tpu.memory_space<vmem>>, %arg4: memref<1x16x1xf32, #tpu.memory_space<vmem>>, %arg5: memref<1x1x16xf32, #tpu.memory_space<vmem>>, %arg6: memref<1x16x16xf32, #tpu.memory_space<vmem>>) attributes {dimension_semantics = [#tpu.dimension_semantics<parallel>, #tpu.dimension_semantics<parallel>], iteration_bounds = array<i64: 2, 1>, scalar_prefetch = 0 : i64, scratch_operands = 0 : i64, tpu.core_type = #tpu.core_type<tc>, window_params = [{transform_indices = @transform_0, window_bounds = array<i64: 1, 16, 64>}, {transform_indices = @transform_1, window_bounds = array<i64: 1, 16, 64>}, {transform_indices = @transform_2, window_bounds = array<i64: 1, 16, 1>}, {transform_indices = @transform_3, window_bounds = array<i64: 1, 1, 16>}, {transform_indices = @transform_4, window_bounds = array<i64: 1, 16, 16>}]} {
    %c0 = arith.constant 0 : index
    %c0_0 = arith.constant 0 : index
    %c0_1 = arith.constant 0 : index
    %0 = vector.load %arg2[%c0, %c0_0, %c0_1] : memref<1x16x64xbf16, #tpu.memory_space<vmem>>, vector<1x16x64xbf16>
    %1 = vector.shape_cast %0 : vector<1x16x64xbf16> to vector<16x64xbf16>
    %c0_2 = arith.constant 0 : index
    %c0_3 = arith.constant 0 : index
    %c0_4 = arith.constant 0 : index
    %2 = vector.load %arg3[%c0_2, %c0_3, %c0_4] : memref<1x16x64xbf16, #tpu.memory_space<vmem>>, vector<1x16x64xbf16>
    %3 = vector.shape_cast %2 : vector<1x16x64xbf16> to vector<16x64xbf16>
    %cst = arith.constant dense<0.000000e+00> : vector<16x16xf32>
    %4 = tpu.matmul %1, %3, %cst {dimension_numbers = #tpu.dot_dimension_numbers<[1], [1], [0], [0], [0, 0, 1, 0], [], []>} : vector<16x64xbf16>, vector<16x64xbf16>, vector<16x16xf32> -> vector<16x16xf32>
    %cst_5 = arith.constant 2.000000e+00 : f32
    %5 = vector.broadcast %cst_5 : f32 to vector<16x16xf32>
    %6 = arith.mulf %5, %4 : vector<16x16xf32>
    %c0_6 = arith.constant 0 : index
    %c0_7 = arith.constant 0 : index
    %c0_8 = arith.constant 0 : index
    %7 = vector.load %arg4[%c0_6, %c0_7, %c0_8] : memref<1x16x1xf32, #tpu.memory_space<vmem>>, vector<1x16x1xf32>
    %8 = vector.shape_cast %7 : vector<1x16x1xf32> to vector<16x1xf32>
    %9 = vector.broadcast %8 : vector<16x1xf32> to vector<16x16xf32>
    %10 = arith.subf %6, %9 : vector<16x16xf32>
    %c0_9 = arith.constant 0 : index
    %c0_10 = arith.constant 0 : index
    %c0_11 = arith.constant 0 : index
    %11 = vector.load %arg5[%c0_9, %c0_10, %c0_11] : memref<1x1x16xf32, #tpu.memory_space<vmem>>, vector<1x1x16xf32>
    %12 = vector.shape_cast %11 : vector<1x1x16xf32> to vector<1x16xf32>
    %13 = vector.broadcast %12 : vector<1x16xf32> to vector<16x16xf32>
    %14 = arith.subf %10, %13 : vector<16x16xf32>
    %c0_12 = arith.constant 0 : index
    %c0_13 = arith.constant 0 : index
    %c0_14 = arith.constant 0 : index
    %15 = vector.load %arg6[%c0_12, %c0_13, %c0_14] : memref<1x16x16xf32, #tpu.memory_space<vmem>>, vector<1x16x16xf32>
    %16 = vector.shape_cast %15 : vector<1x16x16xf32> to vector<16x16xf32>
    %17 = vector.shape_cast %14 : vector<16x16xf32> to vector<1x16x16xf32>
    tpu.vector_store %arg6[%c0_12, %c0_13, %c0_14], %17 {strides = array<i32>} : memref<1x16x16xf32, #tpu.memory_space<vmem>>, vector<1x16x16xf32>,
    return
  }
  func.func @transform_0(%arg0: i32, %arg1: i32) -> (i32, i32, i32) {
    %c0_i32 = arith.constant 0 : i32
    %c0_i32_0 = arith.constant 0 : i32
    return %arg0, %arg1, %c0_i32 : i32, i32, i32
  }
  func.func @transform_1(%arg0: i32, %arg1: i32) -> (i32, i32, i32) {
    %c0_i32 = arith.constant 0 : i32
    %c0_i32_0 = arith.constant 0 : i32
    %c0_i32_1 = arith.constant 0 : i32
    return %arg0, %c0_i32, %c0_i32_0 : i32, i32, i32
  }
  func.func @transform_2(%arg0: i32, %arg1: i32) -> (i32, i32, i32) {
    %c0_i32 = arith.constant 0 : i32
    %c0_i32_0 = arith.constant 0 : i32
    return %arg0, %arg1, %c0_i32 : i32, i32, i32
  }
  func.func @transform_3(%arg0: i32, %arg1: i32) -> (i32, i32, i32) {
    %c0_i32 = arith.constant 0 : i32
    %c0_i32_0 = arith.constant 0 : i32
    %c0_i32_1 = arith.constant 0 : i32
    return %arg0, %c0_i32, %c0_i32_0 : i32, i32, i32
  }
  func.func @transform_4(%arg0: i32, %arg1: i32) -> (i32, i32, i32) {
    %c0_i32 = arith.constant 0 : i32
    %c0_i32_0 = arith.constant 0 : i32
    return %arg0, %arg1, %c0_i32 : i32, i32, i32
  }
}

module attributes {stable_mosaic.version = 11 : i64} {
  func.func @_edgeconv_kernel(%arg0: i32, %arg1: memref<3x32x64xbf16, #tpu.memory_space<vmem>>, %arg2: memref<32x64xbf16, #tpu.memory_space<vmem>>, %arg3: memref<64x128xbf16, #tpu.memory_space<vmem>>, %arg4: memref<64x128xbf16, #tpu.memory_space<vmem>>, %arg5: memref<1x128xf32, #tpu.memory_space<vmem>>, %arg6: memref<1x128xf32, #tpu.memory_space<vmem>>, %arg7: memref<32x128xbf16, #tpu.memory_space<vmem>>) attributes {dimension_semantics = [#tpu.dimension_semantics<parallel>], iteration_bounds = array<i64: 1>, scalar_prefetch = 0 : i64, scratch_operands = 0 : i64, tpu.core_type = #tpu.core_type<tc>, window_params = [{transform_indices = @transform_0, window_bounds = array<i64: 3, 32, 64>}, {transform_indices = @transform_1, window_bounds = array<i64: 32, 64>}, {pipeline_mode = #tpu.pipeline_mode<synchronous>, transform_indices = @transform_2, window_bounds = array<i64: 64, 128>}, {pipeline_mode = #tpu.pipeline_mode<synchronous>, transform_indices = @transform_3, window_bounds = array<i64: 64, 128>}, {pipeline_mode = #tpu.pipeline_mode<synchronous>, transform_indices = @transform_4, window_bounds = array<i64: 1, 128>}, {pipeline_mode = #tpu.pipeline_mode<synchronous>, transform_indices = @transform_5, window_bounds = array<i64: 1, 128>}, {transform_indices = @transform_6, window_bounds = array<i64: 32, 128>}]} {
    %c0 = arith.constant 0 : index
    %c0_0 = arith.constant 0 : index
    %c0_1 = arith.constant 0 : index
    %0 = vector.load %arg1[%c0, %c0_0, %c0_1] : memref<3x32x64xbf16, #tpu.memory_space<vmem>>, vector<3x32x64xbf16>
    %1 = vector.shape_cast %0 : vector<3x32x64xbf16> to vector<96x64xbf16>
    %c0_2 = arith.constant 0 : index
    %c0_3 = arith.constant 0 : index
    %2 = vector.load %arg3[%c0_2, %c0_3] : memref<64x128xbf16, #tpu.memory_space<vmem>>, vector<64x128xbf16>
    %cst = arith.constant dense<0.000000e+00> : vector<96x128xf32>
    %3 = tpu.matmul %1, %2, %cst {dimension_numbers = #tpu.dot_dimension_numbers<[1], [0], [0], [1], [0, 0, 1, 1], [], []>} : vector<96x64xbf16>, vector<64x128xbf16>, vector<96x128xf32> -> vector<96x128xf32>
    %4 = vector.extract_strided_slice %3 {offsets = [0, 0], sizes = [32, 128], strides = [1, 1]} : vector<96x128xf32> to vector<32x128xf32>
    %5 = vector.extract_strided_slice %3 {offsets = [32, 0], sizes = [32, 128], strides = [1, 1]} : vector<96x128xf32> to vector<32x128xf32>
    %6 = arith.maximumf %4, %5 : vector<32x128xf32>
    %7 = vector.extract_strided_slice %3 {offsets = [64, 0], sizes = [32, 128], strides = [1, 1]} : vector<96x128xf32> to vector<32x128xf32>
    %8 = arith.maximumf %6, %7 : vector<32x128xf32>
    %c0_4 = arith.constant 0 : index
    %c0_5 = arith.constant 0 : index
    %9 = vector.load %arg2[%c0_4, %c0_5] : memref<32x64xbf16, #tpu.memory_space<vmem>>, vector<32x64xbf16>
    %c0_6 = arith.constant 0 : index
    %c0_7 = arith.constant 0 : index
    %10 = vector.load %arg4[%c0_6, %c0_7] : memref<64x128xbf16, #tpu.memory_space<vmem>>, vector<64x128xbf16>
    %cst_8 = arith.constant dense<0.000000e+00> : vector<32x128xf32>
    %11 = tpu.matmul %9, %10, %cst_8 {dimension_numbers = #tpu.dot_dimension_numbers<[1], [0], [0], [1], [0, 0, 1, 1], [], []>} : vector<32x64xbf16>, vector<64x128xbf16>, vector<32x128xf32> -> vector<32x128xf32>
    %12 = arith.addf %8, %11 : vector<32x128xf32>
    %c0_9 = arith.constant 0 : index
    %c0_10 = arith.constant 0 : index
    %13 = vector.load %arg5[%c0_9, %c0_10] : memref<1x128xf32, #tpu.memory_space<vmem>>, vector<1x128xf32>
    %14 = vector.broadcast %13 : vector<1x128xf32> to vector<32x128xf32>
    %15 = arith.mulf %12, %14 : vector<32x128xf32>
    %c0_11 = arith.constant 0 : index
    %c0_12 = arith.constant 0 : index
    %16 = vector.load %arg6[%c0_11, %c0_12] : memref<1x128xf32, #tpu.memory_space<vmem>>, vector<1x128xf32>
    %17 = vector.broadcast %16 : vector<1x128xf32> to vector<32x128xf32>
    %18 = arith.addf %15, %17 : vector<32x128xf32>
    %cst_13 = arith.constant 0.000000e+00 : f32
    %19 = vector.broadcast %cst_13 : f32 to vector<32x128xf32>
    %20 = arith.cmpf ogt, %18, %19 : vector<32x128xf32>
    %cst_14 = arith.constant 0.00999999977 : f32
    %21 = vector.broadcast %cst_14 : f32 to vector<32x128xf32>
    %22 = arith.mulf %21, %18 : vector<32x128xf32>
    %23 = arith.select %20, %18, %22 : vector<32x128xi1>, vector<32x128xf32>
    %24 = arith.truncf %23 : vector<32x128xf32> to vector<32x128xbf16>
    %c0_15 = arith.constant 0 : index
    %c0_16 = arith.constant 0 : index
    %25 = vector.load %arg7[%c0_15, %c0_16] : memref<32x128xbf16, #tpu.memory_space<vmem>>, vector<32x128xbf16>
    tpu.vector_store %arg7[%c0_15, %c0_16], %24 {strides = array<i32>} : memref<32x128xbf16, #tpu.memory_space<vmem>>, vector<32x128xbf16>,
    return
  }
  func.func @transform_0(%arg0: i32) -> (i32, i32, i32) {
    %c0_i32 = arith.constant 0 : i32
    %c0_i32_0 = arith.constant 0 : i32
    %c0_i32_1 = arith.constant 0 : i32
    return %c0_i32, %arg0, %c0_i32_0 : i32, i32, i32
  }
  func.func @transform_1(%arg0: i32) -> (i32, i32) {
    %c0_i32 = arith.constant 0 : i32
    %c0_i32_0 = arith.constant 0 : i32
    return %arg0, %c0_i32 : i32, i32
  }
  func.func @transform_2(%arg0: i32) -> (i32, i32) {
    %c0_i32 = arith.constant 0 : i32
    %c0_i32_0 = arith.constant 0 : i32
    %c0_i32_1 = arith.constant 0 : i32
    return %c0_i32, %c0_i32_0 : i32, i32
  }
  func.func @transform_3(%arg0: i32) -> (i32, i32) {
    %c0_i32 = arith.constant 0 : i32
    %c0_i32_0 = arith.constant 0 : i32
    %c0_i32_1 = arith.constant 0 : i32
    return %c0_i32, %c0_i32_0 : i32, i32
  }
  func.func @transform_4(%arg0: i32) -> (i32, i32) {
    %c0_i32 = arith.constant 0 : i32
    %c0_i32_0 = arith.constant 0 : i32
    %c0_i32_1 = arith.constant 0 : i32
    return %c0_i32, %c0_i32_0 : i32, i32
  }
  func.func @transform_5(%arg0: i32) -> (i32, i32) {
    %c0_i32 = arith.constant 0 : i32
    %c0_i32_0 = arith.constant 0 : i32
    %c0_i32_1 = arith.constant 0 : i32
    return %c0_i32, %c0_i32_0 : i32, i32
  }
  func.func @transform_6(%arg0: i32) -> (i32, i32) {
    %c0_i32 = arith.constant 0 : i32
    %c0_i32_0 = arith.constant 0 : i32
    return %arg0, %c0_i32 : i32, i32
  }
}

module attributes {stable_mosaic.version = 11 : i64} {
  func.func @_pdist_kernel(%arg0: i32, %arg1: i32, %arg2: memref<1x16x128xbf16, #tpu.memory_space<vmem>>, %arg3: memref<1x16x128xbf16, #tpu.memory_space<vmem>>, %arg4: memref<1x16x1xf32, #tpu.memory_space<vmem>>, %arg5: memref<1x1x16xf32, #tpu.memory_space<vmem>>, %arg6: memref<1x16x16xf32, #tpu.memory_space<vmem>>) attributes {dimension_semantics = [#tpu.dimension_semantics<parallel>, #tpu.dimension_semantics<parallel>], iteration_bounds = array<i64: 2, 1>, scalar_prefetch = 0 : i64, scratch_operands = 0 : i64, tpu.core_type = #tpu.core_type<tc>, window_params = [{transform_indices = @transform_0, window_bounds = array<i64: 1, 16, 128>}, {transform_indices = @transform_1, window_bounds = array<i64: 1, 16, 128>}, {transform_indices = @transform_2, window_bounds = array<i64: 1, 16, 1>}, {transform_indices = @transform_3, window_bounds = array<i64: 1, 1, 16>}, {transform_indices = @transform_4, window_bounds = array<i64: 1, 16, 16>}]} {
    %c0 = arith.constant 0 : index
    %c0_0 = arith.constant 0 : index
    %c0_1 = arith.constant 0 : index
    %0 = vector.load %arg2[%c0, %c0_0, %c0_1] : memref<1x16x128xbf16, #tpu.memory_space<vmem>>, vector<1x16x128xbf16>
    %1 = vector.shape_cast %0 : vector<1x16x128xbf16> to vector<16x128xbf16>
    %c0_2 = arith.constant 0 : index
    %c0_3 = arith.constant 0 : index
    %c0_4 = arith.constant 0 : index
    %2 = vector.load %arg3[%c0_2, %c0_3, %c0_4] : memref<1x16x128xbf16, #tpu.memory_space<vmem>>, vector<1x16x128xbf16>
    %3 = vector.shape_cast %2 : vector<1x16x128xbf16> to vector<16x128xbf16>
    %cst = arith.constant dense<0.000000e+00> : vector<16x16xf32>
    %4 = tpu.matmul %1, %3, %cst {dimension_numbers = #tpu.dot_dimension_numbers<[1], [1], [0], [0], [0, 0, 1, 0], [], []>} : vector<16x128xbf16>, vector<16x128xbf16>, vector<16x16xf32> -> vector<16x16xf32>
    %cst_5 = arith.constant 2.000000e+00 : f32
    %5 = vector.broadcast %cst_5 : f32 to vector<16x16xf32>
    %6 = arith.mulf %5, %4 : vector<16x16xf32>
    %c0_6 = arith.constant 0 : index
    %c0_7 = arith.constant 0 : index
    %c0_8 = arith.constant 0 : index
    %7 = vector.load %arg4[%c0_6, %c0_7, %c0_8] : memref<1x16x1xf32, #tpu.memory_space<vmem>>, vector<1x16x1xf32>
    %8 = vector.shape_cast %7 : vector<1x16x1xf32> to vector<16x1xf32>
    %9 = vector.broadcast %8 : vector<16x1xf32> to vector<16x16xf32>
    %10 = arith.subf %6, %9 : vector<16x16xf32>
    %c0_9 = arith.constant 0 : index
    %c0_10 = arith.constant 0 : index
    %c0_11 = arith.constant 0 : index
    %11 = vector.load %arg5[%c0_9, %c0_10, %c0_11] : memref<1x1x16xf32, #tpu.memory_space<vmem>>, vector<1x1x16xf32>
    %12 = vector.shape_cast %11 : vector<1x1x16xf32> to vector<1x16xf32>
    %13 = vector.broadcast %12 : vector<1x16xf32> to vector<16x16xf32>
    %14 = arith.subf %10, %13 : vector<16x16xf32>
    %c0_12 = arith.constant 0 : index
    %c0_13 = arith.constant 0 : index
    %c0_14 = arith.constant 0 : index
    %15 = vector.load %arg6[%c0_12, %c0_13, %c0_14] : memref<1x16x16xf32, #tpu.memory_space<vmem>>, vector<1x16x16xf32>
    %16 = vector.shape_cast %15 : vector<1x16x16xf32> to vector<16x16xf32>
    %17 = vector.shape_cast %14 : vector<16x16xf32> to vector<1x16x16xf32>
    tpu.vector_store %arg6[%c0_12, %c0_13, %c0_14], %17 {strides = array<i32>} : memref<1x16x16xf32, #tpu.memory_space<vmem>>, vector<1x16x16xf32>,
    return
  }
  func.func @transform_0(%arg0: i32, %arg1: i32) -> (i32, i32, i32) {
    %c0_i32 = arith.constant 0 : i32
    %c0_i32_0 = arith.constant 0 : i32
    return %arg0, %arg1, %c0_i32 : i32, i32, i32
  }
  func.func @transform_1(%arg0: i32, %arg1: i32) -> (i32, i32, i32) {
    %c0_i32 = arith.constant 0 : i32
    %c0_i32_0 = arith.constant 0 : i32
    %c0_i32_1 = arith.constant 0 : i32
    return %arg0, %c0_i32, %c0_i32_0 : i32, i32, i32
  }
  func.func @transform_2(%arg0: i32, %arg1: i32) -> (i32, i32, i32) {
    %c0_i32 = arith.constant 0 : i32
    %c0_i32_0 = arith.constant 0 : i32
    return %arg0, %arg1, %c0_i32 : i32, i32, i32
  }
  func.func @transform_3(%arg0: i32, %arg1: i32) -> (i32, i32, i32) {
    %c0_i32 = arith.constant 0 : i32
    %c0_i32_0 = arith.constant 0 : i32
    %c0_i32_1 = arith.constant 0 : i32
    return %arg0, %c0_i32, %c0_i32_0 : i32, i32, i32
  }
  func.func @transform_4(%arg0: i32, %arg1: i32) -> (i32, i32, i32) {
    %c0_i32 = arith.constant 0 : i32
    %c0_i32_0 = arith.constant 0 : i32
    return %arg0, %arg1, %c0_i32 : i32, i32, i32
  }
}

module attributes {stable_mosaic.version = 11 : i64} {
  func.func @_edgeconv_kernel(%arg0: i32, %arg1: memref<3x32x128xbf16, #tpu.memory_space<vmem>>, %arg2: memref<32x128xbf16, #tpu.memory_space<vmem>>, %arg3: memref<128x256xbf16, #tpu.memory_space<vmem>>, %arg4: memref<128x256xbf16, #tpu.memory_space<vmem>>, %arg5: memref<1x256xf32, #tpu.memory_space<vmem>>, %arg6: memref<1x256xf32, #tpu.memory_space<vmem>>, %arg7: memref<32x256xbf16, #tpu.memory_space<vmem>>) attributes {dimension_semantics = [#tpu.dimension_semantics<parallel>], iteration_bounds = array<i64: 1>, scalar_prefetch = 0 : i64, scratch_operands = 0 : i64, tpu.core_type = #tpu.core_type<tc>, window_params = [{transform_indices = @transform_0, window_bounds = array<i64: 3, 32, 128>}, {transform_indices = @transform_1, window_bounds = array<i64: 32, 128>}, {pipeline_mode = #tpu.pipeline_mode<synchronous>, transform_indices = @transform_2, window_bounds = array<i64: 128, 256>}, {pipeline_mode = #tpu.pipeline_mode<synchronous>, transform_indices = @transform_3, window_bounds = array<i64: 128, 256>}, {pipeline_mode = #tpu.pipeline_mode<synchronous>, transform_indices = @transform_4, window_bounds = array<i64: 1, 256>}, {pipeline_mode = #tpu.pipeline_mode<synchronous>, transform_indices = @transform_5, window_bounds = array<i64: 1, 256>}, {transform_indices = @transform_6, window_bounds = array<i64: 32, 256>}]} {
    %c0 = arith.constant 0 : index
    %c0_0 = arith.constant 0 : index
    %c0_1 = arith.constant 0 : index
    %0 = vector.load %arg1[%c0, %c0_0, %c0_1] : memref<3x32x128xbf16, #tpu.memory_space<vmem>>, vector<3x32x128xbf16>
    %1 = vector.shape_cast %0 : vector<3x32x128xbf16> to vector<96x128xbf16>
    %c0_2 = arith.constant 0 : index
    %c0_3 = arith.constant 0 : index
    %2 = vector.load %arg3[%c0_2, %c0_3] : memref<128x256xbf16, #tpu.memory_space<vmem>>, vector<128x256xbf16>
    %cst = arith.constant dense<0.000000e+00> : vector<96x256xf32>
    %3 = tpu.matmul %1, %2, %cst {dimension_numbers = #tpu.dot_dimension_numbers<[1], [0], [0], [1], [0, 0, 1, 1], [], []>} : vector<96x128xbf16>, vector<128x256xbf16>, vector<96x256xf32> -> vector<96x256xf32>
    %4 = vector.extract_strided_slice %3 {offsets = [0, 0], sizes = [32, 256], strides = [1, 1]} : vector<96x256xf32> to vector<32x256xf32>
    %5 = vector.extract_strided_slice %3 {offsets = [32, 0], sizes = [32, 256], strides = [1, 1]} : vector<96x256xf32> to vector<32x256xf32>
    %6 = arith.maximumf %4, %5 : vector<32x256xf32>
    %7 = vector.extract_strided_slice %3 {offsets = [64, 0], sizes = [32, 256], strides = [1, 1]} : vector<96x256xf32> to vector<32x256xf32>
    %8 = arith.maximumf %6, %7 : vector<32x256xf32>
    %c0_4 = arith.constant 0 : index
    %c0_5 = arith.constant 0 : index
    %9 = vector.load %arg2[%c0_4, %c0_5] : memref<32x128xbf16, #tpu.memory_space<vmem>>, vector<32x128xbf16>
    %c0_6 = arith.constant 0 : index
    %c0_7 = arith.constant 0 : index
    %10 = vector.load %arg4[%c0_6, %c0_7] : memref<128x256xbf16, #tpu.memory_space<vmem>>, vector<128x256xbf16>
    %cst_8 = arith.constant dense<0.000000e+00> : vector<32x256xf32>
    %11 = tpu.matmul %9, %10, %cst_8 {dimension_numbers = #tpu.dot_dimension_numbers<[1], [0], [0], [1], [0, 0, 1, 1], [], []>} : vector<32x128xbf16>, vector<128x256xbf16>, vector<32x256xf32> -> vector<32x256xf32>
    %12 = arith.addf %8, %11 : vector<32x256xf32>
    %c0_9 = arith.constant 0 : index
    %c0_10 = arith.constant 0 : index
    %13 = vector.load %arg5[%c0_9, %c0_10] : memref<1x256xf32, #tpu.memory_space<vmem>>, vector<1x256xf32>
    %14 = vector.broadcast %13 : vector<1x256xf32> to vector<32x256xf32>
    %15 = arith.mulf %12, %14 : vector<32x256xf32>
    %c0_11 = arith.constant 0 : index
    %c0_12 = arith.constant 0 : index
    %16 = vector.load %arg6[%c0_11, %c0_12] : memref<1x256xf32, #tpu.memory_space<vmem>>, vector<1x256xf32>
    %17 = vector.broadcast %16 : vector<1x256xf32> to vector<32x256xf32>
    %18 = arith.addf %15, %17 : vector<32x256xf32>
    %cst_13 = arith.constant 0.000000e+00 : f32
    %19 = vector.broadcast %cst_13 : f32 to vector<32x256xf32>
    %20 = arith.cmpf ogt, %18, %19 : vector<32x256xf32>
    %cst_14 = arith.constant 0.00999999977 : f32
    %21 = vector.broadcast %cst_14 : f32 to vector<32x256xf32>
    %22 = arith.mulf %21, %18 : vector<32x256xf32>
    %23 = arith.select %20, %18, %22 : vector<32x256xi1>, vector<32x256xf32>
    %24 = arith.truncf %23 : vector<32x256xf32> to vector<32x256xbf16>
    %c0_15 = arith.constant 0 : index
    %c0_16 = arith.constant 0 : index
    %25 = vector.load %arg7[%c0_15, %c0_16] : memref<32x256xbf16, #tpu.memory_space<vmem>>, vector<32x256xbf16>
    tpu.vector_store %arg7[%c0_15, %c0_16], %24 {strides = array<i32>} : memref<32x256xbf16, #tpu.memory_space<vmem>>, vector<32x256xbf16>,
    return
  }
  func.func @transform_0(%arg0: i32) -> (i32, i32, i32) {
    %c0_i32 = arith.constant 0 : i32
    %c0_i32_0 = arith.constant 0 : i32
    %c0_i32_1 = arith.constant 0 : i32
    return %c0_i32, %arg0, %c0_i32_0 : i32, i32, i32
  }
  func.func @transform_1(%arg0: i32) -> (i32, i32) {
    %c0_i32 = arith.constant 0 : i32
    %c0_i32_0 = arith.constant 0 : i32
    return %arg0, %c0_i32 : i32, i32
  }
  func.func @transform_2(%arg0: i32) -> (i32, i32) {
    %c0_i32 = arith.constant 0 : i32
    %c0_i32_0 = arith.constant 0 : i32
    %c0_i32_1 = arith.constant 0 : i32
    return %c0_i32, %c0_i32_0 : i32, i32
  }
  func.func @transform_3(%arg0: i32) -> (i32, i32) {
    %c0_i32 = arith.constant 0 : i32
    %c0_i32_0 = arith.constant 0 : i32
    %c0_i32_1 = arith.constant 0 : i32
    return %c0_i32, %c0_i32_0 : i32, i32
  }
  func.func @transform_4(%arg0: i32) -> (i32, i32) {
    %c0_i32 = arith.constant 0 : i32
    %c0_i32_0 = arith.constant 0 : i32
    %c0_i32_1 = arith.constant 0 : i32
    return %c0_i32, %c0_i32_0 : i32, i32
  }
  func.func @transform_5(%arg0: i32) -> (i32, i32) {
    %c0_i32 = arith.constant 0 : i32
    %c0_i32_0 = arith.constant 0 : i32
    %c0_i32_1 = arith.constant 0 : i32
    return %c0_i32, %c0_i32_0 : i32, i32
  }
  func.func @transform_6(%arg0: i32) -> (i32, i32) {
    %c0_i32 = arith.constant 0 : i32
    %c0_i32_0 = arith.constant 0 : i32
    return %arg0, %c0_i32 : i32, i32
  }
}

module attributes {stable_mosaic.version = 11 : i64} {
  func.func @_conv5_pool_kernel(%arg0: i32, %arg1: i32, %arg2: memref<1x16x512xbf16, #tpu.memory_space<vmem>>, %arg3: memref<512x1024xbf16, #tpu.memory_space<vmem>>, %arg4: memref<1x1x1024xf32, #tpu.memory_space<vmem>>) attributes {dimension_semantics = [#tpu.dimension_semantics<parallel>, #tpu.dimension_semantics<arbitrary>], iteration_bounds = array<i64: 2, 1>, scalar_prefetch = 0 : i64, scratch_operands = 0 : i64, tpu.core_type = #tpu.core_type<tc>, window_params = [{transform_indices = @transform_0, window_bounds = array<i64: 1, 16, 512>}, {pipeline_mode = #tpu.pipeline_mode<synchronous>, transform_indices = @transform_1, window_bounds = array<i64: 512, 1024>}, {transform_indices = @transform_2, window_bounds = array<i64: 1, 1, 1024>}]} {
    %c0_i32 = arith.constant 0 : i32
    %0 = arith.cmpi eq, %arg1, %c0_i32 : i32
    %1 = arith.extui %0 : i1 to i32
    %c0_i32_0 = arith.constant 0 : i32
    %2 = arith.cmpi ne, %1, %c0_i32_0 : i32
    scf.if %2 {
      %cst_12 = arith.constant 0xFF800000 : f32
      %15 = vector.broadcast %cst_12 : f32 to vector<1x1x1024xf32>
      %c0_13 = arith.constant 0 : index
      %c0_14 = arith.constant 0 : index
      %c0_15 = arith.constant 0 : index
      %16 = vector.load %arg4[%c0_13, %c0_14, %c0_15] : memref<1x1x1024xf32, #tpu.memory_space<vmem>>, vector<1x1x1024xf32>
      tpu.vector_store %arg4[%c0_13, %c0_14, %c0_15], %15 {strides = array<i32>} : memref<1x1x1024xf32, #tpu.memory_space<vmem>>, vector<1x1x1024xf32>,
    } else {
    }
    %c0 = arith.constant 0 : index
    %c0_1 = arith.constant 0 : index
    %c0_2 = arith.constant 0 : index
    %3 = vector.load %arg2[%c0, %c0_1, %c0_2] : memref<1x16x512xbf16, #tpu.memory_space<vmem>>, vector<1x16x512xbf16>
    %4 = vector.shape_cast %3 : vector<1x16x512xbf16> to vector<16x512xbf16>
    %c0_3 = arith.constant 0 : index
    %c0_4 = arith.constant 0 : index
    %5 = vector.load %arg3[%c0_3, %c0_4] : memref<512x1024xbf16, #tpu.memory_space<vmem>>, vector<512x1024xbf16>
    %cst = arith.constant dense<0.000000e+00> : vector<16x1024xf32>
    %6 = tpu.matmul %4, %5, %cst {dimension_numbers = #tpu.dot_dimension_numbers<[1], [0], [0], [1], [0, 0, 1, 1], [], []>} : vector<16x512xbf16>, vector<512x1024xbf16>, vector<16x1024xf32> -> vector<16x1024xf32>
    %c0_5 = arith.constant 0 : index
    %c0_6 = arith.constant 0 : index
    %c0_7 = arith.constant 0 : index
    %7 = vector.load %arg4[%c0_5, %c0_6, %c0_7] : memref<1x1x1024xf32, #tpu.memory_space<vmem>>, vector<1x1x1024xf32>
    %8 = vector.shape_cast %7 : vector<1x1x1024xf32> to vector<1x1024xf32>
    %cst_8 = arith.constant dense<0xFF800000> : vector<1024xf32>
    %9 = vector.multi_reduction <maximumf>, %6, %cst_8 [0] : vector<16x1024xf32> to vector<1024xf32>
    %10 = vector.shape_cast %9 : vector<1024xf32> to vector<1x1024xf32>
    %11 = arith.maximumf %8, %10 : vector<1x1024xf32>
    %c0_9 = arith.constant 0 : index
    %c0_10 = arith.constant 0 : index
    %c0_11 = arith.constant 0 : index
    %12 = vector.load %arg4[%c0_9, %c0_10, %c0_11] : memref<1x1x1024xf32, #tpu.memory_space<vmem>>, vector<1x1x1024xf32>
    %13 = vector.shape_cast %12 : vector<1x1x1024xf32> to vector<1x1024xf32>
    %14 = vector.shape_cast %11 : vector<1x1024xf32> to vector<1x1x1024xf32>
    tpu.vector_store %arg4[%c0_9, %c0_10, %c0_11], %14 {strides = array<i32>} : memref<1x1x1024xf32, #tpu.memory_space<vmem>>, vector<1x1x1024xf32>,
    return
  }
  func.func @transform_0(%arg0: i32, %arg1: i32) -> (i32, i32, i32) {
    %c0_i32 = arith.constant 0 : i32
    %c0_i32_0 = arith.constant 0 : i32
    return %arg0, %arg1, %c0_i32 : i32, i32, i32
  }
  func.func @transform_1(%arg0: i32, %arg1: i32) -> (i32, i32) {
    %c0_i32 = arith.constant 0 : i32
    %c0_i32_0 = arith.constant 0 : i32
    %c0_i32_1 = arith.constant 0 : i32
    return %c0_i32, %c0_i32_0 : i32, i32
  }
  func.func @transform_2(%arg0: i32, %arg1: i32) -> (i32, i32, i32) {
    %c0_i32 = arith.constant 0 : i32
    %c0_i32_0 = arith.constant 0 : i32
    %c0_i32_1 = arith.constant 0 : i32
    return %arg0, %c0_i32, %c0_i32_0 : i32, i32, i32
  }
}

module attributes {stable_mosaic.version = 11 : i64} {
  func.func @_head_kernel(%arg0: i32, %arg1: memref<2x1024xbf16, #tpu.memory_space<vmem>>, %arg2: memref<1024x512xbf16, #tpu.memory_space<vmem>>, %arg3: memref<1x512xf32, #tpu.memory_space<vmem>>, %arg4: memref<512x256xbf16, #tpu.memory_space<vmem>>, %arg5: memref<1x256xf32, #tpu.memory_space<vmem>>, %arg6: memref<256x3xbf16, #tpu.memory_space<vmem>>, %arg7: memref<1x3xf32, #tpu.memory_space<vmem>>, %arg8: memref<2x3xf32, #tpu.memory_space<vmem>>) attributes {dimension_semantics = [#tpu.dimension_semantics<arbitrary>], iteration_bounds = array<i64: 1>, scalar_prefetch = 0 : i64, scratch_operands = 0 : i64, tpu.core_type = #tpu.core_type<tc>, window_params = [{pipeline_mode = #tpu.pipeline_mode<synchronous>, transform_indices = @transform_0, window_bounds = array<i64: 2, 1024>}, {pipeline_mode = #tpu.pipeline_mode<synchronous>, transform_indices = @transform_1, window_bounds = array<i64: 1024, 512>}, {pipeline_mode = #tpu.pipeline_mode<synchronous>, transform_indices = @transform_2, window_bounds = array<i64: 1, 512>}, {pipeline_mode = #tpu.pipeline_mode<synchronous>, transform_indices = @transform_3, window_bounds = array<i64: 512, 256>}, {pipeline_mode = #tpu.pipeline_mode<synchronous>, transform_indices = @transform_4, window_bounds = array<i64: 1, 256>}, {pipeline_mode = #tpu.pipeline_mode<synchronous>, transform_indices = @transform_5, window_bounds = array<i64: 256, 3>}, {pipeline_mode = #tpu.pipeline_mode<synchronous>, transform_indices = @transform_6, window_bounds = array<i64: 1, 3>}, {pipeline_mode = #tpu.pipeline_mode<synchronous>, transform_indices = @transform_7, window_bounds = array<i64: 2, 3>}]} {
    %c0 = arith.constant 0 : index
    %c0_0 = arith.constant 0 : index
    %0 = vector.load %arg1[%c0, %c0_0] : memref<2x1024xbf16, #tpu.memory_space<vmem>>, vector<2x1024xbf16>
    %c0_1 = arith.constant 0 : index
    %c0_2 = arith.constant 0 : index
    %1 = vector.load %arg2[%c0_1, %c0_2] : memref<1024x512xbf16, #tpu.memory_space<vmem>>, vector<1024x512xbf16>
    %cst = arith.constant dense<0.000000e+00> : vector<2x512xf32>
    %2 = tpu.matmul %0, %1, %cst {dimension_numbers = #tpu.dot_dimension_numbers<[1], [0], [0], [1], [0, 0, 1, 1], [], []>} : vector<2x1024xbf16>, vector<1024x512xbf16>, vector<2x512xf32> -> vector<2x512xf32>
    %c0_3 = arith.constant 0 : index
    %c0_4 = arith.constant 0 : index
    %3 = vector.load %arg3[%c0_3, %c0_4] : memref<1x512xf32, #tpu.memory_space<vmem>>, vector<1x512xf32>
    %4 = vector.broadcast %3 : vector<1x512xf32> to vector<2x512xf32>
    %5 = arith.addf %2, %4 : vector<2x512xf32>
    %cst_5 = arith.constant 0.000000e+00 : f32
    %6 = vector.broadcast %cst_5 : f32 to vector<2x512xf32>
    %7 = arith.cmpf ogt, %5, %6 : vector<2x512xf32>
    %cst_6 = arith.constant 0.00999999977 : f32
    %8 = vector.broadcast %cst_6 : f32 to vector<2x512xf32>
    %9 = arith.mulf %8, %5 : vector<2x512xf32>
    %10 = arith.select %7, %5, %9 : vector<2x512xi1>, vector<2x512xf32>
    %11 = arith.truncf %10 : vector<2x512xf32> to vector<2x512xbf16>
    %c0_7 = arith.constant 0 : index
    %c0_8 = arith.constant 0 : index
    %12 = vector.load %arg4[%c0_7, %c0_8] : memref<512x256xbf16, #tpu.memory_space<vmem>>, vector<512x256xbf16>
    %cst_9 = arith.constant dense<0.000000e+00> : vector<2x256xf32>
    %13 = tpu.matmul %11, %12, %cst_9 {dimension_numbers = #tpu.dot_dimension_numbers<[1], [0], [0], [1], [0, 0, 1, 1], [], []>} : vector<2x512xbf16>, vector<512x256xbf16>, vector<2x256xf32> -> vector<2x256xf32>
    %c0_10 = arith.constant 0 : index
    %c0_11 = arith.constant 0 : index
    %14 = vector.load %arg5[%c0_10, %c0_11] : memref<1x256xf32, #tpu.memory_space<vmem>>, vector<1x256xf32>
    %15 = vector.broadcast %14 : vector<1x256xf32> to vector<2x256xf32>
    %16 = arith.addf %13, %15 : vector<2x256xf32>
    %cst_12 = arith.constant 0.000000e+00 : f32
    %17 = vector.broadcast %cst_12 : f32 to vector<2x256xf32>
    %18 = arith.cmpf ogt, %16, %17 : vector<2x256xf32>
    %cst_13 = arith.constant 0.00999999977 : f32
    %19 = vector.broadcast %cst_13 : f32 to vector<2x256xf32>
    %20 = arith.mulf %19, %16 : vector<2x256xf32>
    %21 = arith.select %18, %16, %20 : vector<2x256xi1>, vector<2x256xf32>
    %22 = arith.truncf %21 : vector<2x256xf32> to vector<2x256xbf16>
    %c0_14 = arith.constant 0 : index
    %c0_15 = arith.constant 0 : index
    %23 = vector.load %arg6[%c0_14, %c0_15] : memref<256x3xbf16, #tpu.memory_space<vmem>>, vector<256x3xbf16>
    %cst_16 = arith.constant dense<0.000000e+00> : vector<2x3xf32>
    %24 = tpu.matmul %22, %23, %cst_16 {dimension_numbers = #tpu.dot_dimension_numbers<[1], [0], [0], [1], [0, 0, 1, 1], [], []>} : vector<2x256xbf16>, vector<256x3xbf16>, vector<2x3xf32> -> vector<2x3xf32>
    %c0_17 = arith.constant 0 : index
    %c0_18 = arith.constant 0 : index
    %25 = vector.load %arg7[%c0_17, %c0_18] : memref<1x3xf32, #tpu.memory_space<vmem>>, vector<1x3xf32>
    %26 = vector.broadcast %25 : vector<1x3xf32> to vector<2x3xf32>
    %27 = arith.addf %24, %26 : vector<2x3xf32>
    %c0_19 = arith.constant 0 : index
    %c0_20 = arith.constant 0 : index
    %28 = vector.load %arg8[%c0_19, %c0_20] : memref<2x3xf32, #tpu.memory_space<vmem>>, vector<2x3xf32>
    tpu.vector_store %arg8[%c0_19, %c0_20], %27 {strides = array<i32>} : memref<2x3xf32, #tpu.memory_space<vmem>>, vector<2x3xf32>,
    return
  }
  func.func @transform_0(%arg0: i32) -> (i32, i32) {
    %c0_i32 = arith.constant 0 : i32
    %c0_i32_0 = arith.constant 0 : i32
    %c0_i32_1 = arith.constant 0 : i32
    return %c0_i32, %c0_i32_0 : i32, i32
  }
  func.func @transform_1(%arg0: i32) -> (i32, i32) {
    %c0_i32 = arith.constant 0 : i32
    %c0_i32_0 = arith.constant 0 : i32
    %c0_i32_1 = arith.constant 0 : i32
    return %c0_i32, %c0_i32_0 : i32, i32
  }
  func.func @transform_2(%arg0: i32) -> (i32, i32) {
    %c0_i32 = arith.constant 0 : i32
    %c0_i32_0 = arith.constant 0 : i32
    %c0_i32_1 = arith.constant 0 : i32
    return %c0_i32, %c0_i32_0 : i32, i32
  }
  func.func @transform_3(%arg0: i32) -> (i32, i32) {
    %c0_i32 = arith.constant 0 : i32
    %c0_i32_0 = arith.constant 0 : i32
    %c0_i32_1 = arith.constant 0 : i32
    return %c0_i32, %c0_i32_0 : i32, i32
  }
  func.func @transform_4(%arg0: i32) -> (i32, i32) {
    %c0_i32 = arith.constant 0 : i32
    %c0_i32_0 = arith.constant 0 : i32
    %c0_i32_1 = arith.constant 0 : i32
    return %c0_i32, %c0_i32_0 : i32, i32
  }
  func.func @transform_5(%arg0: i32) -> (i32, i32) {
    %c0_i32 = arith.constant 0 : i32
    %c0_i32_0 = arith.constant 0 : i32
    %c0_i32_1 = arith.constant 0 : i32
    return %c0_i32, %c0_i32_0 : i32, i32
  }
  func.func @transform_6(%arg0: i32) -> (i32, i32) {
    %c0_i32 = arith.constant 0 : i32
    %c0_i32_0 = arith.constant 0 : i32
    %c0_i32_1 = arith.constant 0 : i32
    return %c0_i32, %c0_i32_0 : i32, i32
  }
  func.func @transform_7(%arg0: i32) -> (i32, i32) {
    %c0_i32 = arith.constant 0 : i32
    %c0_i32_0 = arith.constant 0 : i32
    %c0_i32_1 = arith.constant 0 : i32
    return %c0_i32, %c0_i32_0 : i32, i32
  }
}

</mosaic_0001>

<bundles_post_ra>
// kernel: dgcnn_forward.10
= control target key start
LH: loop header
LB: loop body
LE: loop exit
PB: predicated region body
PF: predicated region fallthrough
CT: control target
= control target key end

     0   :  { %s637_s15 = smov 0   ;;  %s639_s16 = smov 0   ;;  %s679_s0 = inlined_call_operand.vmem [shape: bf16[2,16,8], index: 0, kind: input, shape index: {}, may-alias: {0,1}]   ;;  %s680_s1 = inlined_call_operand.vmem [shape: bf16[2,16,8], index: 1, kind: input, shape index: {}, may-alias: {0,1}]   ;;  %s681_s2 = inlined_call_operand.vmem [shape: f32[2,16,1], index: 2, kind: input, shape index: {}]   ;;  %s682_s3 = inlined_call_operand.vmem [shape: f32[2,1,16], index: 3, kind: input, shape index: {}]   ;;  %s683_s4 = inlined_call_operand.vmem [shape: f32[2,16,16], index: 4, kind: output, shape index: {}]  }
   0x1   :  { %s641_s17 = smov 0  }
   0x2 LB: > { %s26_s18 = sadd.s32 1, %s603_s16  ;;  %p528_p0 = scmp.ge.s32.totalorder %s607_s17, 1  ;;  %s607_s17 = sphi %s641_s17, %s14_s17   ;;  %s603_s16 = sphi %s639_s16, %s685_s16   ;;  %s599_s15 = sphi %s637_s15, %s684_s15  }
   0x3   : > { %p28_p1 = scmp.ge.s32.totalorder %s26_s18, 2  ;;  %p218_p2 = scmp.lt.s32.totalorder %s607_s17, 3 }
   0x5   : > { %s687_s18 = smov (%p28_p1, %s26_s18), 0  ;;  %p219_p3 = pnand %p528_p0, %p218_p2 }
   0x6   : > { %p270_p4 = scmp.lt.s32.totalorder (!%p219_p3), %s599_s15, 1 }
   0x7   : > { %222 = sbr.rel (%p219_p3) target bundleno = 228 (0xe4), region = 36 }
   0xc   : > { %v609_v0 = vmov 0.0   ;;  %vm610_vm0 = vmmov 0   ;;  %s689_s15 = smov (!%p270_p4, %s599_s15), 1  ;;  %v611_v1 = vmov 0   ;;  %vm322_vm1 = vcmask 64512  }
   0xd   : > { %549 = vmatprep.subr.bf16.mxu0 %v609_v0  ;;  %551 = vmatprep.mubr.msk.bf16.mxu0 %vm610_vm0, %v609_v0  ;;  %s543_s19 = sshll.u32 %s689_s15, 3  ;;  %s545_s20 = sshll.u32 %s689_s15, 4  ;;  %vm395_vm2 = vcmask 130048  }
   0xe   : > { %582 = vset.pattern.permute.xlu0 %v611_v1  ;;  %s277_s23 = scalar_lea.vmem %s679_s0, %s543_s19  ;;  %s283_s26 = scalar_lea.vmem %s680_s1, %s543_s19 }
   0xf   : > { %s292_s29 = scalar_lea.vmem %s681_s2, %s545_s20  ;;  %v583_v2 = vld [vmem:[%s283_s26] sm:$0xff]   ;;  %s296_s6 = scalar_lea.vmem %s682_s3, %s689_s15 }
  0x10   : > { %v372_v3 = vld [vmem:[%s292_s29] sm:$0xff]  ;;  %v327_v4 = vsel %vm322_vm1, %v583_v2, 0  ;;  %v373_v5 = vld [vmem:[%s292_s29 + $0x8] sm:$0xff]  ;;  %s305_s9 = scalar_lea.vmem %s683_s4, %s545_s20 }
  0x11   : > { %376 = vperm.xlu0 %582, %v372_v3   ;;  %550 = vmatpush3.bf16.xpose.msra.mxu0 %v327_v4  ;;  %v584_v6 = vld [vmem:[%s277_s23] sm:$0xff]  }
  0x12   : > { %v540_v10 = vld [vmem:[%s296_s6] ss:$0 sm:$0xff] }
  0x15   : > { %381 = vperm.xlu0 %582, %v373_v5  }
  0x18   : > { %552 = vmatmul.mubr.msk.bf16.vlgmr.msra.gmra.mxu0 %vm322_vm1, %v584_v6 }
  0x8c   : > { %v377_v7 = vpop.permute.xlu0 %376 }
  0x90   : > { %v382_v16 = vpop.permute.xlu0 %381 }
  0xd8   : > { %v363_v8 = vpop.f32.mrf.mxu0 }
  0xd9   : > { %v370_v9 = vmul.f32 2.0, %v363_v8 }
  0xda   : > { %v553_v11 = vpop.f32.mrf.mxu0 }
  0xdb   : > { %v384_v12 = vsub.f32 %v370_v9, %v377_v7 }
  0xdc   : > { %v366_v13 = vpop.f32.mrf.mxu0 }
  0xdd   : > { %v393_v14 = vsub.f32 %v384_v12, %v540_v10  ;;  %v371_v15 = vmul.f32 2.0, %v366_v13 }
  0xde   : > { %v554_v17 = vpop.f32.mrf.mxu0 }
  0xdf   : > { %396 = vst.msk [vmem:[%s305_s9] sm:$0xff] %vm395_vm2, %v393_v14  ;;  %v385_v18 = vsub.f32 %v371_v15, %v382_v16 }
  0xe1   : > { %v394_v19 = vsub.f32 %v385_v18, %v540_v10 }
  0xe3   : > { %397 = vst.msk [vmem:[%s305_s9 + $0x8] sm:$0xff] %vm395_vm2, %v394_v19 }
  0xe4 PF: > { %s14_s17 = sadd.s32 1, %s607_s17   ;;  %s684_s15 = smov %s603_s16 }
  0xe5   : > { %p11_p5 = scmp.ge.s32.totalorder %s14_s17, 4   ;;  %s685_s16 = smov %s687_s18 }
  0xe7   :  { %13 = sbr.rel (!%p11_p5) target bundleno = 2 (0x2), region = 75 }

// kernel: dgcnn_forward.12
= control target key start
LH: loop header
LB: loop body
LE: loop exit
PB: predicated region body
PF: predicated region fallthrough
CT: control target
= control target key end

     0   :  { %s637_s15 = smov 0   ;;  %s639_s16 = smov 0   ;;  %s679_s0 = inlined_call_operand.vmem [shape: bf16[2,16,64], index: 0, kind: input, shape index: {}, may-alias: {0,1}]   ;;  %s680_s1 = inlined_call_operand.vmem [shape: bf16[2,16,64], index: 1, kind: input, shape index: {}, may-alias: {0,1}]   ;;  %s681_s2 = inlined_call_operand.vmem [shape: f32[2,16,1], index: 2, kind: input, shape index: {}]   ;;  %s682_s3 = inlined_call_operand.vmem [shape: f32[2,1,16], index: 3, kind: input, shape index: {}]   ;;  %s683_s4 = inlined_call_operand.vmem [shape: f32[2,16,16], index: 4, kind: output, shape index: {}]  }
   0x1   :  { %s641_s17 = smov 0  }
   0x2 LB: > { %s26_s18 = sadd.s32 1, %s603_s16  ;;  %p528_p0 = scmp.ge.s32.totalorder %s607_s17, 1  ;;  %s607_s17 = sphi %s641_s17, %s14_s17   ;;  %s603_s16 = sphi %s639_s16, %s685_s16   ;;  %s599_s15 = sphi %s637_s15, %s684_s15  }
   0x3   : > { %p28_p1 = scmp.ge.s32.totalorder %s26_s18, 2  ;;  %p218_p2 = scmp.lt.s32.totalorder %s607_s17, 3 }
   0x5   : > { %s687_s18 = smov (%p28_p1, %s26_s18), 0  ;;  %p219_p3 = pnand %p528_p0, %p218_p2 }
   0x6   : > { %p270_p4 = scmp.lt.s32.totalorder (!%p219_p3), %s599_s15, 1 }
   0x7   : > { %222 = sbr.rel (%p219_p3) target bundleno = 228 (0xe4), region = 36 }
   0xc   : > { %v609_v0 = vmov 0.0   ;;  %vm610_vm0 = vmmov 0   ;;  %s689_s15 = smov (!%p270_p4, %s599_s15), 1  ;;  %v611_v1 = vmov 0   ;;  %vm322_vm1 = vcmask 523264  }
   0xd   : > { %549 = vmatprep.subr.bf16.mxu0 %v609_v0  ;;  %551 = vmatprep.mubr.msk.bf16.mxu0 %vm610_vm0, %v609_v0  ;;  %s543_s19 = sshll.u32 %s689_s15, 3  ;;  %s545_s20 = sshll.u32 %s689_s15, 4  ;;  %vm395_vm2 = vcmask 130048  }
   0xe   : > { %582 = vset.pattern.permute.xlu0 %v611_v1  ;;  %s277_s23 = scalar_lea.vmem %s679_s0, %s543_s19  ;;  %s283_s26 = scalar_lea.vmem %s680_s1, %s543_s19 }
   0xf   : > { %s292_s29 = scalar_lea.vmem %s681_s2, %s545_s20  ;;  %v583_v2 = vld [vmem:[%s283_s26] sm:$0xff]   ;;  %s296_s6 = scalar_lea.vmem %s682_s3, %s689_s15 }
  0x10   : > { %v372_v3 = vld [vmem:[%s292_s29] sm:$0xff]  ;;  %v327_v4 = vsel %vm322_vm1, %v583_v2, 0  ;;  %v373_v5 = vld [vmem:[%s292_s29 + $0x8] sm:$0xff]  ;;  %s305_s9 = scalar_lea.vmem %s683_s4, %s545_s20 }
  0x11   : > { %376 = vperm.xlu0 %582, %v372_v3   ;;  %550 = vmatpush3.bf16.xpose.msra.mxu0 %v327_v4  ;;  %v584_v6 = vld [vmem:[%s277_s23] sm:$0xff]  }
  0x12   : > { %v540_v10 = vld [vmem:[%s296_s6] ss:$0 sm:$0xff] }
  0x15   : > { %381 = vperm.xlu0 %582, %v373_v5  }
  0x18   : > { %552 = vmatmul.mubr.msk.bf16.vlgmr.msra.gmra.mxu0 %vm322_vm1, %v584_v6 }
  0x8c   : > { %v377_v7 = vpop.permute.xlu0 %376 }
  0x90   : > { %v382_v16 = vpop.permute.xlu0 %381 }
  0xd8   : > { %v363_v8 = vpop.f32.mrf.mxu0 }
  0xd9   : > { %v370_v9 = vmul.f32 2.0, %v363_v8 }
  0xda   : > { %v553_v11 = vpop.f32.mrf.mxu0 }
  0xdb   : > { %v384_v12 = vsub.f32 %v370_v9, %v377_v7 }
  0xdc   : > { %v366_v13 = vpop.f32.mrf.mxu0 }
  0xdd   : > { %v393_v14 = vsub.f32 %v384_v12, %v540_v10  ;;  %v371_v15 = vmul.f32 2.0, %v366_v13 }
  0xde   : > { %v554_v17 = vpop.f32.mrf.mxu0 }
  0xdf   : > { %396 = vst.msk [vmem:[%s305_s9] sm:$0xff] %vm395_vm2, %v393_v14  ;;  %v385_v18 = vsub.f32 %v371_v15, %v382_v16 }
  0xe1   : > { %v394_v19 = vsub.f32 %v385_v18, %v540_v10 }
  0xe3   : > { %397 = vst.msk [vmem:[%s305_s9 + $0x8] sm:$0xff] %vm395_vm2, %v394_v19 }
  0xe4 PF: > { %s14_s17 = sadd.s32 1, %s607_s17   ;;  %s684_s15 = smov %s603_s16 }
  0xe5   : > { %p11_p5 = scmp.ge.s32.totalorder %s14_s17, 4   ;;  %s685_s16 = smov %s687_s18 }
  0xe7   :  { %13 = sbr.rel (!%p11_p5) target bundleno = 2 (0x2), region = 75 }

// kernel: dgcnn_forward.11
= control target key start
LH: loop header
LB: loop body
LE: loop exit
PB: predicated region body
PF: predicated region fallthrough
CT: control target
= control target key end

     0   :  { %vm86_vm0 = vcmask 1043456   ;;  %vm67_vm1 = vcmask 64512   ;;  %s484_s2 = inlined_call_operand.vmem [shape: bf16[8,128], index: 2, kind: input, shape index: {}]   ;;  %s485_s0 = inlined_call_operand.vmem [shape: bf16[3,32,8], index: 0, kind: input, shape index: {}]   ;;  %s486_s3 = inlined_call_operand.vmem [shape: bf16[8,128], index: 3, kind: input, shape index: {}]   ;;  %s487_s1 = inlined_call_operand.vmem [shape: bf16[32,8], index: 1, kind: input, shape index: {}]   ;;  %s488_s4 = inlined_call_operand.vmem [shape: f32[1,128], index: 4, kind: input, shape index: {}]   ;;  %s489_s5 = inlined_call_operand.vmem [shape: f32[1,128], index: 5, kind: input, shape index: {}]   ;;  %s490_s6 = inlined_call_operand.vmem [shape: bf16[32,128], index: 6, kind: output, shape index: {}]  }
   0x1   :  { %v36_v0 = vld [vmem:[%s484_s2] sm:$0xf]  ;;  %v388_v4 = vld [vmem:[%s485_s0 + $0x8] sm:$0xff]   ;;  %v390_v8 = vld [vmem:[%s485_s0 + $0x10] sm:$0xff]  }
   0x2   :  { %383 = vmatprep.subr.msk.bf16.mxu0 %vm86_vm0, %v36_v0  ;;  %384 = vmatprep.subr.msk.bf16.mxu1 %vm86_vm0, %v36_v0  ;;  %v88_v1 = vsel %vm86_vm0, %v36_v0, 0  ;;  %v386_v2 = vld [vmem:[%s485_s0] sm:$0xff]   ;;  %v389_v5 = vld [vmem:[%s485_s0 + $0x28] sm:$0xff]   ;;  %v392_v10 = vld [vmem:[%s485_s0 + $0x18] sm:$0xff]  }
   0x3   :  { %362 = vmatpush3.bf16.msra.mxu0 %v88_v1  ;;  %382 = vmatpush3.bf16.msra.mxu1 %v88_v1  ;;  %v387_v3 = vld [vmem:[%s485_s0 + $0x20] sm:$0xff]   ;;  %v393_v11 = vld [vmem:[%s487_s1 + $0x8] sm:$0xff]  }
   0x4   :  { %363 = vmatprep.mubr.msk.bf16.mxu0 %vm67_vm1, %v386_v2  ;;  %371 = vmatprep.mubr.msk.bf16.mxu1 %vm67_vm1, %v387_v3  ;;  %v183_v6 = vld [vmem:[%s486_s3] sm:$0xf] }
   0x5   :  { %385 = vmatprep.subr.msk.bf16.mxu1 %vm86_vm0, %v183_v6  ;;  %v201_v7 = vsel %vm86_vm0, %v183_v6, 0  ;;  %v391_v9 = vld [vmem:[%s487_s1] sm:$0xff]  }
   0x6   :  { %364 = vmatmul.mubr.msk.bf16.vlgmr.msra.gmra.mxu0 %vm67_vm1, %v388_v4  ;;  %372 = vmatmul.mubr.msk.bf16.vlgmr.msra.gmra.mxu1 %vm67_vm1, %v389_v5  ;;  %v330_v27 = vld [vmem:[%s488_s4] ss:$0 sm:$0xff] }
   0x7   :  { %376 = vmatpush3.bf16.msra.mxu1 %v201_v7  ;;  %367 = vmatprep.mubr.msk.bf16.mxu0 %vm67_vm1, %v390_v8  ;;  %v331_v32 = vld [vmem:[%s489_s5] ss:$0 sm:$0xff] }
   0x8   :  { %377 = vmatprep.mubr.msk.bf16.mxu1 %vm67_vm1, %v391_v9 }
   0xe   :  { %368 = vmatmul.mubr.msk.bf16.gmra.mxu0 %vm67_vm1, %v392_v10  ;;  %378 = vmatmul.mubr.msk.bf16.vlgmr.msra.gmra.mxu1 %vm67_vm1, %v393_v11 }
  0xc6   :  { %v365_v12 = vpop.f32.mrf.mxu0  ;;  %v373_v13 = vpop.f32.mrf.mxu1 }
  0xc8   :  { %v124_v14 = vpop.f32.mrf.mxu0  ;;  %v156_v15 = vpop.f32.mrf.mxu1 }
  0xca   :  { %v366_v16 = vpop.f32.mrf.mxu0  ;;  %v374_v17 = vpop.f32.mrf.mxu1 }
  0xcc   :  { %v127_v18 = vpop.f32.mrf.mxu0  ;;  %v159_v19 = vpop.f32.mrf.mxu1 }
  0xce   :  { %v369_v20 = vpop.f32.mrf.mxu0  ;;  %v379_v22 = vpop.f32.mrf.mxu1 }
  0xcf   :  { %v173_v21 = vmax.f32 %v365_v12, %v369_v20 }
  0xd0   :  { %v140_v23 = vpop.f32.mrf.mxu0  ;;  %v237_v26 = vpop.f32.mrf.mxu1 }
  0xd1   :  { %v177_v24 = vmax.f32 %v173_v21, %v373_v13  ;;  %v171_v25 = vmax.f32 %v124_v14, %v140_v23 }
  0xd2   :  { %v370_v28 = vpop.f32.mrf.mxu0  ;;  %v380_v37 = vpop.f32.mrf.mxu1 }
  0xd3   :  { %v254_v29 = vadd.f32 %v379_v22, %v177_v24  ;;  %v175_v30 = vmax.f32 %v171_v25, %v156_v15  ;;  %v174_v31 = vmax.f32 %v366_v16, %v370_v28 }
  0xd4   :  { %v143_v33 = vpop.f32.mrf.mxu0  ;;  %v240_v44 = vpop.f32.mrf.mxu1 }
  0xd5   :  { %v265_v34 = vmul.f32 %v330_v27, %v254_v29  ;;  %v252_v35 = vadd.f32 %v237_v26, %v175_v30  ;;  %v178_v36 = vmax.f32 %v174_v31, %v374_v17  ;;  %v172_v38 = vmax.f32 %v127_v18, %v143_v33 }
  0xd7   :  { %v276_v39 = vadd.f32 %v331_v32, %v265_v34  ;;  %v263_v40 = vmul.f32 %v330_v27, %v252_v35  ;;  %v255_v41 = vadd.f32 %v380_v37, %v178_v36  ;;  %v176_v42 = vmax.f32 %v172_v38, %v159_v19 }
  0xd9   :  { %v266_v43 = vmul.f32 %v330_v27, %v255_v41  ;;  %v274_v45 = vadd.f32 %v331_v32, %v263_v40  ;;  %v253_v46 = vadd.f32 %v240_v44, %v176_v42  ;;  %v284_v47 = vmul.f32 0.01, %v276_v39 }
  0xda   :  { %vm280_vm2 = vcmp.gt.f32.partialorder %v276_v39, 0.0 }
  0xdb   :  { %v277_v48 = vadd.f32 %v331_v32, %v266_v43  ;;  %v264_v49 = vmul.f32 %v330_v27, %v253_v46  ;;  %v282_v51 = vmul.f32 0.01, %v274_v45  ;;  %v288_v53 = vsel %vm280_vm2, %v276_v39, %v284_v47 }
  0xdc   :  { %vm278_vm4 = vcmp.gt.f32.partialorder %v274_v45, 0.0 }
  0xdd   :  { %vm281_vm3 = vcmp.gt.f32.partialorder %v277_v48, 0.0  ;;  %v285_v50 = vmul.f32 0.01, %v277_v48  ;;  %v275_v52 = vadd.f32 %v331_v32, %v264_v49  ;;  %v286_v57 = vsel %vm278_vm4, %v274_v45, %v282_v51 }
  0xdf   :  { %v289_v54 = vsel %vm281_vm3, %v277_v48, %v285_v50  ;;  %vm279_vm5 = vcmp.gt.f32.partialorder %v275_v52, 0.0  ;;  %v283_v56 = vmul.f32 0.01, %v275_v52 }
  0xe0   :  { %v348_v55 = vpack.c.bf16 %v289_v54, %v288_v53 }
  0xe1   :  { %v287_v58 = vsel %vm279_vm5, %v275_v52, %v283_v56 }
  0xe2   :  { %350 = vst [vmem:[%s490_s6 + $0x8] sm:$0xff] %v348_v55   ;;  %v343_v59 = vpack.c.bf16 %v287_v58, %v286_v57 }
  0xe4   :  { %344 = vst [vmem:[%s490_s6] sm:$0xff] %v343_v59  }

// kernel: dgcnn_forward.13
= control target key start
LH: loop header
LB: loop body
LE: loop exit
PB: predicated region body
PF: predicated region fallthrough
CT: control target
= control target key end

     0   :  { %vm98_vm0 = vcmask 523264   ;;  %s581_s2 = inlined_call_operand.vmem [shape: bf16[64,128], index: 2, kind: input, shape index: {}]   ;;  %s582_s3 = inlined_call_operand.vmem [shape: bf16[64,128], index: 3, kind: input, shape index: {}]   ;;  %s583_s0 = inlined_call_operand.vmem [shape: bf16[3,32,64], index: 0, kind: input, shape index: {}]   ;;  %s584_s1 = inlined_call_operand.vmem [shape: bf16[32,64], index: 1, kind: input, shape index: {}]   ;;  %s585_s4 = inlined_call_operand.vmem [shape: f32[1,128], index: 4, kind: input, shape index: {}]   ;;  %s586_s5 = inlined_call_operand.vmem [shape: f32[1,128], index: 5, kind: input, shape index: {}]   ;;  %s587_s6 = inlined_call_operand.vmem [shape: bf16[32,128], index: 6, kind: output, shape index: {}]  }
   0x1   :  { %v462_v0 = vld [vmem:[%s581_s2 + $0x18] sm:$0xff]   ;;  %v463_v1 = vld [vmem:[%s581_s2 + $0x10] sm:$0xff]   ;;  %v464_v2 = vld [vmem:[%s581_s2 + $0x8] sm:$0xff]  }
   0x2   :  { %430 = vmatprep.subr.bf16.mxu0 %v462_v0  ;;  %v466_v3 = vld [vmem:[%s582_s3 + $0x18] sm:$0xff]   ;;  %v467_v4 = vld [vmem:[%s583_s0] sm:$0xff]   ;;  %v469_v6 = vld [vmem:[%s582_s3 + $0x10] sm:$0xff]  }
   0x3   :  { %431 = vmatpush3.bf16.msra.mxu0 %v462_v0  ;;  %v465_v5 = vld [vmem:[%s581_s2] sm:$0xff]   ;;  %450 = vmatprep.subr.bf16.mxu1 %v466_v3  ;;  %v470_v7 = vld [vmem:[%s582_s3 + $0x8] sm:$0xff]   ;;  %v471_v11 = vld [vmem:[%s583_s0 + $0x10] sm:$0xff]  }
   0x4   :  { %432 = vmatprep.subr.bf16.mxu0 %v463_v1  ;;  %451 = vmatpush3.bf16.msra.mxu1 %v466_v3  ;;  %v473_v8 = vld [vmem:[%s582_s3] sm:$0xff]   ;;  %v468_v10 = vld [vmem:[%s583_s0 + $0x8] sm:$0xff]   ;;  %v472_v13 = vld [vmem:[%s583_s0 + $0x18] sm:$0xff]  }
   0x5   :  { %438 = vmatprep.mubr.msk.bf16.mxu0 %vm98_vm0, %v467_v4  ;;  %452 = vmatprep.subr.bf16.mxu1 %v469_v6  ;;  %v474_v9 = vld [vmem:[%s584_s1] sm:$0xff]   ;;  %v475_v12 = vld [vmem:[%s584_s1 + $0x8] sm:$0xff]  }
   0x6   :  { %458 = vmatprep.mubr.msk.bf16.mxu1 %vm98_vm0, %v474_v9  ;;  %v476_v14 = vld [vmem:[%s583_s0 + $0x20] sm:$0xff]   ;;  %v477_v15 = vld [vmem:[%s583_s0 + $0x28] sm:$0xff]  }
   0x7   :  { %433 = vmatpush3.bf16.msra.mxu0 %v463_v1  ;;  %v393_v30 = vld [vmem:[%s585_s4] ss:$0 sm:$0xff] }
   0x8   :  { %434 = vmatprep.subr.bf16.mxu0 %v464_v2  ;;  %453 = vmatpush3.bf16.msra.mxu1 %v469_v6  ;;  %v394_v35 = vld [vmem:[%s586_s5] ss:$0 sm:$0xff] }
   0x9   :  { %454 = vmatprep.subr.bf16.mxu1 %v470_v7 }
   0xb   :  { %435 = vmatpush3.bf16.msra.mxu0 %v464_v2 }
   0xc   :  { %436 = vmatprep.subr.bf16.mxu0 %v465_v5  ;;  %455 = vmatpush3.bf16.msra.mxu1 %v470_v7 }
   0xd   :  { %456 = vmatprep.subr.bf16.mxu1 %v473_v8 }
   0xf   :  { %437 = vmatpush3.bf16.msra.mxu0 %v465_v5 }
  0x10   :  { %457 = vmatpush3.bf16.msra.mxu1 %v473_v8 }
  0x12   :  { %439 = vmatmul.mubr.msk.bf16.vlgmr.msra.gmra.mxu0 %vm98_vm0, %v468_v10 }
  0x13   :  { %442 = vmatprep.mubr.msk.bf16.mxu0 %vm98_vm0, %v471_v11  ;;  %459 = vmatmul.mubr.msk.bf16.vlgmr.msra.gmra.mxu1 %vm98_vm0, %v475_v12 }
  0x1a   :  { %443 = vmatmul.mubr.msk.bf16.gmra.mxu0 %vm98_vm0, %v472_v13 }
  0x1b   :  { %446 = vmatprep.mubr.msk.bf16.mxu0 %vm98_vm0, %v476_v14 }
  0x22   :  { %447 = vmatmul.mubr.msk.bf16.gmra.mxu0 %vm98_vm0, %v477_v15 }
  0xd2   :  { %v440_v16 = vpop.f32.mrf.mxu0 }
  0xd3   :  { %v460_v23 = vpop.f32.mrf.mxu1 }
  0xd4   :  { %v151_v17 = vpop.f32.mrf.mxu0 }
  0xd5   :  { %v292_v28 = vpop.f32.mrf.mxu1 }
  0xd6   :  { %v441_v18 = vpop.f32.mrf.mxu0 }
  0xd7   :  { %v461_v39 = vpop.f32.mrf.mxu1 }
  0xd8   :  { %v154_v19 = vpop.f32.mrf.mxu0 }
  0xd9   :  { %v295_v47 = vpop.f32.mrf.mxu1 }
  0xda   :  { %v444_v20 = vpop.f32.mrf.mxu0 }
  0xdb   :  { %v200_v25 = vmax.f32 %v440_v16, %v444_v20 }
  0xdc   :  { %v167_v21 = vpop.f32.mrf.mxu0 }
  0xdd   :  { %v198_v27 = vmax.f32 %v151_v17, %v167_v21 }
  0xde   :  { %v445_v22 = vpop.f32.mrf.mxu0 }
  0xdf   :  { %v201_v32 = vmax.f32 %v441_v18, %v445_v22 }
  0xe0   :  { %v170_v24 = vpop.f32.mrf.mxu0 }
  0xe1   :  { %v199_v37 = vmax.f32 %v154_v19, %v170_v24 }
  0xe2   :  { %v448_v26 = vpop.f32.mrf.mxu0 }
  0xe3   :  { %v204_v29 = vmax.f32 %v200_v25, %v448_v26 }
  0xe4   :  { %v183_v31 = vpop.f32.mrf.mxu0 }
  0xe5   :  { %v309_v33 = vadd.f32 %v460_v23, %v204_v29  ;;  %v202_v34 = vmax.f32 %v198_v27, %v183_v31 }
  0xe6   :  { %v449_v36 = vpop.f32.mrf.mxu0 }
  0xe7   :  { %v320_v38 = vmul.f32 %v393_v30, %v309_v33  ;;  %v307_v40 = vadd.f32 %v292_v28, %v202_v34  ;;  %v205_v41 = vmax.f32 %v201_v32, %v449_v36 }
  0xe8   :  { %v186_v42 = vpop.f32.mrf.mxu0 }
  0xe9   :  { %v331_v43 = vadd.f32 %v394_v35, %v320_v38  ;;  %v318_v44 = vmul.f32 %v393_v30, %v307_v40  ;;  %v310_v45 = vadd.f32 %v461_v39, %v205_v41  ;;  %v203_v46 = vmax.f32 %v199_v37, %v186_v42 }
  0xeb   :  { %v321_v48 = vmul.f32 %v393_v30, %v310_v45  ;;  %v329_v49 = vadd.f32 %v394_v35, %v318_v44  ;;  %v308_v50 = vadd.f32 %v295_v47, %v203_v46  ;;  %v339_v51 = vmul.f32 0.01, %v331_v43 }
  0xec   :  { %vm335_vm1 = vcmp.gt.f32.partialorder %v331_v43, 0.0 }
  0xed   :  { %v332_v52 = vadd.f32 %v394_v35, %v321_v48  ;;  %v319_v53 = vmul.f32 %v393_v30, %v308_v50  ;;  %v337_v55 = vmul.f32 0.01, %v329_v49  ;;  %v343_v57 = vsel %vm335_vm1, %v331_v43, %v339_v51 }
  0xee   :  { %vm333_vm3 = vcmp.gt.f32.partialorder %v329_v49, 0.0 }
  0xef   :  { %vm336_vm2 = vcmp.gt.f32.partialorder %v332_v52, 0.0  ;;  %v340_v54 = vmul.f32 0.01, %v332_v52  ;;  %v330_v56 = vadd.f32 %v394_v35, %v319_v53  ;;  %v341_v61 = vsel %vm333_vm3, %v329_v49, %v337_v55 }
  0xf1   :  { %v344_v58 = vsel %vm336_vm2, %v332_v52, %v340_v54  ;;  %vm334_vm4 = vcmp.gt.f32.partialorder %v330_v56, 0.0  ;;  %v338_v60 = vmul.f32 0.01, %v330_v56 }
  0xf2   :  { %v411_v59 = vpack.c.bf16 %v344_v58, %v343_v57 }
  0xf3   :  { %v342_v62 = vsel %vm334_vm4, %v330_v56, %v338_v60 }
  0xf4   :  { %413 = vst [vmem:[%s587_s6 + $0x8] sm:$0xff] %v411_v59   ;;  %v406_v63 = vpack.c.bf16 %v342_v62, %v341_v61 }
  0xf6   :  { %407 = vst [vmem:[%s587_s6] sm:$0xff] %v406_v63  }

// kernel: dgcnn_forward.16
= control target key start
LH: loop header
LB: loop body
LE: loop exit
PB: predicated region body
PF: predicated region fallthrough
CT: control target
= control target key end

     0   :  { %s631_s15 = smov 0   ;;  %s633_s16 = smov 0   ;;  %s673_s0 = inlined_call_operand.vmem [shape: bf16[2,16,128], index: 0, kind: input, shape index: {}, may-alias: {0,1}]   ;;  %s674_s1 = inlined_call_operand.vmem [shape: bf16[2,16,128], index: 1, kind: input, shape index: {}, may-alias: {0,1}]   ;;  %s675_s2 = inlined_call_operand.vmem [shape: f32[2,16,1], index: 2, kind: input, shape index: {}]   ;;  %s676_s3 = inlined_call_operand.vmem [shape: f32[2,1,16], index: 3, kind: input, shape index: {}]   ;;  %s677_s4 = inlined_call_operand.vmem [shape: f32[2,16,16], index: 4, kind: output, shape index: {}]  }
   0x1   :  { %s635_s17 = smov 0  }
   0x2 LB: > { %s26_s18 = sadd.s32 1, %s597_s16  ;;  %p523_p0 = scmp.ge.s32.totalorder %s601_s17, 1  ;;  %s601_s17 = sphi %s635_s17, %s14_s17   ;;  %s597_s16 = sphi %s633_s16, %s679_s16   ;;  %s593_s15 = sphi %s631_s15, %s678_s15  }
   0x3   : > { %p28_p1 = scmp.ge.s32.totalorder %s26_s18, 2  ;;  %p218_p2 = scmp.lt.s32.totalorder %s601_s17, 3 }
   0x5   : > { %s681_s18 = smov (%p28_p1, %s26_s18), 0  ;;  %p219_p3 = pnand %p523_p0, %p218_p2 }
   0x6   : > { %p270_p4 = scmp.lt.s32.totalorder (!%p219_p3), %s593_s15, 1 }
   0x7   : > { %222 = sbr.rel (%p219_p3) target bundleno = 227 (0xe3), region = 36 }
   0xc   : > { %v603_v0 = vmov 0.0   ;;  %vm604_vm0 = vmmov 0   ;;  %s683_s15 = smov (!%p270_p4, %s593_s15), 1  ;;  %v605_v1 = vmov 0   ;;  %vm390_vm1 = vcmask 130048  }
   0xd   : > { %543 = vmatprep.subr.bf16.mxu0 %v603_v0  ;;  %545 = vmatprep.mubr.msk.bf16.mxu0 %vm604_vm0, %v603_v0  ;;  %s537_s19 = sshll.u32 %s683_s15, 3  ;;  %s539_s20 = sshll.u32 %s683_s15, 4 }
   0xe   : > { %576 = vset.pattern.permute.xlu0 %v605_v1  ;;  %s283_s23 = scalar_lea.vmem %s674_s1, %s537_s19  ;;  %s277_s26 = scalar_lea.vmem %s673_s0, %s537_s19 }
   0xf   : > { %v577_v2 = vld [vmem:[%s283_s23] sm:$0xff]   ;;  %s292_s29 = scalar_lea.vmem %s675_s2, %s539_s20  ;;  %s296_s6 = scalar_lea.vmem %s676_s3, %s683_s15 }
  0x10   : > { %544 = vmatpush3.bf16.xpose.msra.mxu0 %v577_v2  ;;  %v367_v3 = vld [vmem:[%s292_s29] sm:$0xff]  ;;  %v368_v4 = vld [vmem:[%s292_s29 + $0x8] sm:$0xff]  ;;  %s305_s9 = scalar_lea.vmem %s677_s4, %s539_s20 }
  0x11   : > { %371 = vperm.xlu0 %576, %v367_v3   ;;  %v578_v5 = vld [vmem:[%s277_s26] sm:$0xff]  }
  0x12   : > { %v534_v9 = vld [vmem:[%s296_s6] ss:$0 sm:$0xff] }
  0x15   : > { %376 = vperm.xlu0 %576, %v368_v4  }
  0x17   : > { %546 = vmatmul.mubr.bf16.vlgmr.msra.gmra.mxu0 %v578_v5 }
  0x8c   : > { %v372_v6 = vpop.permute.xlu0 %371 }
  0x90   : > { %v377_v15 = vpop.permute.xlu0 %376 }
  0xd7   : > { %v358_v7 = vpop.f32.mrf.mxu0 }
  0xd8   : > { %v365_v8 = vmul.f32 2.0, %v358_v7 }
  0xd9   : > { %v547_v10 = vpop.f32.mrf.mxu0 }
  0xda   : > { %v379_v11 = vsub.f32 %v365_v8, %v372_v6 }
  0xdb   : > { %v361_v12 = vpop.f32.mrf.mxu0 }
  0xdc   : > { %v388_v13 = vsub.f32 %v379_v11, %v534_v9  ;;  %v366_v14 = vmul.f32 2.0, %v361_v12 }
  0xdd   : > { %v548_v16 = vpop.f32.mrf.mxu0 }
  0xde   : > { %391 = vst.msk [vmem:[%s305_s9] sm:$0xff] %vm390_vm1, %v388_v13  ;;  %v380_v17 = vsub.f32 %v366_v14, %v377_v15 }
  0xe0   : > { %v389_v18 = vsub.f32 %v380_v17, %v534_v9 }
  0xe2   : > { %392 = vst.msk [vmem:[%s305_s9 + $0x8] sm:$0xff] %vm390_vm1, %v389_v18 }
  0xe3 PF: > { %s14_s17 = sadd.s32 1, %s601_s17   ;;  %s678_s15 = smov %s597_s16 }
  0xe4   : > { %p11_p5 = scmp.ge.s32.totalorder %s14_s17, 4   ;;  %s679_s16 = smov %s681_s18 }
  0xe6   :  { %13 = sbr.rel (!%p11_p5) target bundleno = 2 (0x2), region = 75 }

// kernel: dgcnn_forward.17
= control target key start
LH: loop header
LB: loop body
LE: loop exit
PB: predicated region body
PF: predicated region fallthrough
CT: control target
= control target key end

     0   :  { %v651_v1 = vmov 0   ;;  %v452_v53 = vlaneseq  ;;  %s854_s2 = inlined_call_operand.vmem [shape: bf16[128,256], index: 2, kind: input, shape index: {}]   ;;  %s855_s3 = inlined_call_operand.vmem [shape: bf16[128,256], index: 3, kind: input, shape index: {}]   ;;  %s856_s0 = inlined_call_operand.vmem [shape: bf16[3,32,128], index: 0, kind: input, shape index: {}]   ;;  %s857_s1 = inlined_call_operand.vmem [shape: bf16[32,128], index: 1, kind: input, shape index: {}]   ;;  %s858_s4 = inlined_call_operand.vmem [shape: f32[1,256], index: 4, kind: input, shape index: {}]   ;;  %s859_s5 = inlined_call_operand.vmem [shape: f32[1,256], index: 5, kind: input, shape index: {}]   ;;  %s860_s6 = inlined_call_operand.vmem [shape: bf16[32,256], index: 6, kind: output, shape index: {}]  }
   0x1   :  { %v595_v0 = vld [vmem:[%s854_s2 + $0x74] ss:$8 sps:$4 sm:$0xff]   ;;  %200 = vmatprep.mubr.bf16.mxu0 %v651_v1  ;;  %421 = vmatprep.mubr.bf16.mxu1 %v651_v1  ;;  %v597_v2 = vld [vmem:[%s854_s2 + $0x70] ss:$8 sps:$4 sm:$0xff]   ;;  %v598_v3 = vld [vmem:[%s854_s2 + $0x64] ss:$8 sps:$4 sm:$0xff]  }
   0x2   :  { %168 = vmatprep.subr.bf16.mxu0 %v595_v0  ;;  %v600_v4 = vld [vmem:[%s854_s2 + $0x60] ss:$8 sps:$4 sm:$0xff]   ;;  %v601_v5 = vld [vmem:[%s854_s2 + $0x54] ss:$8 sps:$4 sm:$0xff]   ;;  %v603_v6 = vld [vmem:[%s854_s2 + $0x50] ss:$8 sps:$4 sm:$0xff]  }
   0x3   :  { %169 = vmatpush1.bf16.msra.mxu0 %v597_v2  ;;  %v604_v7 = vld [vmem:[%s854_s2 + $0x44] ss:$8 sps:$4 sm:$0xff]   ;;  %v606_v8 = vld [vmem:[%s854_s2 + $0x40] ss:$8 sps:$4 sm:$0xff]   ;;  %v618_v9 = vld [vmem:[%s855_s3 + $0x74] ss:$8 sps:$4 sm:$0xff]  }
   0x4   :  { %170 = vmatprep.subr.bf16.mxu0 %v598_v3  ;;  %v621_v10 = vld [vmem:[%s855_s3 + $0x70] ss:$8 sps:$4 sm:$0xff]   ;;  %v607_v11 = vld [vmem:[%s854_s2 + $0x34] ss:$8 sps:$4 sm:$0xff]   ;;  %389 = vmatprep.subr.bf16.mxu1 %v618_v9  ;;  %v623_v12 = vld [vmem:[%s855_s3 + $0x64] ss:$8 sps:$4 sm:$0xff]  }
   0x5   :  { %390 = vmatpush1.bf16.msra.mxu1 %v621_v10  ;;  %v625_v13 = vld [vmem:[%s855_s3 + $0x60] ss:$8 sps:$4 sm:$0xff]   ;;  %v609_v14 = vld [vmem:[%s854_s2 + $0x30] ss:$8 sps:$4 sm:$0xff]   ;;  %v626_v15 = vld [vmem:[%s855_s3 + $0x54] ss:$8 sps:$4 sm:$0xff]  }
   0x6   :  { %391 = vmatprep.subr.bf16.mxu1 %v623_v12  ;;  %v610_v16 = vld [vmem:[%s854_s2 + $0x24] ss:$8 sps:$4 sm:$0xff]   ;;  %v612_v17 = vld [vmem:[%s854_s2 + $0x20] ss:$8 sps:$4 sm:$0xff]   ;;  %v628_v18 = vld [vmem:[%s855_s3 + $0x50] ss:$8 sps:$4 sm:$0xff]  }
   0x7   :  { %171 = vmatpush1.bf16.msra.mxu0 %v600_v4  ;;  %v630_v19 = vld [vmem:[%s855_s3 + $0x44] ss:$8 sps:$4 sm:$0xff]   ;;  %v613_v20 = vld [vmem:[%s854_s2 + $0x14] ss:$8 sps:$4 sm:$0xff]   ;;  %v615_v21 = vld [vmem:[%s854_s2 + $0x10] ss:$8 sps:$4 sm:$0xff]  }
   0x8   :  { %172 = vmatprep.subr.bf16.mxu0 %v601_v5  ;;  %v632_v22 = vld [vmem:[%s855_s3 + $0x40] ss:$8 sps:$4 sm:$0xff]   ;;  %v633_v23 = vld [vmem:[%s855_s3 + $0x34] ss:$8 sps:$4 sm:$0xff]   ;;  %v616_v24 = vld [vmem:[%s854_s2 + $0x4] ss:$8 sps:$4 sm:$0xff]  }
   0x9   :  { %392 = vmatpush1.bf16.msra.mxu1 %v625_v13  ;;  %v620_v25 = vld [vmem:[%s854_s2] ss:$8 sps:$4 sm:$0xff]   ;;  %v635_v26 = vld [vmem:[%s855_s3 + $0x30] ss:$8 sps:$4 sm:$0xff]   ;;  %v637_v27 = vld [vmem:[%s855_s3 + $0x24] ss:$8 sps:$4 sm:$0xff]  }
   0xa   :  { %393 = vmatprep.subr.bf16.mxu1 %v626_v15  ;;  %v622_v28 = vld [vmem:[%s856_s0] sm:$0xff]   ;;  %v640_v30 = vld [vmem:[%s855_s3 + $0x14] ss:$8 sps:$4 sm:$0xff]   ;;  %v642_v31 = vld [vmem:[%s855_s3 + $0x10] ss:$8 sps:$4 sm:$0xff]   ;;  %v453_v57 = vshrl.u32 %v452_v53, 7 }
   0xb   :  { %173 = vmatpush1.bf16.msra.mxu0 %v603_v6  ;;  %v639_v29 = vld [vmem:[%s855_s3 + $0x20] ss:$8 sps:$4 sm:$0xff]   ;;  %v644_v32 = vld [vmem:[%s855_s3 + $0x4] ss:$8 sps:$4 sm:$0xff]   ;;  %v636_v36 = vld [vmem:[%s856_s0 + $0x10] sm:$0xff]  }
   0xc   :  { %174 = vmatprep.subr.bf16.mxu0 %v604_v7  ;;  %v629_v33 = vld [vmem:[%s856_s0 + $0x8] sm:$0xff]   ;;  %v647_v35 = vld [vmem:[%s857_s1] sm:$0xff]   ;;  %v643_v38 = vld [vmem:[%s856_s0 + $0x18] sm:$0xff]   ;;  %v454_v61 = vsub.s32 0, %v453_v57  ;;  %v458_v2 = vsub.s32 1, %v453_v57 }
   0xd   :  { %394 = vmatpush1.bf16.msra.mxu1 %v628_v18  ;;  %v646_v34 = vld [vmem:[%s855_s3] ss:$8 sps:$4 sm:$0xff]  }
   0xe   :  { %395 = vmatprep.subr.bf16.mxu1 %v630_v19  ;;  %v649_v37 = vld [vmem:[%s857_s1 + $0x8] sm:$0xff]   ;;  %v648_v39 = vld [vmem:[%s856_s0 + $0x20] sm:$0xff]  }
   0xf   :  { %175 = vmatpush1.bf16.msra.mxu0 %v606_v8  ;;  %v650_v40 = vld [vmem:[%s856_s0 + $0x28] sm:$0xff]   ;;  %v450_v63 = vld [vmem:[%s858_s4] sm:$0x3] }
  0x10   :  { %176 = vmatprep.subr.bf16.mxu0 %v607_v11  ;;  %v455_v7 = vrot.slane %v450_v63, %v454_v61  ;;  %v459_v13 = vrot.slane %v450_v63, %v458_v2 }
  0x11   :  { %396 = vmatpush1.bf16.msra.mxu1 %v632_v22 }
  0x12   :  { %397 = vmatprep.subr.bf16.mxu1 %v633_v23 }
  0x13   :  { %177 = vmatpush1.bf16.msra.mxu0 %v609_v14 }
  0x14   :  { %178 = vmatprep.subr.bf16.mxu0 %v610_v16 }
  0x15   :  { %398 = vmatpush1.bf16.msra.mxu1 %v635_v26 }
  0x16   :  { %399 = vmatprep.subr.bf16.mxu1 %v637_v27 }
  0x17   :  { %179 = vmatpush1.bf16.msra.mxu0 %v612_v17 }
  0x18   :  { %180 = vmatprep.subr.bf16.mxu0 %v613_v20 }
  0x19   :  { %400 = vmatpush1.bf16.msra.mxu1 %v639_v29 }
  0x1a   :  { %401 = vmatprep.subr.bf16.mxu1 %v640_v30 }
  0x1b   :  { %181 = vmatpush1.bf16.msra.mxu0 %v615_v21 }
  0x1c   :  { %182 = vmatprep.subr.bf16.mxu0 %v616_v24 }
  0x1d   :  { %402 = vmatpush1.bf16.msra.mxu1 %v642_v31 }
  0x1e   :  { %403 = vmatprep.subr.bf16.mxu1 %v644_v32 }
  0x1f   :  { %183 = vmatpush1.bf16.msra.mxu0 %v620_v25 }
  0x21   :  { %404 = vmatpush1.bf16.msra.mxu1 %v646_v34 }
  0x22   :  { %201 = vmatmul.mubr.bf16.vlgmr.msra.gmra.mxu0 %v622_v28 }
  0x23   :  { %210 = vmatprep.mubr.bf16.mxu0 %v651_v1 }
  0x24   :  { %422 = vmatmul.mubr.bf16.vlgmr.msra.gmra.mxu1 %v647_v35 }
  0x25   :  { %431 = vmatprep.mubr.bf16.mxu1 %v651_v1 }
  0x2a   :  { %211 = vmatmul.mubr.bf16.gmra.mxu0 %v629_v33 }
  0x2b   :  { %220 = vmatprep.mubr.bf16.mxu0 %v651_v1 }
  0x2c   :  { %432 = vmatmul.mubr.bf16.gmra.mxu1 %v649_v37 }
  0x32   :  { %221 = vmatmul.mubr.bf16.gmra.mxu0 %v636_v36 }
  0x33   :  { %230 = vmatprep.mubr.bf16.mxu0 %v651_v1 }
  0x3a   :  { %231 = vmatmul.mubr.bf16.gmra.mxu0 %v643_v38 }
  0x3b   :  { %240 = vmatprep.mubr.bf16.mxu0 %v651_v1 }
  0x42   :  { %241 = vmatmul.mubr.bf16.gmra.mxu0 %v648_v39 }
  0x43   :  { %250 = vmatprep.mubr.bf16.mxu0 %v651_v1  ;;  %v470_v1 = vld [vmem:[%s859_s5] sm:$0x3] }
  0x44   :  { %v827_v8 = vrot.slane %v470_v1, %v454_v61  ;;  %v829_v14 = vrot.slane %v470_v1, %v458_v2 }
  0x4a   :  { %251 = vmatmul.mubr.bf16.gmra.mxu0 %v650_v40 }
  0xe2   :  { %v202_v41 = vpop.f32.mrf.mxu0 }
  0xe4   :  { %v204_v42 = vpop.f32.mrf.mxu0  ;;  %v423_v52 = vpop.f32.mrf.mxu1 }
  0xe6   :  { %v206_v43 = vpop.f32.mrf.mxu0  ;;  %v425_v56 = vpop.f32.mrf.mxu1 }
  0xe8   :  { %v208_v44 = vpop.f32.mrf.mxu0  ;;  %v427_v60 = vpop.f32.mrf.mxu1 }
  0xea   :  { %v212_v45 = vpop.f32.mrf.mxu0  ;;  %v429_v4 = vpop.f32.mrf.mxu1 }
  0xec   :  { %v815_v46 = vpop.f32.mrf.mxu0  ;;  %v433_v16 = vpop.f32.mrf.mxu1 }
  0xee   :  { %v817_v47 = vpop.f32.mrf.mxu0  ;;  %v435_v27 = vpop.f32.mrf.mxu1 }
  0xf0   :  { %v819_v48 = vpop.f32.mrf.mxu0 }
  0xf2   :  { %v222_v49 = vpop.f32.mrf.mxu0 }
  0xf3   :  { %v261_v0 = vmax.f32 %v202_v41, %v222_v49 }
  0xf4   :  { %v224_v50 = vpop.f32.mrf.mxu0 }
  0xf5   :  { %v262_v5 = vmax.f32 %v204_v42, %v224_v50  ;;  %v437_v42 = vpop.f32.mrf.mxu1 }
  0xf6   :  { %v226_v51 = vpop.f32.mrf.mxu0 }
  0xf7   :  { %v263_v10 = vmax.f32 %v206_v43, %v226_v51 }
  0xf8   :  { %v228_v54 = vpop.f32.mrf.mxu0 }
  0xf9   :  { %v264_v17 = vmax.f32 %v208_v44, %v228_v54 }
  0xfa   :  { %v232_v55 = vpop.f32.mrf.mxu0 }
  0xfb   :  { %v265_v26 = vmax.f32 %v212_v45, %v232_v55 }
  0xfc   :  { %v234_v58 = vpop.f32.mrf.mxu0 }
  0xfd   :  { %v266_v32 = vmax.f32 %v815_v46, %v234_v58 }
  0xfe   :  { %v236_v59 = vpop.f32.mrf.mxu0 }
  0xff   :  { %v267_v36 = vmax.f32 %v817_v47, %v236_v59  ;;  %v439_v59 = vpop.f32.mrf.mxu1 }
 0x100   :  { %v238_v62 = vpop.f32.mrf.mxu0 }
 0x101   :  { %v268_v39 = vmax.f32 %v819_v48, %v238_v62 }
 0x102   :  { %v242_v3 = vpop.f32.mrf.mxu0 }
 0x103   :  { %v269_v6 = vmax.f32 %v261_v0, %v242_v3 }
 0x104   :  { %v244_v9 = vpop.f32.mrf.mxu0 }
 0x105   :  { %v442_v11 = vadd.f32 %v423_v52, %v269_v6  ;;  %v270_v12 = vmax.f32 %v262_v5, %v244_v9 }
 0x106   :  { %v246_v15 = vpop.f32.mrf.mxu0 }
 0x107   :  { %v462_v18 = vmul.f32 %v455_v7, %v442_v11  ;;  %v443_v19 = vadd.f32 %v425_v56, %v270_v12  ;;  %v271_v20 = vmax.f32 %v263_v10, %v246_v15 }
 0x108   :  { %v248_v21 = vpop.f32.mrf.mxu0 }
 0x109   :  { %v482_v22 = vadd.f32 %v827_v8, %v462_v18  ;;  %v463_v23 = vmul.f32 %v459_v13, %v443_v19  ;;  %v444_v24 = vadd.f32 %v427_v60, %v271_v20  ;;  %v272_v25 = vmax.f32 %v264_v17, %v248_v21 }
 0x10a   :  { %v252_v28 = vpop.f32.mrf.mxu0 }
 0x10b   :  { %v498_v29 = vmul.f32 0.01, %v482_v22  ;;  %v483_v30 = vadd.f32 %v829_v14, %v463_v23  ;;  %v464_v31 = vmul.f32 %v455_v7, %v444_v24  ;;  %vm490_vm0 = vcmp.gt.f32.partialorder %v482_v22, 0.0 }
 0x10c   :  { %v445_v33 = vadd.f32 %v429_v4, %v272_v25  ;;  %v273_v34 = vmax.f32 %v265_v26, %v252_v28  ;;  %v254_v35 = vpop.f32.mrf.mxu0 }
 0x10d   :  { %vm491_vm1 = vcmp.gt.f32.partialorder %v483_v30, 0.0  ;;  %v499_v37 = vmul.f32 0.01, %v483_v30  ;;  %v484_v38 = vadd.f32 %v827_v8, %v464_v31  ;;  %v274_v43 = vmax.f32 %v266_v32, %v254_v35 }
 0x10e   :  { %v465_v40 = vmul.f32 %v459_v13, %v445_v33  ;;  %v446_v41 = vadd.f32 %v433_v16, %v273_v34  ;;  %v256_v44 = vpop.f32.mrf.mxu0  ;;  %v506_v45 = vsel %vm490_vm0, %v482_v22, %v498_v29 }
 0x10f   :  { %v507_v49 = vsel %vm491_vm1, %v483_v30, %v499_v37  ;;  %v500_v46 = vmul.f32 0.01, %v484_v38  ;;  %v275_v50 = vmax.f32 %v267_v36, %v256_v44  ;;  %v447_v47 = vadd.f32 %v435_v27, %v274_v43 }
 0x110   :  { %v590_v51 = vpack.c.bf16 %v507_v49, %v506_v45  ;;  %v485_v52 = vadd.f32 %v829_v14, %v465_v40  ;;  %v466_v53 = vmul.f32 %v455_v7, %v446_v41  ;;  %v258_v54 = vpop.f32.mrf.mxu0  ;;  %vm492_vm2 = vcmp.gt.f32.partialorder %v484_v38, 0.0 }
 0x111   :  { %v448_v55 = vadd.f32 %v437_v42, %v275_v50  ;;  %v276_v56 = vmax.f32 %v268_v39, %v258_v54  ;;  %v467_v58 = vmul.f32 %v459_v13, %v447_v47  ;;  %v508_v62 = vsel %vm492_vm2, %v484_v38, %v500_v46 }
 0x112   :  { %538 = vst [vmem:[%s860_s6] sm:$0xff] %v590_v51  ;;  %vm493_vm3 = vcmp.gt.f32.partialorder %v485_v52, 0.0  ;;  %v501_v48 = vmul.f32 0.01, %v485_v52  ;;  %v486_v57 = vadd.f32 %v827_v8, %v466_v53 }
 0x113   :  { %v468_v60 = vmul.f32 %v455_v7, %v448_v55  ;;  %v449_v61 = vadd.f32 %v439_v59, %v276_v56  ;;  %v487_v1 = vadd.f32 %v829_v14, %v467_v58 }
 0x114   :  { %v509_v63 = vsel %vm493_vm3, %v485_v52, %v501_v48  ;;  %v502_v0 = vmul.f32 0.01, %v486_v57  ;;  %vm494_vm4 = vcmp.gt.f32.partialorder %v486_v57, 0.0 }
 0x115   :  { %v591_v2 = vpack.c.bf16 %v509_v63, %v508_v62  ;;  %v488_v3 = vadd.f32 %v827_v8, %v468_v60  ;;  %v469_v4 = vmul.f32 %v459_v13, %v449_v61  ;;  %vm495_vm5 = vcmp.gt.f32.partialorder %v487_v1, 0.0 }
 0x116   :  { %v503_v5 = vmul.f32 0.01, %v487_v1  ;;  %v510_v9 = vsel %vm494_vm4, %v486_v57, %v502_v0 }
 0x117   :  { %539 = vst [vmem:[%s860_s6 + $0x8] sm:$0xff] %v591_v2  ;;  %v504_v6 = vmul.f32 0.01, %v488_v3  ;;  %v489_v7 = vadd.f32 %v829_v14, %v469_v4  ;;  %vm496_vm6 = vcmp.gt.f32.partialorder %v488_v3, 0.0 }
 0x118   :  { %v511_v10 = vsel %vm495_vm5, %v487_v1, %v503_v5 }
 0x119   :  { %v592_v11 = vpack.c.bf16 %v511_v10, %v510_v9  ;;  %vm497_vm7 = vcmp.gt.f32.partialorder %v489_v7, 0.0  ;;  %v505_v12 = vmul.f32 0.01, %v489_v7  ;;  %v512_v8 = vsel %vm496_vm6, %v488_v3, %v504_v6 }
 0x11b   :  { %540 = vst [vmem:[%s860_s6 + $0x10] sm:$0xff] %v592_v11  ;;  %v513_v13 = vsel %vm497_vm7, %v489_v7, %v505_v12 }
 0x11c   :  { %v593_v15 = vpack.c.bf16 %v513_v13, %v512_v8 }
 0x11e   :  { %541 = vst [vmem:[%s860_s6 + $0x18] sm:$0xff] %v593_v15 }

// kernel: dgcnn_forward.18
= control target key start
LH: loop header
LB: loop body
LE: loop exit
PB: predicated region body
PF: predicated region fallthrough
CT: control target
= control target key end

     0   :  { %s2616_s9 = smov 0   ;;  %s2618_s10 = smov 0   ;;  %s3455_s0 = inlined_call_operand.vmem [shape: bf16[2,16,512], index: 0, kind: input, shape index: {}]   ;;  %s3456_s1 = inlined_call_operand.vmem [shape: bf16[512,1024], index: 1, kind: input, shape index: {}]   ;;  %s3457_s2 = inlined_call_operand.vmem [shape: f32[2,1,1024], index: 2, kind: output, shape index: {}]  }
   0x1   :  { %s2620_s11 = smov 0  }
   0x2 LB: > { %s24_s12 = sadd.s32 1, %s2594_s10  ;;  %p2273_p0 = scmp.ge.s32.totalorder %s2598_s11, 1  ;;  %s2598_s11 = sphi %s2620_s11, %s12_s11   ;;  %s2594_s10 = sphi %s2618_s10, %s3459_s10   ;;  %s2590_s9 = sphi %s2616_s9, %s3458_s9  }
   0x3   : > { %p26_p1 = scmp.ge.s32.totalorder %s24_s12, 2  ;;  %p132_p2 = scmp.lt.s32.totalorder %s2598_s11, 3 }
   0x5   : > { %s3461_s12 = smov (%p26_p1, %s24_s12), 0  ;;  %p133_p3 = pnand %p2273_p0, %p132_p2 }
   0x6   : > { %p159_p4 = scmp.lt.s32.totalorder (!%p133_p3), %s2590_s9, 1 }
   0x7   : > { %136 = sbr.rel (%p133_p3) target bundleno = 501 (0x1f5), region = 28 }
   0xc   : > { %v238_v0 = vld [vmem:[%s3456_s1 + $0x1c0] sm:$0xff]  ;;  %s3463_s9 = smov (!%p159_p4, %s2590_s9), 1 }
   0xd   : > { %v242_v1 = vld [vmem:[%s3456_s1 + $0x1e0] sm:$0xff]  ;;  %s2539_s13 = sshll.u32 %s3463_s9, 5 }
   0xe   : > { %v366_v2 = vld [vmem:[%s3456_s1 + $0x5c0] sm:$0xff]  ;;  %v2338_v3 = vcombine.high %v238_v0, %v242_v1  ;;  %v2337_v5 = vcombine.low %v238_v0, %v242_v1  ;;  %s2728_s24 = scalar_lea.vmem %s3455_s0, %s2539_s13 }
   0xf   : > { %v370_v4 = vld [vmem:[%s3456_s1 + $0x5e0] sm:$0xff]  ;;  %v2746_v59 = vld [vmem:[%s2728_s24 + $0xc] ss:$16 sps:$4 sm:$0xff]  }
  0x10   : > { %v230_v6 = vld [vmem:[%s3456_s1 + $0x180] sm:$0xff]  ;;  %v2466_v8 = vcombine.high %v366_v2, %v370_v4  ;;  %v2465_v9 = vcombine.low %v366_v2, %v370_v4  ;;  %1738 = vmatprep.subr.bf16.mxu0 %v2338_v3  ;;  %1813 = vmatprep.mubr.bf16.mxu1 %v2746_v59 }
  0x11   : > { %v234_v7 = vld [vmem:[%s3456_s1 + $0x1a0] sm:$0xff]  ;;  %1739 = vmatpush1.bf16.msra.mxu0 %v2337_v5 }
  0x12   : > { %v2330_v10 = vcombine.high %v230_v6, %v234_v7  ;;  %v358_v11 = vld [vmem:[%s3456_s1 + $0x580] sm:$0xff]  ;;  %1781 = vmatprep.subr.bf16.mxu1 %v2466_v8  ;;  %v2329_v18 = vcombine.low %v230_v6, %v234_v7 }
  0x13   : > { %v362_v12 = vld [vmem:[%s3456_s1 + $0x5a0] sm:$0xff]  ;;  %1782 = vmatpush1.bf16.msra.mxu1 %v2465_v9 }
  0x14   : > { %v222_v13 = vld [vmem:[%s3456_s1 + $0x140] sm:$0xff]  ;;  %v2458_v14 = vcombine.high %v358_v11, %v362_v12  ;;  %1740 = vmatprep.subr.bf16.mxu0 %v2330_v10  ;;  %v2457_v19 = vcombine.low %v358_v11, %v362_v12 }
  0x15   : > { %v226_v15 = vld [vmem:[%s3456_s1 + $0x160] sm:$0xff]  ;;  %1741 = vmatpush1.bf16.msra.mxu0 %v2329_v18 }
  0x16   : > { %v350_v16 = vld [vmem:[%s3456_s1 + $0x540] sm:$0xff]  ;;  %v2322_v20 = vcombine.high %v222_v13, %v226_v15  ;;  %1783 = vmatprep.subr.bf16.mxu1 %v2458_v14  ;;  %v2321_v26 = vcombine.low %v222_v13, %v226_v15 }
  0x17   : > { %v354_v17 = vld [vmem:[%s3456_s1 + $0x560] sm:$0xff]  ;;  %1784 = vmatpush1.bf16.msra.mxu1 %v2457_v19 }
  0x18   : > { %v2450_v21 = vcombine.high %v350_v16, %v354_v17  ;;  %v214_v22 = vld [vmem:[%s3456_s1 + $0x100] sm:$0xff]  ;;  %1742 = vmatprep.subr.bf16.mxu0 %v2322_v20  ;;  %v2449_v27 = vcombine.low %v350_v16, %v354_v17 }
  0x19   : > { %v218_v23 = vld [vmem:[%s3456_s1 + $0x120] sm:$0xff]  ;;  %1743 = vmatpush1.bf16.msra.mxu0 %v2321_v26 }
  0x1a   : > { %v342_v24 = vld [vmem:[%s3456_s1 + $0x500] sm:$0xff]  ;;  %v2314_v28 = vcombine.high %v214_v22, %v218_v23  ;;  %1785 = vmatprep.subr.bf16.mxu1 %v2450_v21  ;;  %v2313_v34 = vcombine.low %v214_v22, %v218_v23 }
  0x1b   : > { %v346_v25 = vld [vmem:[%s3456_s1 + $0x520] sm:$0xff]  ;;  %1786 = vmatpush1.bf16.msra.mxu1 %v2449_v27 }
  0x1c   : > { %v2442_v29 = vcombine.high %v342_v24, %v346_v25  ;;  %v206_v30 = vld [vmem:[%s3456_s1 + $0xc0] sm:$0xff]  ;;  %1744 = vmatprep.subr.bf16.mxu0 %v2314_v28  ;;  %v2441_v35 = vcombine.low %v342_v24, %v346_v25 }
  0x1d   : > { %v210_v31 = vld [vmem:[%s3456_s1 + $0xe0] sm:$0xff]  ;;  %1745 = vmatpush1.bf16.msra.mxu0 %v2313_v34 }
  0x1e   : > { %v334_v32 = vld [vmem:[%s3456_s1 + $0x4c0] sm:$0xff]  ;;  %v2306_v36 = vcombine.high %v206_v30, %v210_v31  ;;  %1787 = vmatprep.subr.bf16.mxu1 %v2442_v29  ;;  %v2305_v42 = vcombine.low %v206_v30, %v210_v31 }
  0x1f   : > { %v338_v33 = vld [vmem:[%s3456_s1 + $0x4e0] sm:$0xff]  ;;  %1788 = vmatpush1.bf16.msra.mxu1 %v2441_v35 }
  0x20   : > { %v2434_v37 = vcombine.high %v334_v32, %v338_v33  ;;  %v198_v38 = vld [vmem:[%s3456_s1 + $0x80] sm:$0xff]  ;;  %1746 = vmatprep.subr.bf16.mxu0 %v2306_v36  ;;  %v2433_v43 = vcombine.low %v334_v32, %v338_v33 }
  0x21   : > { %v202_v39 = vld [vmem:[%s3456_s1 + $0xa0] sm:$0xff]  ;;  %1747 = vmatpush1.bf16.msra.mxu0 %v2305_v42 }
  0x22   : > { %v326_v40 = vld [vmem:[%s3456_s1 + $0x480] sm:$0xff]  ;;  %v2298_v44 = vcombine.high %v198_v38, %v202_v39  ;;  %1789 = vmatprep.subr.bf16.mxu1 %v2434_v37  ;;  %v2297_v50 = vcombine.low %v198_v38, %v202_v39 }
  0x23   : > { %v330_v41 = vld [vmem:[%s3456_s1 + $0x4a0] sm:$0xff]  ;;  %1790 = vmatpush1.bf16.msra.mxu1 %v2433_v43 }
  0x24   : > { %v2426_v45 = vcombine.high %v326_v40, %v330_v41  ;;  %v190_v46 = vld [vmem:[%s3456_s1 + $0x40] sm:$0xff]  ;;  %1748 = vmatprep.subr.bf16.mxu0 %v2298_v44  ;;  %v2425_v52 = vcombine.low %v326_v40, %v330_v41 }
  0x25   : > { %v194_v47 = vld [vmem:[%s3456_s1 + $0x60] sm:$0xff]  ;;  %1749 = vmatpush1.bf16.msra.mxu0 %v2297_v50 }
  0x26   : > { %v318_v48 = vld [vmem:[%s3456_s1 + $0x440] sm:$0xff]  ;;  %v2290_v53 = vcombine.high %v190_v46, %v194_v47  ;;  %1791 = vmatprep.subr.bf16.mxu1 %v2426_v45  ;;  %v2289_v60 = vcombine.low %v190_v46, %v194_v47 }
  0x27   : > { %v322_v49 = vld [vmem:[%s3456_s1 + $0x460] sm:$0xff]  ;;  %1792 = vmatpush1.bf16.msra.mxu1 %v2425_v52 }
  0x28   : > { %v182_v51 = vld [vmem:[%s3456_s1] sm:$0xff]  ;;  %v2418_v55 = vcombine.high %v318_v48, %v322_v49  ;;  %1750 = vmatprep.subr.bf16.mxu0 %v2290_v53  ;;  %v2417_v61 = vcombine.low %v318_v48, %v322_v49 }
  0x29   : > { %v186_v54 = vld [vmem:[%s3456_s1 + $0x20] sm:$0xff]  ;;  %1751 = vmatpush1.bf16.msra.mxu0 %v2289_v60 }
  0x2a   : > { %v2737_v56 = vld [vmem:[%s2728_s24 + $0x4] ss:$16 sps:$4 sm:$0xff]   ;;  %v2282_v62 = vcombine.high %v182_v51, %v186_v54  ;;  %1793 = vmatprep.subr.bf16.mxu1 %v2418_v55  ;;  %v2281_v4 = vcombine.low %v182_v51, %v186_v54 }
  0x2b   : > { %v310_v57 = vld [vmem:[%s3456_s1 + $0x400] sm:$0xff]  ;;  %1770 = vmatprep.mubr.bf16.mxu0 %v2737_v56  ;;  %1794 = vmatpush1.bf16.msra.mxu1 %v2417_v61 }
  0x2c   : > { %v314_v58 = vld [vmem:[%s3456_s1 + $0x420] sm:$0xff]  ;;  %1752 = vmatprep.subr.bf16.mxu0 %v2282_v62 }
  0x2d   : > { %v2410_v63 = vcombine.high %v310_v57, %v314_v58  ;;  %v302_v0 = vld [vmem:[%s3456_s1 + $0x3c0] sm:$0xff]  ;;  %v2409_v5 = vcombine.low %v310_v57, %v314_v58  ;;  %1753 = vmatpush1.bf16.msra.mxu0 %v2281_v4  ;;  %v367_v4 = vld [vmem:[%s3456_s1 + $0x5c8] sm:$0xff] }
  0x2e   : > { %v306_v1 = vld [vmem:[%s3456_s1 + $0x3e0] sm:$0xff] }
  0x2f   : > { %v430_v2 = vld [vmem:[%s3456_s1 + $0x7c0] sm:$0xff]  ;;  %v2402_v6 = vcombine.high %v302_v0, %v306_v1  ;;  %1795 = vmatprep.subr.bf16.mxu1 %v2410_v63  ;;  %v2401_v12 = vcombine.low %v302_v0, %v306_v1 }
  0x30   : > { %v434_v3 = vld [vmem:[%s3456_s1 + $0x7e0] sm:$0xff]  ;;  %1796 = vmatpush1.bf16.msra.mxu1 %v2409_v5  ;;  %v371_v5 = vld [vmem:[%s3456_s1 + $0x5e8] sm:$0xff] }
  0x31   : > { %v2530_v7 = vcombine.high %v430_v2, %v434_v3  ;;  %v294_v8 = vld [vmem:[%s3456_s1 + $0x380] sm:$0xff]  ;;  %1754 = vmatprep.subr.bf16.mxu0 %v2402_v6  ;;  %v2529_v13 = vcombine.low %v430_v2, %v434_v3  ;;  %v239_v2 = vld [vmem:[%s3456_s1 + $0x1c8] sm:$0xff] }
  0x32   : > { %v298_v9 = vld [vmem:[%s3456_s1 + $0x3a0] sm:$0xff]  ;;  %1755 = vmatpush2.bf16.msra.mxu0 %v2401_v12  ;;  %v243_v3 = vld [vmem:[%s3456_s1 + $0x1e8] sm:$0xff] }
  0x33   : > { %v422_v10 = vld [vmem:[%s3456_s1 + $0x780] sm:$0xff]  ;;  %v2394_v14 = vcombine.high %v294_v8, %v298_v9  ;;  %1797 = vmatprep.subr.bf16.mxu1 %v2530_v7  ;;  %v2393_v20 = vcombine.low %v294_v8, %v298_v9  ;;  %v2340_v8 = vcombine.high %v239_v2, %v243_v3  ;;  %v2468_v9 = vcombine.high %v367_v4, %v371_v5 }
  0x34   : > { %v426_v11 = vld [vmem:[%s3456_s1 + $0x7a0] sm:$0xff]  ;;  %1798 = vmatpush2.bf16.msra.mxu1 %v2529_v13  ;;  %v359_v13 = vld [vmem:[%s3456_s1 + $0x588] sm:$0xff] }
  0x35   : > { %v2522_v15 = vcombine.high %v422_v10, %v426_v11  ;;  %v286_v16 = vld [vmem:[%s3456_s1 + $0x340] sm:$0xff]  ;;  %1756 = vmatprep.subr.bf16.mxu0 %v2394_v14  ;;  %v2521_v21 = vcombine.low %v422_v10, %v426_v11  ;;  %v231_v10 = vld [vmem:[%s3456_s1 + $0x188] sm:$0xff] }
  0x36   : > { %v290_v17 = vld [vmem:[%s3456_s1 + $0x360] sm:$0xff]  ;;  %1757 = vmatpush2.bf16.msra.mxu0 %v2393_v20  ;;  %v235_v11 = vld [vmem:[%s3456_s1 + $0x1a8] sm:$0xff] }
  0x37   : > { %v414_v18 = vld [vmem:[%s3456_s1 + $0x740] sm:$0xff]  ;;  %v2386_v22 = vcombine.high %v286_v16, %v290_v17  ;;  %1799 = vmatprep.subr.bf16.mxu1 %v2522_v15  ;;  %v2385_v28 = vcombine.low %v286_v16, %v290_v17  ;;  %v363_v14 = vld [vmem:[%s3456_s1 + $0x5a8] sm:$0xff]  ;;  %v2339_v16 = vcombine.low %v239_v2, %v243_v3  ;;  %v2467_v17 = vcombine.low %v367_v4, %v371_v5 }
  0x38   : > { %v418_v19 = vld [vmem:[%s3456_s1 + $0x760] sm:$0xff]  ;;  %1800 = vmatpush2.bf16.msra.mxu1 %v2521_v21  ;;  %v2874_v15 = vld [vmem:[%s2728_s24 + $0x8] ss:$16 sps:$4 sm:$0xff]  }
  0x39   : > { %v2514_v23 = vcombine.high %v414_v18, %v418_v19  ;;  %v278_v24 = vld [vmem:[%s3456_s1 + $0x300] sm:$0xff]  ;;  %1758 = vmatprep.subr.bf16.mxu0 %v2386_v22  ;;  %v2513_v29 = vcombine.low %v414_v18, %v418_v19  ;;  %v2332_v18 = vcombine.high %v231_v10, %v235_v11  ;;  %v2460_v19 = vcombine.high %v359_v13, %v363_v14  ;;  %v223_v20 = vld [vmem:[%s3456_s1 + $0x148] sm:$0xff] }
  0x3a   : > { %v282_v25 = vld [vmem:[%s3456_s1 + $0x320] sm:$0xff]  ;;  %1759 = vmatpush2.bf16.msra.mxu0 %v2385_v28  ;;  %v227_v21 = vld [vmem:[%s3456_s1 + $0x168] sm:$0xff] }
  0x3b   : > { %v406_v26 = vld [vmem:[%s3456_s1 + $0x700] sm:$0xff]  ;;  %v2378_v30 = vcombine.high %v278_v24, %v282_v25  ;;  %1801 = vmatprep.subr.bf16.mxu1 %v2514_v23  ;;  %v2377_v36 = vcombine.low %v278_v24, %v282_v25  ;;  %v351_v22 = vld [vmem:[%s3456_s1 + $0x548] sm:$0xff]  ;;  %v2331_v24 = vcombine.low %v231_v10, %v235_v11  ;;  %v2459_v25 = vcombine.low %v359_v13, %v363_v14 }
  0x3c   : > { %v410_v27 = vld [vmem:[%s3456_s1 + $0x720] sm:$0xff]  ;;  %1802 = vmatpush2.bf16.msra.mxu1 %v2513_v29  ;;  %v355_v23 = vld [vmem:[%s3456_s1 + $0x568] sm:$0xff] }
  0x3d   : > { %v2506_v31 = vcombine.high %v406_v26, %v410_v27  ;;  %v270_v32 = vld [vmem:[%s3456_s1 + $0x2c0] sm:$0xff]  ;;  %1760 = vmatprep.subr.bf16.mxu0 %v2378_v30  ;;  %v2505_v37 = vcombine.low %v406_v26, %v410_v27  ;;  %v2324_v26 = vcombine.high %v223_v20, %v227_v21  ;;  %v2452_v27 = vcombine.high %v351_v22, %v355_v23  ;;  %v215_v28 = vld [vmem:[%s3456_s1 + $0x108] sm:$0xff] }
  0x3e   : > { %v274_v33 = vld [vmem:[%s3456_s1 + $0x2e0] sm:$0xff]  ;;  %1761 = vmatpush2.bf16.msra.mxu0 %v2377_v36  ;;  %v219_v29 = vld [vmem:[%s3456_s1 + $0x128] sm:$0xff] }
  0x3f   : > { %v398_v34 = vld [vmem:[%s3456_s1 + $0x6c0] sm:$0xff]  ;;  %v2370_v38 = vcombine.high %v270_v32, %v274_v33  ;;  %1803 = vmatprep.subr.bf16.mxu1 %v2506_v31  ;;  %v2369_v44 = vcombine.low %v270_v32, %v274_v33  ;;  %v343_v30 = vld [vmem:[%s3456_s1 + $0x508] sm:$0xff]  ;;  %v2323_v32 = vcombine.low %v223_v20, %v227_v21  ;;  %v2451_v33 = vcombine.low %v351_v22, %v355_v23 }
  0x40   : > { %v402_v35 = vld [vmem:[%s3456_s1 + $0x6e0] sm:$0xff]  ;;  %1804 = vmatpush2.bf16.msra.mxu1 %v2505_v37  ;;  %v347_v31 = vld [vmem:[%s3456_s1 + $0x528] sm:$0xff] }
  0x41   : > { %v2498_v39 = vcombine.high %v398_v34, %v402_v35  ;;  %v262_v40 = vld [vmem:[%s3456_s1 + $0x280] sm:$0xff]  ;;  %1762 = vmatprep.subr.bf16.mxu0 %v2370_v38  ;;  %v2497_v45 = vcombine.low %v398_v34, %v402_v35  ;;  %v2316_v34 = vcombine.high %v215_v28, %v219_v29  ;;  %v2444_v35 = vcombine.high %v343_v30, %v347_v31  ;;  %v207_v36 = vld [vmem:[%s3456_s1 + $0xc8] sm:$0xff] }
  0x42   : > { %v266_v41 = vld [vmem:[%s3456_s1 + $0x2a0] sm:$0xff]  ;;  %1763 = vmatpush2.bf16.msra.mxu0 %v2369_v44  ;;  %v211_v37 = vld [vmem:[%s3456_s1 + $0xe8] sm:$0xff] }
  0x43   : > { %v390_v42 = vld [vmem:[%s3456_s1 + $0x680] sm:$0xff]  ;;  %v2362_v46 = vcombine.high %v262_v40, %v266_v41  ;;  %1805 = vmatprep.subr.bf16.mxu1 %v2498_v39  ;;  %v2361_v52 = vcombine.low %v262_v40, %v266_v41  ;;  %v335_v38 = vld [vmem:[%s3456_s1 + $0x4c8] sm:$0xff]  ;;  %v2315_v40 = vcombine.low %v215_v28, %v219_v29  ;;  %v2443_v41 = vcombine.low %v343_v30, %v347_v31 }
  0x44   : > { %v394_v43 = vld [vmem:[%s3456_s1 + $0x6a0] sm:$0xff]  ;;  %1806 = vmatpush2.bf16.msra.mxu1 %v2497_v45  ;;  %v339_v39 = vld [vmem:[%s3456_s1 + $0x4e8] sm:$0xff] }
  0x45   : > { %v2490_v47 = vcombine.high %v390_v42, %v394_v43  ;;  %v254_v48 = vld [vmem:[%s3456_s1 + $0x240] sm:$0xff]  ;;  %1764 = vmatprep.subr.bf16.mxu0 %v2362_v46  ;;  %v2489_v53 = vcombine.low %v390_v42, %v394_v43  ;;  %v2308_v42 = vcombine.high %v207_v36, %v211_v37  ;;  %v2436_v43 = vcombine.high %v335_v38, %v339_v39  ;;  %v199_v44 = vld [vmem:[%s3456_s1 + $0x88] sm:$0xff] }
  0x46   : > { %v258_v49 = vld [vmem:[%s3456_s1 + $0x260] sm:$0xff]  ;;  %1765 = vmatpush2.bf16.msra.mxu0 %v2361_v52  ;;  %v203_v45 = vld [vmem:[%s3456_s1 + $0xa8] sm:$0xff] }
  0x47   : > { %v382_v50 = vld [vmem:[%s3456_s1 + $0x640] sm:$0xff]  ;;  %v2354_v54 = vcombine.high %v254_v48, %v258_v49  ;;  %1807 = vmatprep.subr.bf16.mxu1 %v2490_v47  ;;  %v2353_v62 = vcombine.low %v254_v48, %v258_v49  ;;  %v327_v46 = vld [vmem:[%s3456_s1 + $0x488] sm:$0xff]  ;;  %v2307_v48 = vcombine.low %v207_v36, %v211_v37  ;;  %v2435_v49 = vcombine.low %v335_v38, %v339_v39 }
  0x48   : > { %v386_v51 = vld [vmem:[%s3456_s1 + $0x660] sm:$0xff]  ;;  %1808 = vmatpush2.bf16.msra.mxu1 %v2489_v53  ;;  %v331_v47 = vld [vmem:[%s3456_s1 + $0x4a8] sm:$0xff] }
  0x49   : > { %v2482_v55 = vcombine.high %v382_v50, %v386_v51  ;;  %v246_v57 = vld [vmem:[%s3456_s1 + $0x200] sm:$0xff]  ;;  %1766 = vmatprep.subr.bf16.mxu0 %v2354_v54  ;;  %v2481_v63 = vcombine.low %v382_v50, %v386_v51  ;;  %v2300_v50 = vcombine.high %v199_v44, %v203_v45  ;;  %v2428_v51 = vcombine.high %v327_v46, %v331_v47  ;;  %v191_v52 = vld [vmem:[%s3456_s1 + $0x48] sm:$0xff] }
  0x4a   : > { %v250_v58 = vld [vmem:[%s3456_s1 + $0x220] sm:$0xff]  ;;  %1767 = vmatpush2.bf16.msra.mxu0 %v2353_v62  ;;  %v195_v53 = vld [vmem:[%s3456_s1 + $0x68] sm:$0xff] }
  0x4b   : > { %v374_v60 = vld [vmem:[%s3456_s1 + $0x600] sm:$0xff]  ;;  %v2346_v0 = vcombine.high %v246_v57, %v250_v58  ;;  %1809 = vmatprep.subr.bf16.mxu1 %v2482_v55  ;;  %v2345_v6 = vcombine.low %v246_v57, %v250_v58  ;;  %v319_v54 = vld [vmem:[%s3456_s1 + $0x448] sm:$0xff]  ;;  %v2299_v57 = vcombine.low %v199_v44, %v203_v45  ;;  %v2427_v58 = vcombine.low %v327_v46, %v331_v47 }
  0x4c   : > { %v378_v61 = vld [vmem:[%s3456_s1 + $0x620] sm:$0xff]  ;;  %1810 = vmatpush2.bf16.msra.mxu1 %v2481_v63  ;;  %v323_v55 = vld [vmem:[%s3456_s1 + $0x468] sm:$0xff]  ;;  %v2291_v2 = vcombine.low %v191_v52, %v195_v53 }
  0x4d   : > { %v2474_v1 = vcombine.high %v374_v60, %v378_v61  ;;  %1768 = vmatprep.subr.bf16.mxu0 %v2346_v0  ;;  %v2473_v7 = vcombine.low %v374_v60, %v378_v61  ;;  %v2865_v12 = vld [vmem:[%s2728_s24] ss:$16 sps:$4 sm:$0xff]   ;;  %v2292_v60 = vcombine.high %v191_v52, %v195_v53  ;;  %v2420_v61 = vcombine.high %v319_v54, %v323_v55  ;;  %v183_v62 = vld [vmem:[%s3456_s1 + $0x8] sm:$0xff] }
  0x4e   : > { %1769 = vmatpush2.bf16.msra.mxu0 %v2345_v6  ;;  %v187_v63 = vld [vmem:[%s3456_s1 + $0x28] sm:$0xff]  ;;  %v2419_v3 = vcombine.low %v319_v54, %v323_v55 }
  0x4f   : > { %1811 = vmatprep.subr.bf16.mxu1 %v2474_v1  ;;  %1824 = vmatprep.subr.bf16.mxu0 %v2340_v8  ;;  %v311_v0 = vld [vmem:[%s3456_s1 + $0x408] sm:$0xff]  ;;  %v2284_v4 = vcombine.high %v183_v62, %v187_v63  ;;  %v2283_v10 = vcombine.low %v183_v62, %v187_v63 }
  0x50   : > { %1812 = vmatpush2.bf16.msra.mxu1 %v2473_v7  ;;  %v315_v1 = vld [vmem:[%s3456_s1 + $0x428] sm:$0xff] }
  0x51   : > { %1867 = vmatprep.subr.bf16.mxu1 %v2468_v9  ;;  %1771 = vmatmul.mubr.bf16.vlgmr.msra.gmra.mxu0 %v2865_v12  ;;  %v2412_v5 = vcombine.high %v311_v0, %v315_v1  ;;  %v303_v6 = vld [vmem:[%s3456_s1 + $0x3c8] sm:$0xff]  ;;  %v2411_v11 = vcombine.low %v311_v0, %v315_v1 }
  0x52   : > { %1825 = vmatpush1.bf16.msra.mxu0 %v2339_v16  ;;  %1856 = vmatprep.mubr.bf16.mxu0 %v2737_v56  ;;  %v307_v7 = vld [vmem:[%s3456_s1 + $0x3e8] sm:$0xff] }
  0x53   : > { %1814 = vmatmul.mubr.bf16.vlgmr.msra.gmra.mxu1 %v2874_v15  ;;  %1826 = vmatprep.subr.bf16.mxu0 %v2332_v18  ;;  %v431_v8 = vld [vmem:[%s3456_s1 + $0x7c8] sm:$0xff]  ;;  %v2404_v13 = vcombine.high %v303_v6, %v307_v7  ;;  %v2403_v20 = vcombine.low %v303_v6, %v307_v7 }
  0x54   : > { %1868 = vmatpush1.bf16.msra.mxu1 %v2467_v17  ;;  %1899 = vmatprep.mubr.bf16.mxu1 %v2746_v59  ;;  %v435_v9 = vld [vmem:[%s3456_s1 + $0x7e8] sm:$0xff] }
  0x55   : > { %1869 = vmatprep.subr.bf16.mxu1 %v2460_v19  ;;  %v2532_v14 = vcombine.high %v431_v8, %v435_v9  ;;  %v295_v16 = vld [vmem:[%s3456_s1 + $0x388] sm:$0xff]  ;;  %v2531_v21 = vcombine.low %v431_v8, %v435_v9 }
  0x56   : > { %1827 = vmatpush1.bf16.msra.mxu0 %v2331_v24  ;;  %v299_v17 = vld [vmem:[%s3456_s1 + $0x3a8] sm:$0xff] }
  0x57   : > { %1828 = vmatprep.subr.bf16.mxu0 %v2324_v26  ;;  %v423_v18 = vld [vmem:[%s3456_s1 + $0x788] sm:$0xff]  ;;  %v2396_v22 = vcombine.high %v295_v16, %v299_v17  ;;  %v2395_v28 = vcombine.low %v295_v16, %v299_v17 }
  0x58   : > { %1870 = vmatpush1.bf16.msra.mxu1 %v2459_v25  ;;  %v427_v19 = vld [vmem:[%s3456_s1 + $0x7a8] sm:$0xff] }
  0x59   : > { %1871 = vmatprep.subr.bf16.mxu1 %v2452_v27  ;;  %v2524_v23 = vcombine.high %v423_v18, %v427_v19  ;;  %v287_v24 = vld [vmem:[%s3456_s1 + $0x348] sm:$0xff]  ;;  %v2523_v29 = vcombine.low %v423_v18, %v427_v19 }
  0x5a   : > { %1829 = vmatpush1.bf16.msra.mxu0 %v2323_v32  ;;  %v291_v25 = vld [vmem:[%s3456_s1 + $0x368] sm:$0xff] }
  0x5b   : > { %1830 = vmatprep.subr.bf16.mxu0 %v2316_v34  ;;  %v415_v26 = vld [vmem:[%s3456_s1 + $0x748] sm:$0xff]  ;;  %v2388_v30 = vcombine.high %v287_v24, %v291_v25  ;;  %v2387_v36 = vcombine.low %v287_v24, %v291_v25 }
  0x5c   : > { %1872 = vmatpush1.bf16.msra.mxu1 %v2451_v33  ;;  %v419_v27 = vld [vmem:[%s3456_s1 + $0x768] sm:$0xff] }
  0x5d   : > { %1873 = vmatprep.subr.bf16.mxu1 %v2444_v35  ;;  %v2516_v31 = vcombine.high %v415_v26, %v419_v27  ;;  %v279_v32 = vld [vmem:[%s3456_s1 + $0x308] sm:$0xff]  ;;  %v2515_v37 = vcombine.low %v415_v26, %v419_v27 }
  0x5e   : > { %1831 = vmatpush1.bf16.msra.mxu0 %v2315_v40  ;;  %v283_v33 = vld [vmem:[%s3456_s1 + $0x328] sm:$0xff] }
  0x5f   : > { %1832 = vmatprep.subr.bf16.mxu0 %v2308_v42  ;;  %v407_v34 = vld [vmem:[%s3456_s1 + $0x708] sm:$0xff]  ;;  %v2380_v38 = vcombine.high %v279_v32, %v283_v33  ;;  %v2379_v44 = vcombine.low %v279_v32, %v283_v33 }
  0x60   : > { %1874 = vmatpush1.bf16.msra.mxu1 %v2443_v41  ;;  %v411_v35 = vld [vmem:[%s3456_s1 + $0x728] sm:$0xff] }
  0x61   : > { %1875 = vmatprep.subr.bf16.mxu1 %v2436_v43  ;;  %v2508_v39 = vcombine.high %v407_v34, %v411_v35  ;;  %v271_v40 = vld [vmem:[%s3456_s1 + $0x2c8] sm:$0xff]  ;;  %v2507_v45 = vcombine.low %v407_v34, %v411_v35 }
  0x62   : > { %1833 = vmatpush1.bf16.msra.mxu0 %v2307_v48  ;;  %v275_v41 = vld [vmem:[%s3456_s1 + $0x2e8] sm:$0xff] }
  0x63   : > { %1834 = vmatprep.subr.bf16.mxu0 %v2300_v50  ;;  %v399_v42 = vld [vmem:[%s3456_s1 + $0x6c8] sm:$0xff]  ;;  %v2372_v46 = vcombine.high %v271_v40, %v275_v41  ;;  %v2371_v52 = vcombine.low %v271_v40, %v275_v41 }
  0x64   : > { %1876 = vmatpush1.bf16.msra.mxu1 %v2435_v49  ;;  %v403_v43 = vld [vmem:[%s3456_s1 + $0x6e8] sm:$0xff] }
  0x65   : > { %1877 = vmatprep.subr.bf16.mxu1 %v2428_v51  ;;  %v2500_v47 = vcombine.high %v399_v42, %v403_v43  ;;  %v263_v48 = vld [vmem:[%s3456_s1 + $0x288] sm:$0xff]  ;;  %v2499_v53 = vcombine.low %v399_v42, %v403_v43 }
  0x66   : > { %1835 = vmatpush1.bf16.msra.mxu0 %v2299_v57  ;;  %v267_v49 = vld [vmem:[%s3456_s1 + $0x2a8] sm:$0xff] }
  0x67   : > { %1836 = vmatprep.subr.bf16.mxu0 %v2292_v60  ;;  %v391_v50 = vld [vmem:[%s3456_s1 + $0x688] sm:$0xff]  ;;  %v2364_v54 = vcombine.high %v263_v48, %v267_v49  ;;  %v2363_v62 = vcombine.low %v263_v48, %v267_v49 }
  0x68   : > { %1878 = vmatpush1.bf16.msra.mxu1 %v2427_v58  ;;  %v395_v51 = vld [vmem:[%s3456_s1 + $0x6a8] sm:$0xff] }
  0x69   : > { %1879 = vmatprep.subr.bf16.mxu1 %v2420_v61  ;;  %v2492_v55 = vcombine.high %v391_v50, %v395_v51  ;;  %v255_v57 = vld [vmem:[%s3456_s1 + $0x248] sm:$0xff]  ;;  %v2491_v63 = vcombine.low %v391_v50, %v395_v51  ;;  %v200_v50 = vld [vmem:[%s3456_s1 + $0x90] sm:$0xff] }
  0x6a   : > { %1837 = vmatpush1.bf16.msra.mxu0 %v2291_v2  ;;  %v259_v58 = vld [vmem:[%s3456_s1 + $0x268] sm:$0xff]  ;;  %v204_v51 = vld [vmem:[%s3456_s1 + $0xb0] sm:$0xff] }
  0x6b   : > { %1838 = vmatprep.subr.bf16.mxu0 %v2284_v4  ;;  %v383_v60 = vld [vmem:[%s3456_s1 + $0x648] sm:$0xff]  ;;  %v2356_v0 = vcombine.high %v255_v57, %v259_v58  ;;  %v2355_v6 = vcombine.low %v255_v57, %v259_v58  ;;  %v2302_v57 = vcombine.high %v200_v50, %v204_v51 }
  0x6c   : > { %1880 = vmatpush1.bf16.msra.mxu1 %v2419_v3  ;;  %v387_v61 = vld [vmem:[%s3456_s1 + $0x668] sm:$0xff] }
  0x6d   : > { %1881 = vmatprep.subr.bf16.mxu1 %v2412_v5  ;;  %v2484_v1 = vcombine.high %v383_v60, %v387_v61  ;;  %v247_v2 = vld [vmem:[%s3456_s1 + $0x208] sm:$0xff]  ;;  %v2483_v7 = vcombine.low %v383_v60, %v387_v61  ;;  %v192_v60 = vld [vmem:[%s3456_s1 + $0x50] sm:$0xff] }
  0x6e   : > { %1839 = vmatpush1.bf16.msra.mxu0 %v2283_v10  ;;  %v251_v3 = vld [vmem:[%s3456_s1 + $0x228] sm:$0xff]  ;;  %v240_v10 = vld [vmem:[%s3456_s1 + $0x1d0] sm:$0xff] }
  0x6f   : > { %1840 = vmatprep.subr.bf16.mxu0 %v2404_v13  ;;  %v375_v4 = vld [vmem:[%s3456_s1 + $0x608] sm:$0xff]  ;;  %v2348_v8 = vcombine.high %v247_v2, %v251_v3  ;;  %v368_v13 = vld [vmem:[%s3456_s1 + $0x5d0] sm:$0xff]  ;;  %v2347_v16 = vcombine.low %v247_v2, %v251_v3 }
  0x70   : > { %1882 = vmatpush1.bf16.msra.mxu1 %v2411_v11  ;;  %v379_v5 = vld [vmem:[%s3456_s1 + $0x628] sm:$0xff]  ;;  %v244_v11 = vld [vmem:[%s3456_s1 + $0x1f0] sm:$0xff] }
  0x71   : > { %1883 = vmatprep.subr.bf16.mxu1 %v2532_v14  ;;  %v2476_v9 = vcombine.high %v375_v4, %v379_v5  ;;  %v372_v14 = vld [vmem:[%s3456_s1 + $0x5f0] sm:$0xff]  ;;  %v2475_v17 = vcombine.low %v375_v4, %v379_v5  ;;  %v2342_v18 = vcombine.high %v240_v10, %v244_v11  ;;  %v2341_v24 = vcombine.low %v240_v10, %v244_v11 }
  0x72   : > { %1841 = vmatpush2.bf16.msra.mxu0 %v2403_v20  ;;  %v2470_v19 = vcombine.high %v368_v13, %v372_v14  ;;  %v232_v20 = vld [vmem:[%s3456_s1 + $0x190] sm:$0xff]  ;;  %v2469_v25 = vcombine.low %v368_v13, %v372_v14 }
  0x73   : > { %1842 = vmatprep.subr.bf16.mxu0 %v2396_v22  ;;  %v360_v22 = vld [vmem:[%s3456_s1 + $0x590] sm:$0xff] }
  0x74   : > { %1884 = vmatpush2.bf16.msra.mxu1 %v2531_v21  ;;  %v236_v21 = vld [vmem:[%s3456_s1 + $0x1b0] sm:$0xff] }
  0x75   : > { %1885 = vmatprep.subr.bf16.mxu1 %v2524_v23  ;;  %v364_v23 = vld [vmem:[%s3456_s1 + $0x5b0] sm:$0xff]  ;;  %v2334_v26 = vcombine.high %v232_v20, %v236_v21  ;;  %v2333_v32 = vcombine.low %v232_v20, %v236_v21 }
  0x76   : > { %1843 = vmatpush2.bf16.msra.mxu0 %v2395_v28  ;;  %v2462_v27 = vcombine.high %v360_v22, %v364_v23  ;;  %v224_v28 = vld [vmem:[%s3456_s1 + $0x150] sm:$0xff]  ;;  %v2461_v33 = vcombine.low %v360_v22, %v364_v23 }
  0x77   : > { %1844 = vmatprep.subr.bf16.mxu0 %v2388_v30  ;;  %v352_v30 = vld [vmem:[%s3456_s1 + $0x550] sm:$0xff] }
  0x78   : > { %1886 = vmatpush2.bf16.msra.mxu1 %v2523_v29  ;;  %v228_v29 = vld [vmem:[%s3456_s1 + $0x170] sm:$0xff] }
  0x79   : > { %1887 = vmatprep.subr.bf16.mxu1 %v2516_v31  ;;  %v356_v31 = vld [vmem:[%s3456_s1 + $0x570] sm:$0xff]  ;;  %v2326_v34 = vcombine.high %v224_v28, %v228_v29  ;;  %v2325_v40 = vcombine.low %v224_v28, %v228_v29 }
  0x7a   : > { %1845 = vmatpush2.bf16.msra.mxu0 %v2387_v36  ;;  %v2454_v35 = vcombine.high %v352_v30, %v356_v31  ;;  %v216_v36 = vld [vmem:[%s3456_s1 + $0x110] sm:$0xff]  ;;  %v2453_v41 = vcombine.low %v352_v30, %v356_v31 }
  0x7b   : > { %1846 = vmatprep.subr.bf16.mxu0 %v2380_v38  ;;  %v344_v38 = vld [vmem:[%s3456_s1 + $0x510] sm:$0xff] }
  0x7c   : > { %1888 = vmatpush2.bf16.msra.mxu1 %v2515_v37  ;;  %v220_v37 = vld [vmem:[%s3456_s1 + $0x130] sm:$0xff] }
  0x7d   : > { %1889 = vmatprep.subr.bf16.mxu1 %v2508_v39  ;;  %v348_v39 = vld [vmem:[%s3456_s1 + $0x530] sm:$0xff]  ;;  %v2318_v42 = vcombine.high %v216_v36, %v220_v37 }
  0x7e   : > { %1847 = vmatpush2.bf16.msra.mxu0 %v2379_v44  ;;  %v2446_v43 = vcombine.high %v344_v38, %v348_v39  ;;  %v212_v44 = vld [vmem:[%s3456_s1 + $0xf0] sm:$0xff] }
  0x7f   : > { %1848 = vmatprep.subr.bf16.mxu0 %v2372_v46  ;;  %v2317_v46 = vcombine.low %v216_v36, %v220_v37  ;;  %v196_v61 = vld [vmem:[%s3456_s1 + $0x70] sm:$0xff] }
  0x80   : > { %1890 = vmatpush2.bf16.msra.mxu1 %v2507_v45  ;;  %v340_v45 = vld [vmem:[%s3456_s1 + $0x4f0] sm:$0xff]  ;;  %v2294_v2 = vcombine.high %v192_v60, %v196_v61 }
  0x81   : > { %1891 = vmatprep.subr.bf16.mxu1 %v2500_v47  ;;  %v2445_v47 = vcombine.low %v344_v38, %v348_v39  ;;  %v184_v4 = vld [vmem:[%s3456_s1 + $0x10] sm:$0xff] }
  0x82   : > { %1849 = vmatpush2.bf16.msra.mxu0 %v2371_v52  ;;  %v328_v52 = vld [vmem:[%s3456_s1 + $0x490] sm:$0xff] }
  0x83   : > { %1850 = vmatprep.subr.bf16.mxu0 %v2364_v54  ;;  %v188_v5 = vld [vmem:[%s3456_s1 + $0x30] sm:$0xff] }
  0x84   : > { %1892 = vmatpush2.bf16.msra.mxu1 %v2499_v53  ;;  %v332_v53 = vld [vmem:[%s3456_s1 + $0x4b0] sm:$0xff]  ;;  %v2286_v10 = vcombine.high %v184_v4, %v188_v5 }
  0x85   : > { %1893 = vmatprep.subr.bf16.mxu1 %v2492_v55  ;;  %v2430_v58 = vcombine.high %v328_v52, %v332_v53  ;;  %v304_v13 = vld [vmem:[%s3456_s1 + $0x3d0] sm:$0xff] }
  0x86   : > { %1851 = vmatpush2.bf16.msra.mxu0 %v2363_v62  ;;  %v320_v62 = vld [vmem:[%s3456_s1 + $0x450] sm:$0xff] }
  0x87   : > { %1852 = vmatprep.subr.bf16.mxu0 %v2356_v0  ;;  %v2301_v0 = vcombine.low %v200_v50, %v204_v51  ;;  %v308_v14 = vld [vmem:[%s3456_s1 + $0x3f0] sm:$0xff] }
  0x88   : > { %1894 = vmatpush2.bf16.msra.mxu1 %v2491_v63  ;;  %v324_v63 = vld [vmem:[%s3456_s1 + $0x470] sm:$0xff]  ;;  %v2406_v20 = vcombine.high %v304_v13, %v308_v14 }
  0x89   : > { %1895 = vmatprep.subr.bf16.mxu1 %v2484_v1  ;;  %v2429_v1 = vcombine.low %v328_v52, %v332_v53  ;;  %v2422_v3 = vcombine.high %v320_v62, %v324_v63  ;;  %v296_v22 = vld [vmem:[%s3456_s1 + $0x390] sm:$0xff] }
  0x8a   : > { %1853 = vmatpush2.bf16.msra.mxu0 %v2355_v6  ;;  %v312_v6 = vld [vmem:[%s3456_s1 + $0x410] sm:$0xff] }
  0x8b   : > { %1854 = vmatprep.subr.bf16.mxu0 %v2348_v8  ;;  %v2293_v8 = vcombine.low %v192_v60, %v196_v61  ;;  %v300_v23 = vld [vmem:[%s3456_s1 + $0x3b0] sm:$0xff] }
  0x8c   : > { %1896 = vmatpush2.bf16.msra.mxu1 %v2483_v7  ;;  %v316_v7 = vld [vmem:[%s3456_s1 + $0x430] sm:$0xff]  ;;  %v2398_v28 = vcombine.high %v296_v22, %v300_v23 }
  0x8d   : > { %1897 = vmatprep.subr.bf16.mxu1 %v2476_v9  ;;  %v2421_v9 = vcombine.low %v320_v62, %v324_v63  ;;  %v2414_v11 = vcombine.high %v312_v6, %v316_v7  ;;  %v288_v30 = vld [vmem:[%s3456_s1 + $0x350] sm:$0xff] }
  0x8e   : > { %1855 = vmatpush2.bf16.msra.mxu0 %v2347_v16  ;;  %v432_v16 = vld [vmem:[%s3456_s1 + $0x7d0] sm:$0xff] }
  0x8f   : > { %1910 = vmatprep.subr.bf16.mxu0 %v2342_v18  ;;  %v2285_v18 = vcombine.low %v184_v4, %v188_v5  ;;  %v292_v31 = vld [vmem:[%s3456_s1 + $0x370] sm:$0xff] }
  0x90   : > { %1898 = vmatpush2.bf16.msra.mxu1 %v2475_v17  ;;  %v436_v17 = vld [vmem:[%s3456_s1 + $0x7f0] sm:$0xff]  ;;  %v2390_v36 = vcombine.high %v288_v30, %v292_v31 }
  0x91   : > { %1953 = vmatprep.subr.bf16.mxu1 %v2470_v19  ;;  %1857 = vmatmul.mubr.bf16.vlgmr.msra.gmra.mxu0 %v2865_v12  ;;  %v2413_v19 = vcombine.low %v312_v6, %v316_v7  ;;  %v2534_v21 = vcombine.high %v432_v16, %v436_v17  ;;  %v280_v38 = vld [vmem:[%s3456_s1 + $0x310] sm:$0xff] }
  0x92   : > { %1911 = vmatpush1.bf16.msra.mxu0 %v2341_v24  ;;  %1942 = vmatprep.mubr.bf16.mxu0 %v2737_v56  ;;  %v208_v56 = vld [vmem:[%s3456_s1 + $0xd0] sm:$0xff] }
  0x93   : > { %1900 = vmatmul.mubr.bf16.vlgmr.msra.gmra.mxu1 %v2874_v15  ;;  %1912 = vmatprep.subr.bf16.mxu0 %v2334_v26  ;;  %v2310_v48 = vcombine.high %v208_v56, %v212_v44  ;;  %v2309_v54 = vcombine.low %v208_v56, %v212_v44  ;;  %v424_v24 = vld [vmem:[%s3456_s1 + $0x790] sm:$0xff]  ;;  %v2405_v26 = vcombine.low %v304_v13, %v308_v14 }
  0x94   : > { %1954 = vmatpush1.bf16.msra.mxu1 %v2469_v25  ;;  %1985 = vmatprep.mubr.bf16.mxu1 %v2746_v59  ;;  %v336_v59 = vld [vmem:[%s3456_s1 + $0x4d0] sm:$0xff] }
  0x95   : > { %1955 = vmatprep.subr.bf16.mxu1 %v2462_v27  ;;  %v2438_v49 = vcombine.high %v336_v59, %v340_v45  ;;  %v2437_v55 = vcombine.low %v336_v59, %v340_v45  ;;  %v428_v25 = vld [vmem:[%s3456_s1 + $0x7b0] sm:$0xff]  ;;  %v2533_v27 = vcombine.low %v432_v16, %v436_v17  ;;  %v241_v16 = vld [vmem:[%s3456_s1 + $0x1d8] sm:$0xff] }
  0x96   : > { %1913 = vmatpush1.bf16.msra.mxu0 %v2333_v32  ;;  %v2526_v29 = vcombine.high %v424_v24, %v428_v25  ;;  %v416_v32 = vld [vmem:[%s3456_s1 + $0x750] sm:$0xff]  ;;  %v245_v17 = vld [vmem:[%s3456_s1 + $0x1f8] sm:$0xff] }
  0x97   : > { %1914 = vmatprep.subr.bf16.mxu0 %v2326_v34  ;;  %v2397_v34 = vcombine.low %v296_v22, %v300_v23  ;;  %v284_v39 = vld [vmem:[%s3456_s1 + $0x330] sm:$0xff]  ;;  %v2344_v22 = vcombine.high %v241_v16, %v245_v17 }
  0x98   : > { %1956 = vmatpush1.bf16.msra.mxu1 %v2461_v33  ;;  %v420_v33 = vld [vmem:[%s3456_s1 + $0x770] sm:$0xff]  ;;  %v2382_v56 = vcombine.high %v280_v38, %v284_v39 }
  0x99   : > { %1957 = vmatprep.subr.bf16.mxu1 %v2454_v35  ;;  %v2525_v35 = vcombine.low %v424_v24, %v428_v25  ;;  %v2518_v37 = vcombine.high %v416_v32, %v420_v33  ;;  %v272_v59 = vld [vmem:[%s3456_s1 + $0x2d0] sm:$0xff]  ;;  %v233_v24 = vld [vmem:[%s3456_s1 + $0x198] sm:$0xff] }
  0x9a   : > { %1915 = vmatpush1.bf16.msra.mxu0 %v2325_v40  ;;  %v408_v40 = vld [vmem:[%s3456_s1 + $0x710] sm:$0xff]  ;;  %v237_v25 = vld [vmem:[%s3456_s1 + $0x1b8] sm:$0xff] }
  0x9b   : > { %1916 = vmatprep.subr.bf16.mxu0 %v2318_v42  ;;  %v2389_v42 = vcombine.low %v288_v30, %v292_v31  ;;  %v276_v45 = vld [vmem:[%s3456_s1 + $0x2f0] sm:$0xff]  ;;  %v2336_v30 = vcombine.high %v233_v24, %v237_v25 }
  0x9c   : > { %1958 = vmatpush1.bf16.msra.mxu1 %v2453_v41  ;;  %v412_v41 = vld [vmem:[%s3456_s1 + $0x730] sm:$0xff]  ;;  %v2374_v50 = vcombine.high %v272_v59, %v276_v45 }
  0x9d   : > { %1959 = vmatprep.subr.bf16.mxu1 %v2446_v43  ;;  %v2517_v43 = vcombine.low %v416_v32, %v420_v33  ;;  %v2510_v44 = vcombine.high %v408_v40, %v412_v41  ;;  %v264_v52 = vld [vmem:[%s3456_s1 + $0x290] sm:$0xff]  ;;  %v225_v32 = vld [vmem:[%s3456_s1 + $0x158] sm:$0xff] }
  0x9e   : > { %1917 = vmatpush1.bf16.msra.mxu0 %v2317_v46  ;;  %v400_v46 = vld [vmem:[%s3456_s1 + $0x6d0] sm:$0xff]  ;;  %v229_v33 = vld [vmem:[%s3456_s1 + $0x178] sm:$0xff] }
  0x9f   : > { %1918 = vmatprep.subr.bf16.mxu0 %v2310_v48  ;;  %v2381_v48 = vcombine.low %v280_v38, %v284_v39  ;;  %v268_v53 = vld [vmem:[%s3456_s1 + $0x2b0] sm:$0xff]  ;;  %v2328_v38 = vcombine.high %v225_v32, %v229_v33 }
  0xa0   : > { %1960 = vmatpush1.bf16.msra.mxu1 %v2445_v47  ;;  %v404_v47 = vld [vmem:[%s3456_s1 + $0x6f0] sm:$0xff]  ;;  %v2366_v60 = vcombine.high %v264_v52, %v268_v53 }
  0xa1   : > { %1961 = vmatprep.subr.bf16.mxu1 %v2438_v49  ;;  %v2509_v49 = vcombine.low %v408_v40, %v412_v41  ;;  %v2502_v51 = vcombine.high %v400_v46, %v404_v47  ;;  %v256_v62 = vld [vmem:[%s3456_s1 + $0x250] sm:$0xff]  ;;  %v221_v40 = vld [vmem:[%s3456_s1 + $0x138] sm:$0xff] }
  0xa2   : > { %1919 = vmatpush1.bf16.msra.mxu0 %v2309_v54  ;;  %v392_v54 = vld [vmem:[%s3456_s1 + $0x690] sm:$0xff] }
  0xa3   : > { %1920 = vmatprep.subr.bf16.mxu0 %v2302_v57  ;;  %v2373_v57 = vcombine.low %v272_v59, %v276_v45  ;;  %v260_v63 = vld [vmem:[%s3456_s1 + $0x270] sm:$0xff] }
  0xa4   : > { %1962 = vmatpush1.bf16.msra.mxu1 %v2437_v55  ;;  %v396_v55 = vld [vmem:[%s3456_s1 + $0x6b0] sm:$0xff]  ;;  %v2358_v4 = vcombine.high %v256_v62, %v260_v63 }
  0xa5   : > { %1963 = vmatprep.subr.bf16.mxu1 %v2430_v58  ;;  %v2501_v58 = vcombine.low %v400_v46, %v404_v47  ;;  %v2494_v61 = vcombine.high %v392_v54, %v396_v55  ;;  %v248_v6 = vld [vmem:[%s3456_s1 + $0x210] sm:$0xff]  ;;  %v209_v46 = vld [vmem:[%s3456_s1 + $0xd8] sm:$0xff] }
  0xa6   : > { %1921 = vmatpush1.bf16.msra.mxu0 %v2301_v0  ;;  %v384_v0 = vld [vmem:[%s3456_s1 + $0x650] sm:$0xff]  ;;  %v213_v47 = vld [vmem:[%s3456_s1 + $0xf8] sm:$0xff] }
  0xa7   : > { %1922 = vmatprep.subr.bf16.mxu0 %v2294_v2  ;;  %v2365_v2 = vcombine.low %v264_v52, %v268_v53  ;;  %v252_v7 = vld [vmem:[%s3456_s1 + $0x230] sm:$0xff]  ;;  %v2312_v52 = vcombine.high %v209_v46, %v213_v47 }
  0xa8   : > { %1964 = vmatpush1.bf16.msra.mxu1 %v2429_v1  ;;  %v388_v1 = vld [vmem:[%s3456_s1 + $0x670] sm:$0xff]  ;;  %v2350_v13 = vcombine.high %v248_v6, %v252_v7 }
  0xa9   : > { %1965 = vmatprep.subr.bf16.mxu1 %v2422_v3  ;;  %v2493_v3 = vcombine.low %v392_v54, %v396_v55  ;;  %v2486_v5 = vcombine.high %v384_v0, %v388_v1  ;;  %v2572_v41 = vld [vmem:[%s2728_s24 + $0x4] ss:$16 sps:$4 sm:$0xff]   ;;  %v201_v54 = vld [vmem:[%s3456_s1 + $0x98] sm:$0xff] }
  0xaa   : > { %1923 = vmatpush1.bf16.msra.mxu0 %v2293_v8  ;;  %v376_v8 = vld [vmem:[%s3456_s1 + $0x610] sm:$0xff]  ;;  %v205_v55 = vld [vmem:[%s3456_s1 + $0xb8] sm:$0xff] }
  0xab   : > { %1924 = vmatprep.subr.bf16.mxu0 %v2286_v10  ;;  %v2357_v10 = vcombine.low %v256_v62, %v260_v63  ;;  %v2304_v62 = vcombine.high %v201_v54, %v205_v55 }
  0xac   : > { %1966 = vmatpush1.bf16.msra.mxu1 %v2421_v9  ;;  %v380_v9 = vld [vmem:[%s3456_s1 + $0x630] sm:$0xff] }
  0xad   : > { %1967 = vmatprep.subr.bf16.mxu1 %v2414_v11  ;;  %v2485_v11 = vcombine.low %v384_v0, %v388_v1  ;;  %v2478_v14 = vcombine.high %v376_v8, %v380_v9  ;;  %v193_v0 = vld [vmem:[%s3456_s1 + $0x58] sm:$0xff] }
  0xae   : > { %1925 = vmatpush1.bf16.msra.mxu0 %v2285_v18  ;;  %v369_v18 = vld [vmem:[%s3456_s1 + $0x5d8] sm:$0xff] }
  0xaf   : > { %1926 = vmatprep.subr.bf16.mxu0 %v2406_v20  ;;  %v2349_v20 = vcombine.low %v248_v6, %v252_v7  ;;  %v197_v1 = vld [vmem:[%s3456_s1 + $0x78] sm:$0xff] }
  0xb0   : > { %1968 = vmatpush1.bf16.msra.mxu1 %v2413_v19  ;;  %v373_v19 = vld [vmem:[%s3456_s1 + $0x5f8] sm:$0xff]  ;;  %v2296_v6 = vcombine.high %v193_v0, %v197_v1 }
  0xb1   : > { %1969 = vmatprep.subr.bf16.mxu1 %v2534_v21  ;;  %v2477_v21 = vcombine.low %v376_v8, %v380_v9  ;;  %v2472_v23 = vcombine.high %v369_v18, %v373_v19  ;;  %v185_v8 = vld [vmem:[%s3456_s1 + $0x18] sm:$0xff] }
  0xb2   : > { %1927 = vmatpush2.bf16.msra.mxu0 %v2405_v26  ;;  %v361_v26 = vld [vmem:[%s3456_s1 + $0x598] sm:$0xff] }
  0xb3   : > { %1928 = vmatprep.subr.bf16.mxu0 %v2398_v28  ;;  %v2343_v28 = vcombine.low %v241_v16, %v245_v17  ;;  %v189_v9 = vld [vmem:[%s3456_s1 + $0x38] sm:$0xff] }
  0xb4   : > { %1970 = vmatpush2.bf16.msra.mxu1 %v2533_v27  ;;  %v365_v27 = vld [vmem:[%s3456_s1 + $0x5b8] sm:$0xff]  ;;  %v2288_v16 = vcombine.high %v185_v8, %v189_v9 }
  0xb5   : > { %1971 = vmatprep.subr.bf16.mxu1 %v2526_v29  ;;  %v2471_v29 = vcombine.low %v369_v18, %v373_v19  ;;  %v2464_v31 = vcombine.high %v361_v26, %v365_v27  ;;  %v305_v18 = vld [vmem:[%s3456_s1 + $0x3d8] sm:$0xff] }
  0xb6   : > { %1929 = vmatpush2.bf16.msra.mxu0 %v2397_v34  ;;  %v353_v34 = vld [vmem:[%s3456_s1 + $0x558] sm:$0xff] }
  0xb7   : > { %1930 = vmatprep.subr.bf16.mxu0 %v2390_v36  ;;  %v2335_v36 = vcombine.low %v233_v24, %v237_v25  ;;  %v309_v19 = vld [vmem:[%s3456_s1 + $0x3f8] sm:$0xff] }
  0xb8   : > { %1972 = vmatpush2.bf16.msra.mxu1 %v2525_v35  ;;  %v357_v35 = vld [vmem:[%s3456_s1 + $0x578] sm:$0xff]  ;;  %v2408_v24 = vcombine.high %v305_v18, %v309_v19 }
  0xb9   : > { %1973 = vmatprep.subr.bf16.mxu1 %v2518_v37  ;;  %v2463_v37 = vcombine.low %v361_v26, %v365_v27  ;;  %v2456_v39 = vcombine.high %v353_v34, %v357_v35  ;;  %v297_v26 = vld [vmem:[%s3456_s1 + $0x398] sm:$0xff] }
  0xba   : > { %1931 = vmatpush2.bf16.msra.mxu0 %v2389_v42  ;;  %v349_v42 = vld [vmem:[%s3456_s1 + $0x538] sm:$0xff] }
  0xbb   : > { %1932 = vmatprep.subr.bf16.mxu0 %v2382_v56  ;;  %v2327_v56 = vcombine.low %v225_v32, %v229_v33  ;;  %v301_v27 = vld [vmem:[%s3456_s1 + $0x3b8] sm:$0xff] }
  0xbc   : > { %1974 = vmatpush2.bf16.msra.mxu1 %v2517_v43  ;;  %v2573_v43 = vld [vmem:[%s2728_s24 + $0xc] ss:$16 sps:$4 sm:$0xff]   ;;  %v2400_v32 = vcombine.high %v297_v26, %v301_v27 }
  0xbd   : > { %1975 = vmatprep.subr.bf16.mxu1 %v2510_v44  ;;  %v2455_v44 = vcombine.low %v353_v34, %v357_v35  ;;  %v289_v34 = vld [vmem:[%s3456_s1 + $0x358] sm:$0xff] }
  0xbe   : > { %1933 = vmatpush2.bf16.msra.mxu0 %v2381_v48  ;;  %v337_v48 = vld [vmem:[%s3456_s1 + $0x4d8] sm:$0xff] }
  0xbf   : > { %1934 = vmatprep.subr.bf16.mxu0 %v2374_v50  ;;  %v293_v35 = vld [vmem:[%s3456_s1 + $0x378] sm:$0xff] }
  0xc0   : > { %1976 = vmatpush2.bf16.msra.mxu1 %v2509_v49  ;;  %v341_v49 = vld [vmem:[%s3456_s1 + $0x4f8] sm:$0xff] }
  0xc1   : > { %1977 = vmatprep.subr.bf16.mxu1 %v2502_v51  ;;  %v2440_v53 = vcombine.high %v337_v48, %v341_v49 }
  0xc2   : > { %1935 = vmatpush2.bf16.msra.mxu0 %v2373_v57  ;;  %v329_v57 = vld [vmem:[%s3456_s1 + $0x498] sm:$0xff] }
  0xc3   : > { %1936 = vmatprep.subr.bf16.mxu0 %v2366_v60  ;;  %v2311_v60 = vcombine.low %v209_v46, %v213_v47  ;;  %v273_v46 = vld [vmem:[%s3456_s1 + $0x2d8] sm:$0xff] }
  0xc4   : > { %1978 = vmatpush2.bf16.msra.mxu1 %v2501_v58  ;;  %v333_v58 = vld [vmem:[%s3456_s1 + $0x4b8] sm:$0xff] }
  0xc5   : > { %1979 = vmatprep.subr.bf16.mxu1 %v2494_v61  ;;  %v2439_v61 = vcombine.low %v337_v48, %v341_v49  ;;  %v2432_v63 = vcombine.high %v329_v57, %v333_v58  ;;  %v277_v47 = vld [vmem:[%s3456_s1 + $0x2f8] sm:$0xff] }
  0xc6   : > { %1937 = vmatpush2.bf16.msra.mxu0 %v2365_v2  ;;  %v321_v2 = vld [vmem:[%s3456_s1 + $0x458] sm:$0xff] }
  0xc7   : > { %1938 = vmatprep.subr.bf16.mxu0 %v2358_v4  ;;  %v2303_v4 = vcombine.low %v201_v54, %v205_v55  ;;  %v401_v48 = vld [vmem:[%s3456_s1 + $0x6d8] sm:$0xff] }
  0xc8   : > { %1980 = vmatpush2.bf16.msra.mxu1 %v2493_v3  ;;  %v325_v3 = vld [vmem:[%s3456_s1 + $0x478] sm:$0xff] }
  0xc9   : > { %1981 = vmatprep.subr.bf16.mxu1 %v2486_v5  ;;  %v2431_v5 = vcombine.low %v329_v57, %v333_v58  ;;  %v2424_v7 = vcombine.high %v321_v2, %v325_v3  ;;  %v405_v49 = vld [vmem:[%s3456_s1 + $0x6f8] sm:$0xff] }
  0xca   : > { %1939 = vmatpush2.bf16.msra.mxu0 %v2357_v10  ;;  %v313_v10 = vld [vmem:[%s3456_s1 + $0x418] sm:$0xff] }
  0xcb   : > { %1940 = vmatprep.subr.bf16.mxu0 %v2350_v13  ;;  %v2295_v13 = vcombine.low %v193_v0, %v197_v1  ;;  %v265_v54 = vld [vmem:[%s3456_s1 + $0x298] sm:$0xff] }
  0xcc   : > { %1982 = vmatpush2.bf16.msra.mxu1 %v2485_v11  ;;  %v317_v11 = vld [vmem:[%s3456_s1 + $0x438] sm:$0xff] }
  0xcd   : > { %1983 = vmatprep.subr.bf16.mxu1 %v2478_v14  ;;  %v2423_v14 = vcombine.low %v321_v2, %v325_v3  ;;  %v2416_v17 = vcombine.high %v313_v10, %v317_v11  ;;  %v269_v55 = vld [vmem:[%s3456_s1 + $0x2b8] sm:$0xff] }
  0xce   : > { %1941 = vmatpush2.bf16.msra.mxu0 %v2349_v20  ;;  %v433_v20 = vld [vmem:[%s3456_s1 + $0x7d8] sm:$0xff] }
  0xcf   : > { %1996 = vmatprep.subr.bf16.mxu0 %v2344_v22  ;;  %v2287_v22 = vcombine.low %v185_v8, %v189_v9  ;;  %v393_v57 = vld [vmem:[%s3456_s1 + $0x698] sm:$0xff] }
  0xd0   : > { %1984 = vmatpush2.bf16.msra.mxu1 %v2477_v21  ;;  %v437_v21 = vld [vmem:[%s3456_s1 + $0x7f8] sm:$0xff] }
  0xd1   : > { %2039 = vmatprep.subr.bf16.mxu1 %v2472_v23  ;;  %1943 = vmatmul.mubr.bf16.vlgmr.msra.gmra.mxu0 %v2865_v12  ;;  %v217_v12 = vld [vmem:[%s3456_s1 + $0x118] sm:$0xff]  ;;  %v2415_v23 = vcombine.low %v313_v10, %v317_v11  ;;  %v2536_v25 = vcombine.high %v433_v20, %v437_v21 }
  0xd2   : > { %1997 = vmatpush1.bf16.msra.mxu0 %v2343_v28  ;;  %2028 = vmatprep.mubr.bf16.mxu0 %v2572_v41  ;;  %v2320_v59 = vcombine.high %v217_v12, %v221_v40  ;;  %v2319_v50 = vcombine.low %v217_v12, %v221_v40  ;;  %v425_v28 = vld [vmem:[%s3456_s1 + $0x798] sm:$0xff]  ;;  %v2392_v12 = vcombine.high %v289_v34, %v293_v35 }
  0xd3   : > { %1986 = vmatmul.mubr.bf16.vlgmr.msra.gmra.mxu1 %v2874_v15  ;;  %1998 = vmatprep.subr.bf16.mxu0 %v2336_v30  ;;  %v345_v15 = vld [vmem:[%s3456_s1 + $0x518] sm:$0xff]  ;;  %v2407_v30 = vcombine.low %v305_v18, %v309_v19 }
  0xd4   : > { %2040 = vmatpush1.bf16.msra.mxu1 %v2471_v29  ;;  %2071 = vmatprep.mubr.bf16.mxu1 %v2573_v43  ;;  %v2448_v45 = vcombine.high %v345_v15, %v349_v42  ;;  %v2447_v51 = vcombine.low %v345_v15, %v349_v42  ;;  %v429_v29 = vld [vmem:[%s3456_s1 + $0x7b8] sm:$0xff] }
  0xd5   : > { %2041 = vmatprep.subr.bf16.mxu1 %v2464_v31  ;;  %v2535_v31 = vcombine.low %v433_v20, %v437_v21  ;;  %v2528_v33 = vcombine.high %v425_v28, %v429_v29  ;;  %v281_v41 = vld [vmem:[%s3456_s1 + $0x318] sm:$0xff]  ;;  %v2574_v20 = vld [vmem:[%s2728_s24] ss:$16 sps:$4 sm:$0xff]  }
  0xd6   : > { %1999 = vmatpush1.bf16.msra.mxu0 %v2335_v36  ;;  %v417_v36 = vld [vmem:[%s3456_s1 + $0x758] sm:$0xff] }
  0xd7   : > { %2000 = vmatprep.subr.bf16.mxu0 %v2328_v38  ;;  %v2399_v38 = vcombine.low %v297_v26, %v301_v27  ;;  %v285_v15 = vld [vmem:[%s3456_s1 + $0x338] sm:$0xff] }
  0xd8   : > { %2042 = vmatpush1.bf16.msra.mxu1 %v2463_v37  ;;  %v421_v37 = vld [vmem:[%s3456_s1 + $0x778] sm:$0xff] }
  0xd9   : > { %2043 = vmatprep.subr.bf16.mxu1 %v2456_v39  ;;  %v2527_v39 = vcombine.low %v425_v28, %v429_v29  ;;  %v2520_v40 = vcombine.high %v417_v36, %v421_v37  ;;  %v409_v42 = vld [vmem:[%s3456_s1 + $0x718] sm:$0xff] }
  0xda   : > { %2001 = vmatpush1.bf16.msra.mxu0 %v2327_v56  ;;  %v413_v43 = vld [vmem:[%s3456_s1 + $0x738] sm:$0xff]  ;;  %v2391_v56 = vcombine.low %v289_v34, %v293_v35 }
  0xdb   : > { %2002 = vmatprep.subr.bf16.mxu0 %v2320_v59  ;;  %v2384_v59 = vcombine.high %v281_v41, %v285_v15  ;;  %v397_v58 = vld [vmem:[%s3456_s1 + $0x6b8] sm:$0xff] }
  0xdc   : > { %2044 = vmatpush1.bf16.msra.mxu1 %v2455_v44  ;;  %v2519_v44 = vcombine.low %v417_v36, %v421_v37  ;;  %v257_v0 = vld [vmem:[%s3456_s1 + $0x258] sm:$0xff] }
  0xdd   : > { %2045 = vmatprep.subr.bf16.mxu1 %v2448_v45  ;;  %v2512_v45 = vcombine.high %v409_v42, %v413_v43  ;;  %v261_v1 = vld [vmem:[%s3456_s1 + $0x278] sm:$0xff] }
  0xde   : > { %2003 = vmatpush1.bf16.msra.mxu0 %v2319_v50  ;;  %v2383_v50 = vcombine.low %v281_v41, %v285_v15  ;;  %v385_v2 = vld [vmem:[%s3456_s1 + $0x658] sm:$0xff] }
  0xdf   : > { %2004 = vmatprep.subr.bf16.mxu0 %v2312_v52  ;;  %v2376_v52 = vcombine.high %v273_v46, %v277_v47  ;;  %v389_v3 = vld [vmem:[%s3456_s1 + $0x678] sm:$0xff] }
  0xe0   : > { %2046 = vmatpush1.bf16.msra.mxu1 %v2447_v51  ;;  %v2511_v51 = vcombine.low %v409_v42, %v413_v43  ;;  %v249_v8 = vld [vmem:[%s3456_s1 + $0x218] sm:$0xff] }
  0xe1   : > { %2047 = vmatprep.subr.bf16.mxu1 %v2440_v53  ;;  %v2504_v53 = vcombine.high %v401_v48, %v405_v49  ;;  %v253_v9 = vld [vmem:[%s3456_s1 + $0x238] sm:$0xff] }
  0xe2   : > { %2005 = vmatpush1.bf16.msra.mxu0 %v2311_v60  ;;  %v2375_v60 = vcombine.low %v273_v46, %v277_v47  ;;  %v377_v10 = vld [vmem:[%s3456_s1 + $0x618] sm:$0xff]  ;;  %v2351_v18 = vcombine.low %v249_v8, %v253_v9 }
  0xe3   : > { %2006 = vmatprep.subr.bf16.mxu0 %v2304_v62  ;;  %v2368_v62 = vcombine.high %v265_v54, %v269_v55  ;;  %v381_v11 = vld [vmem:[%s3456_s1 + $0x638] sm:$0xff] }
  0xe4   : > { %2048 = vmatpush1.bf16.msra.mxu1 %v2439_v61  ;;  %v2503_v61 = vcombine.low %v401_v48, %v405_v49  ;;  %v2479_v19 = vcombine.low %v377_v10, %v381_v11  ;;  %v2575_v21 = vld [vmem:[%s2728_s24 + $0x8] ss:$16 sps:$4 sm:$0xff]   ;;  %s2276_s24 = sshll.u32 %s3463_s9, 3 }
  0xe5   : > { %2049 = vmatprep.subr.bf16.mxu1 %v2432_v63  ;;  %v2496_v63 = vcombine.high %v393_v57, %v397_v58  ;;  %s172_s22 = scalar_lea.vmem %s3457_s2, %s2276_s24 }
  0xe6   : > { %2007 = vmatpush1.bf16.msra.mxu0 %v2303_v4  ;;  %v2367_v4 = vcombine.low %v265_v54, %v269_v55 }
  0xe7   : > { %2008 = vmatprep.subr.bf16.mxu0 %v2296_v6  ;;  %v2360_v6 = vcombine.high %v257_v0, %v261_v1 }
  0xe8   : > { %2050 = vmatpush1.bf16.msra.mxu1 %v2431_v5  ;;  %v2495_v5 = vcombine.low %v393_v57, %v397_v58 }
  0xe9   : > { %2051 = vmatprep.subr.bf16.mxu1 %v2424_v7  ;;  %v2488_v7 = vcombine.high %v385_v2, %v389_v3 }
  0xea   : > { %2009 = vmatpush1.bf16.msra.mxu0 %v2295_v13  ;;  %v2359_v13 = vcombine.low %v257_v0, %v261_v1 }
  0xeb   : > { %2010 = vmatprep.subr.bf16.mxu0 %v2288_v16  ;;  %v2352_v16 = vcombine.high %v249_v8, %v253_v9 }
  0xec   : > { %2052 = vmatpush1.bf16.msra.mxu1 %v2423_v14  ;;  %v2487_v14 = vcombine.low %v385_v2, %v389_v3 }
  0xed   : > { %2053 = vmatprep.subr.bf16.mxu1 %v2416_v17  ;;  %v2480_v17 = vcombine.high %v377_v10, %v381_v11 }
  0xee   : > { %2011 = vmatpush1.bf16.msra.mxu0 %v2287_v22 }
  0xef   : > { %2012 = vmatprep.subr.bf16.mxu0 %v2408_v24 }
  0xf0   : > { %2054 = vmatpush1.bf16.msra.mxu1 %v2415_v23 }
  0xf1   : > { %2055 = vmatprep.subr.bf16.mxu1 %v2536_v25 }
  0xf2   : > { %2013 = vmatpush2.bf16.msra.mxu0 %v2407_v30 }
  0xf3   : > { %2014 = vmatprep.subr.bf16.mxu0 %v2400_v32 }
  0xf4   : > { %2056 = vmatpush2.bf16.msra.mxu1 %v2535_v31 }
  0xf5   : > { %2057 = vmatprep.subr.bf16.mxu1 %v2528_v33 }
  0xf6   : > { %2015 = vmatpush2.bf16.msra.mxu0 %v2399_v38 }
  0xf7   : > { %2016 = vmatprep.subr.bf16.mxu0 %v2392_v12 }
  0xf8   : > { %2058 = vmatpush2.bf16.msra.mxu1 %v2527_v39 }
  0xf9   : > { %2059 = vmatprep.subr.bf16.mxu1 %v2520_v40 }
  0xfa   : > { %2017 = vmatpush2.bf16.msra.mxu0 %v2391_v56 }
  0xfb   : > { %2018 = vmatprep.subr.bf16.mxu0 %v2384_v59 }
  0xfc   : > { %2060 = vmatpush2.bf16.msra.mxu1 %v2519_v44 }
  0xfd   : > { %2061 = vmatprep.subr.bf16.mxu1 %v2512_v45 }
  0xfe   : > { %2019 = vmatpush2.bf16.msra.mxu0 %v2383_v50 }
  0xff   : > { %2020 = vmatprep.subr.bf16.mxu0 %v2376_v52 }
 0x100   : > { %2062 = vmatpush2.bf16.msra.mxu1 %v2511_v51 }
 0x101   : > { %2063 = vmatprep.subr.bf16.mxu1 %v2504_v53 }
 0x102   : > { %2021 = vmatpush2.bf16.msra.mxu0 %v2375_v60 }
 0x103   : > { %2022 = vmatprep.subr.bf16.mxu0 %v2368_v62 }
 0x104   : > { %2064 = vmatpush2.bf16.msra.mxu1 %v2503_v61 }
 0x105   : > { %2065 = vmatprep.subr.bf16.mxu1 %v2496_v63 }
 0x106   : > { %2023 = vmatpush2.bf16.msra.mxu0 %v2367_v4 }
 0x107   : > { %2024 = vmatprep.subr.bf16.mxu0 %v2360_v6 }
 0x108   : > { %2066 = vmatpush2.bf16.msra.mxu1 %v2495_v5 }
 0x109   : > { %2067 = vmatprep.subr.bf16.mxu1 %v2488_v7 }
 0x10a   : > { %2025 = vmatpush2.bf16.msra.mxu0 %v2359_v13 }
 0x10b   : > { %2026 = vmatprep.subr.bf16.mxu0 %v2352_v16 }
 0x10c   : > { %2068 = vmatpush2.bf16.msra.mxu1 %v2487_v14 }
 0x10d   : > { %2069 = vmatprep.subr.bf16.mxu1 %v2480_v17 }
 0x10e   : > { %2027 = vmatpush2.bf16.msra.mxu0 %v2351_v18 }
 0x110   : > { %2070 = vmatpush2.bf16.msra.mxu1 %v2479_v19 }
 0x111   : > { %2029 = vmatmul.mubr.bf16.vlgmr.msra.gmra.mxu0 %v2574_v20  ;;  %v1772_v22 = vpop.f32.mrf.mxu0 }
 0x113   : > { %2072 = vmatmul.mubr.bf16.vlgmr.msra.gmra.mxu1 %v2575_v21  ;;  %v1815_v23 = vpop.f32.mrf.mxu1  ;;  %v1774_v24 = vpop.f32.mrf.mxu0 }
 0x114   : > { %v1816_v51 = vadd.f32 %v1815_v23, %v1772_v22 }
 0x115   : > { %v1817_v25 = vpop.f32.mrf.mxu1  ;;  %v1776_v26 = vpop.f32.mrf.mxu0 }
 0x116   : > { %v1818_v46 = vadd.f32 %v1817_v25, %v1774_v24 }
 0x117   : > { %v1819_v27 = vpop.f32.mrf.mxu1  ;;  %v1778_v28 = vpop.f32.mrf.mxu0 }
 0x118   : > { %v1820_v47 = vadd.f32 %v1819_v27, %v1776_v26 }
 0x119   : > { %v1821_v29 = vpop.f32.mrf.mxu1 }
 0x11a   : > { %v1822_v43 = vadd.f32 %v1821_v29, %v1778_v28  ;;  %v2083_v57 = vmax.f32 %v1816_v51, %v1820_v47 }
 0x11c   : > { %v2090_v52 = vmax.f32 %v1818_v46, %v1822_v43  ;;  %v2084_v1 = vrot.slane %v2083_v57, 4 }
 0x11e   : > { %v2091_v62 = vrot.slane %v2090_v52, 4  ;;  %v2085_v8 = vmax.f32 %v2083_v57, %v2084_v1 }
 0x120   : > { %v2092_v4 = vmax.f32 %v2090_v52, %v2091_v62  ;;  %v2086_v20 = vrot.slane %v2085_v8, 2 }
 0x122   : > { %v2093_v14 = vrot.slane %v2092_v4, 2 }
 0x124   : > { %v2094_v27 = vmax.f32 %v2092_v4, %v2093_v14 }
 0x151   : > { %v1858_v30 = vpop.f32.mrf.mxu0 }
 0x153   : > { %v1901_v31 = vpop.f32.mrf.mxu1  ;;  %v1860_v32 = vpop.f32.mrf.mxu0 }
 0x154   : > { %v1902_v48 = vadd.f32 %v1901_v31, %v1858_v30 }
 0x155   : > { %v1903_v33 = vpop.f32.mrf.mxu1  ;;  %v1862_v34 = vpop.f32.mrf.mxu0 }
 0x156   : > { %v1904_v45 = vadd.f32 %v1903_v33, %v1860_v32 }
 0x157   : > { %v1905_v35 = vpop.f32.mrf.mxu1  ;;  %v1864_v36 = vpop.f32.mrf.mxu0 }
 0x158   : > { %v1906_v56 = vadd.f32 %v1905_v35, %v1862_v34  ;;  %v2087_v34 = vmax.f32 %v2085_v8, %v2086_v20 }
 0x159   : > { %v1907_v37 = vpop.f32.mrf.mxu1 }
 0x15a   : > { %v1908_v42 = vadd.f32 %v1907_v37, %v1864_v36  ;;  %v2097_v53 = vmax.f32 %v1902_v48, %v1906_v56 }
 0x15c   : > { %v2104_v49 = vmax.f32 %v1904_v45, %v1908_v42  ;;  %v2098_v63 = vrot.slane %v2097_v53, 4 }
 0x15e   : > { %v2105_v58 = vrot.slane %v2104_v49, 4  ;;  %v2099_v5 = vmax.f32 %v2097_v53, %v2098_v63 }
 0x160   : > { %v2106_v2 = vmax.f32 %v2104_v49, %v2105_v58  ;;  %v2100_v16 = vrot.slane %v2099_v5, 2 }
 0x162   : > { %v2107_v10 = vrot.slane %v2106_v2, 2  ;;  %v2101_v28 = vmax.f32 %v2099_v5, %v2100_v16 }
 0x164   : > { %v2108_v22 = vmax.f32 %v2106_v2, %v2107_v10 }
 0x166   : > { %v2109_v35 = vrot.slane %v2108_v22, 1 }
 0x191   : > { %v1944_v38 = vpop.f32.mrf.mxu0 }
 0x193   : > { %v1987_v39 = vpop.f32.mrf.mxu1  ;;  %v1946_v12 = vpop.f32.mrf.mxu0 }
 0x194   : > { %v1988_v60 = vadd.f32 %v1987_v39, %v1944_v38  ;;  %v2095_v39 = vrot.slane %v2094_v27, 1 }
 0x195   : > { %v1989_v40 = vpop.f32.mrf.mxu1  ;;  %v1948_v41 = vpop.f32.mrf.mxu0 }
 0x196   : > { %v1990_v54 = vadd.f32 %v1989_v40, %v1946_v12  ;;  %v2600_v12 = vmov 1966171168   ;;  %v2096_v48 = vmax.f32 %v2094_v27, %v2095_v39 }
 0x197   : > { %v1991_v15 = vpop.f32.mrf.mxu1  ;;  %v1950_v44 = vpop.f32.mrf.mxu0  ;;  %v2152_v40 = vunpack.c.l.s4 %v2600_v12 }
 0x198   : > { %v1992_v55 = vadd.f32 %v1991_v15, %v1948_v41  ;;  %v2154_v41 = vlaneseq  ;;  %v2102_v15 = vrot.slane %v2101_v28, 1 }
 0x199   : > { %v1993_v59 = vpop.f32.mrf.mxu1  ;;  %v2153_v49 = vunpack.c.0.s8 %v2152_v40 }
 0x19a   : > { %v1994_v50 = vadd.f32 %v1993_v59, %v1950_v44  ;;  %v2111_v0 = vmax.f32 %v1988_v60, %v1992_v55  ;;  %v2088_v44 = vrot.slane %v2087_v34, 1  ;;  %v2110_v59 = vmax.f32 %v2108_v22, %v2109_v35 }
 0x19b   : > { %v2103_v51 = vmax.f32 %v2101_v28, %v2102_v15 }
 0x19c   : > { %v2118_v61 = vmax.f32 %v1990_v54, %v1994_v50  ;;  %v2112_v6 = vrot.slane %v2111_v0, 4  ;;  %v2155_v50 = vshrl.u32 %v2154_v41, 7  ;;  %v2089_v55 = vmax.f32 %v2087_v34, %v2088_v44 }
 0x19d   : > { %v2148_v57 = vcombine.low %v2103_v51, %v2110_v59 }
 0x19e   : > { %v2119_v3 = vrot.slane %v2118_v61, 4  ;;  %v2113_v18 = vmax.f32 %v2111_v0, %v2112_v6  ;;  %v2147_v62 = vcombine.low %v2089_v55, %v2096_v48  ;;  %v2156_v63 = vsub.s32 %v2153_v49, %v2155_v50 }
 0x1a0   : > { %v2120_v11 = vmax.f32 %v2118_v61, %v2119_v3  ;;  %v2114_v30 = vrot.slane %v2113_v18, 2  ;;  %v2164_v2 = vrot.slane %v2148_v57, %v2156_v63  ;;  %v2157_v6 = vrot.slane %v2147_v62, %v2156_v63 }
 0x1a2   : > { %v2121_v23 = vrot.slane %v2120_v11, 2  ;;  %v2115_v42 = vmax.f32 %v2113_v18, %v2114_v30  ;;  %v2179_v8 = vcombine.low %v2157_v6, %v2164_v2 }
 0x1a4   : > { %v2122_v36 = vmax.f32 %v2120_v11, %v2121_v23  ;;  %v2116_v52 = vrot.slane %v2115_v42, 1 }
 0x1a6   : > { %v2123_v45 = vrot.slane %v2122_v36, 1  ;;  %v2117_v0 = vmax.f32 %v2115_v42, %v2116_v52 }
 0x1a8   : > { %v2124_v58 = vmax.f32 %v2122_v36, %v2123_v45 }
 0x1aa   : > { %v2149_v3 = vcombine.low %v2117_v0, %v2124_v58 }
 0x1d1   : > { %v2030_v7 = vpop.f32.mrf.mxu0 }
 0x1d3   : > { %v2073_v9 = vpop.f32.mrf.mxu1  ;;  %v2032_v13 = vpop.f32.mrf.mxu0 }
 0x1d4   : > { %v2074_v24 = vadd.f32 %v2073_v9, %v2030_v7  ;;  %v2171_v9 = vrot.slane %v2149_v3, %v2156_v63 }
 0x1d5   : > { %v2075_v17 = vpop.f32.mrf.mxu1  ;;  %v2034_v19 = vpop.f32.mrf.mxu0 }
 0x1d6   : > { %v2076_v31 = vadd.f32 %v2075_v17, %v2032_v13  ;;  %v2187_v13 = vrot.slane %v2179_v8, %v2156_v63 }
 0x1d7   : > { %v2077_v21 = vpop.f32.mrf.mxu1  ;;  %v2036_v26 = vpop.f32.mrf.mxu0 }
 0x1d8   : > { %v2078_v25 = vadd.f32 %v2077_v21, %v2034_v19 }
 0x1d9   : > { %v2079_v29 = vpop.f32.mrf.mxu1 }
 0x1da   : > { %v2125_v32 = vmax.f32 %v2074_v24, %v2078_v25  ;;  %v2080_v33 = vadd.f32 %v2079_v29, %v2036_v26 }
 0x1dc   : > { %v2126_v37 = vrot.slane %v2125_v32, 4  ;;  %v2132_v38 = vmax.f32 %v2076_v31, %v2080_v33 }
 0x1de   : > { %v2127_v43 = vmax.f32 %v2125_v32, %v2126_v37  ;;  %v2133_v56 = vrot.slane %v2132_v38, 4 }
 0x1e0   : > { %v2128_v46 = vrot.slane %v2127_v43, 2  ;;  %v2134_v47 = vmax.f32 %v2132_v38, %v2133_v56 }
 0x1e2   : > { %v2129_v53 = vmax.f32 %v2127_v43, %v2128_v46  ;;  %v2135_v54 = vrot.slane %v2134_v47, 2 }
 0x1e4   : > { %v2130_v60 = vrot.slane %v2129_v53, 1  ;;  %v2136_v61 = vmax.f32 %v2134_v47, %v2135_v54 }
 0x1e6   : > { %v2137_v1 = vrot.slane %v2136_v61, 1  ;;  %v2131_v4 = vmax.f32 %v2129_v53, %v2130_v60 }
 0x1e8   : > { %v2138_v5 = vmax.f32 %v2136_v61, %v2137_v1 }
 0x1ea   : > { %v2150_v7 = vcombine.low %v2131_v4, %v2138_v5 }
 0x1ec   : > { %v2178_v10 = vrot.slane %v2150_v7, %v2156_v63 }
 0x1ee   : > { %v2180_v11 = vcombine.low %v2171_v9, %v2178_v10 }
 0x1f0   : > { %v2194_v14 = vrot.slane %v2180_v11, %v2156_v63 }
 0x1f2   : > { %v2195_v16 = vcombine.low %v2187_v13, %v2194_v14 }
 0x1f4   : > { %2198 = vst [vmem:[%s172_s22] sm:$0xff] %v2195_v16 }
 0x1f5 PF: > { %s12_s11 = sadd.s32 1, %s2598_s11   ;;  %s3458_s9 = smov %s2594_s10 }
 0x1f6   : > { %p9_p5 = scmp.ge.s32.totalorder %s12_s11, 4   ;;  %s3459_s10 = smov %s3461_s12 }
 0x1f8   :  { %11 = sbr.rel (!%p9_p5) target bundleno = 2 (0x2), region = 62 }

// kernel: dgcnn_forward.19
= control target key start
LH: loop header
LB: loop body
LE: loop exit
PB: predicated region body
PF: predicated region fallthrough
CT: control target
= control target key end

     0   :  { %v287_v36 = vlaneseq  ;;  %v3546_v37 = vmov 1966171168   ;;  %s4684_s0 = inlined_call_operand.vmem [shape: bf16[2,1024], index: 0, kind: input, shape index: {}]   ;;  %s4685_s1 = inlined_call_operand.vmem [shape: bf16[1024,512], index: 1, kind: input, shape index: {}]   ;;  %s4686_s2 = inlined_call_operand.vmem [shape: f32[1,512], index: 2, kind: input, shape index: {}]   ;;  %s4687_s3 = inlined_call_operand.vmem [shape: bf16[512,256], index: 3, kind: input, shape index: {}]   ;;  %s4688_s4 = inlined_call_operand.vmem [shape: f32[1,256], index: 4, kind: input, shape index: {}]   ;;  %s4689_s5 = inlined_call_operand.vmem [shape: bf16[256,3], index: 5, kind: input, shape index: {}]   ;;  %s4690_s6 = inlined_call_operand.vmem [shape: f32[1,3], index: 6, kind: input, shape index: {}]   ;;  %s4691_s7 = inlined_call_operand.hbm [shape: f32[2,3], index: 7, kind: output, shape index: {}]  }
   0x1   :  { %v3027_v0 = vld [vmem:[%s4685_s1 + $0xe4] ss:$16 sps:$4 sm:$0xff]   ;;  %v3031_v2 = vld [vmem:[%s4685_s1 + $0xe0] ss:$16 sps:$4 sm:$0xff]   ;;  %v310_v38 = vunpack.c.l.s4 %v3546_v37 }
   0x2   :  { %v3029_v1 = vld [vmem:[%s4685_s1 + $0x2e4] ss:$16 sps:$4 sm:$0xff]   ;;  %1645 = vmatprep.subr.bf16.mxu0 %v3027_v0  ;;  %v3032_v3 = vld [vmem:[%s4685_s1 + $0x2e0] ss:$16 sps:$4 sm:$0xff]   ;;  %v3705_v42 = vshrl.u32 %v287_v36, 7 }
   0x3   :  { %1686 = vmatprep.subr.bf16.mxu1 %v3029_v1  ;;  %v3033_v4 = vld [vmem:[%s4685_s1 + $0xc4] ss:$16 sps:$4 sm:$0xff]   ;;  %1646 = vmatpush1.bf16.msra.mxu0 %v3031_v2  ;;  %v3037_v6 = vld [vmem:[%s4685_s1 + $0xc0] ss:$16 sps:$4 sm:$0xff]   ;;  %v311_v43 = vunpack.c.0.s8 %v310_v38 }
   0x4   :  { %1687 = vmatpush1.bf16.msra.mxu1 %v3032_v3  ;;  %v3035_v5 = vld [vmem:[%s4685_s1 + $0x2c4] ss:$16 sps:$4 sm:$0xff]   ;;  %1647 = vmatprep.subr.bf16.mxu0 %v3033_v4  ;;  %v3038_v7 = vld [vmem:[%s4685_s1 + $0x2c0] ss:$16 sps:$4 sm:$0xff]  }
   0x5   :  { %1688 = vmatprep.subr.bf16.mxu1 %v3035_v5  ;;  %v3039_v8 = vld [vmem:[%s4685_s1 + $0xa4] ss:$16 sps:$4 sm:$0xff]   ;;  %v3043_v10 = vld [vmem:[%s4685_s1 + $0xa0] ss:$16 sps:$4 sm:$0xff]   ;;  %v314_v49 = vsub.s32 %v311_v43, %v3705_v42 }
   0x6   :  { %v3041_v9 = vld [vmem:[%s4685_s1 + $0x2a4] ss:$16 sps:$4 sm:$0xff]   ;;  %v3044_v11 = vld [vmem:[%s4685_s1 + $0x2a0] ss:$16 sps:$4 sm:$0xff]  }
   0x7   :  { %1648 = vmatpush1.bf16.msra.mxu0 %v3037_v6  ;;  %v3045_v12 = vld [vmem:[%s4685_s1 + $0x84] ss:$16 sps:$4 sm:$0xff]   ;;  %v3049_v14 = vld [vmem:[%s4685_s1 + $0x80] ss:$16 sps:$4 sm:$0xff]  }
   0x8   :  { %1689 = vmatpush1.bf16.msra.mxu1 %v3038_v7  ;;  %1649 = vmatprep.subr.bf16.mxu0 %v3039_v8  ;;  %v3047_v13 = vld [vmem:[%s4685_s1 + $0x284] ss:$16 sps:$4 sm:$0xff]   ;;  %v3050_v15 = vld [vmem:[%s4685_s1 + $0x280] ss:$16 sps:$4 sm:$0xff]  }
   0x9   :  { %1690 = vmatprep.subr.bf16.mxu1 %v3041_v9  ;;  %v3051_v16 = vld [vmem:[%s4685_s1 + $0x64] ss:$16 sps:$4 sm:$0xff]   ;;  %v3055_v18 = vld [vmem:[%s4685_s1 + $0x60] ss:$16 sps:$4 sm:$0xff]  }
   0xa   :  { %v3053_v17 = vld [vmem:[%s4685_s1 + $0x264] ss:$16 sps:$4 sm:$0xff]   ;;  %v3056_v19 = vld [vmem:[%s4685_s1 + $0x260] ss:$16 sps:$4 sm:$0xff]  }
   0xb   :  { %1650 = vmatpush1.bf16.msra.mxu0 %v3043_v10  ;;  %v3057_v20 = vld [vmem:[%s4685_s1 + $0x44] ss:$16 sps:$4 sm:$0xff]   ;;  %v3061_v22 = vld [vmem:[%s4685_s1 + $0x40] ss:$16 sps:$4 sm:$0xff]  }
   0xc   :  { %1691 = vmatpush1.bf16.msra.mxu1 %v3044_v11  ;;  %1651 = vmatprep.subr.bf16.mxu0 %v3045_v12  ;;  %v3059_v21 = vld [vmem:[%s4685_s1 + $0x244] ss:$16 sps:$4 sm:$0xff]   ;;  %v3062_v23 = vld [vmem:[%s4685_s1 + $0x240] ss:$16 sps:$4 sm:$0xff]  }
   0xd   :  { %1692 = vmatprep.subr.bf16.mxu1 %v3047_v13  ;;  %v3063_v24 = vld [vmem:[%s4685_s1 + $0x24] ss:$16 sps:$4 sm:$0xff]   ;;  %v3067_v26 = vld [vmem:[%s4685_s1 + $0x20] ss:$16 sps:$4 sm:$0xff]  }
   0xe   :  { %v3065_v25 = vld [vmem:[%s4685_s1 + $0x224] ss:$16 sps:$4 sm:$0xff]   ;;  %v3068_v27 = vld [vmem:[%s4685_s1 + $0x220] ss:$16 sps:$4 sm:$0xff]  }
   0xf   :  { %1652 = vmatpush1.bf16.msra.mxu0 %v3049_v14  ;;  %v3069_v28 = vld [vmem:[%s4685_s1 + $0x4] ss:$16 sps:$4 sm:$0xff]   ;;  %v3073_v30 = vld [vmem:[%s4685_s1] ss:$16 sps:$4 sm:$0xff]  }
  0x10   :  { %1693 = vmatpush1.bf16.msra.mxu1 %v3050_v15  ;;  %1653 = vmatprep.subr.bf16.mxu0 %v3051_v16  ;;  %v3071_v29 = vld [vmem:[%s4685_s1 + $0x204] ss:$16 sps:$4 sm:$0xff]   ;;  %v3074_v31 = vld [vmem:[%s4685_s1 + $0x200] ss:$16 sps:$4 sm:$0xff]  }
  0x11   :  { %1694 = vmatprep.subr.bf16.mxu1 %v3053_v17  ;;  %v3075_v32 = vld [vmem:[%s4685_s1 + $0x1e4] ss:$16 sps:$4 sm:$0xff]   ;;  %v3079_v34 = vld [vmem:[%s4685_s1 + $0x1e0] ss:$16 sps:$4 sm:$0xff]  }
  0x12   :  { %v3077_v33 = vld [vmem:[%s4685_s1 + $0x3e4] ss:$16 sps:$4 sm:$0xff]   ;;  %v3080_v35 = vld [vmem:[%s4685_s1 + $0x3e0] ss:$16 sps:$4 sm:$0xff]  }
  0x13   :  { %1654 = vmatpush1.bf16.msra.mxu0 %v3055_v18  ;;  %v3081_v39 = vld [vmem:[%s4685_s1 + $0x1c4] ss:$16 sps:$4 sm:$0xff]   ;;  %v3085_v41 = vld [vmem:[%s4685_s1 + $0x1c0] ss:$16 sps:$4 sm:$0xff]  }
  0x14   :  { %1695 = vmatpush1.bf16.msra.mxu1 %v3056_v19  ;;  %1655 = vmatprep.subr.bf16.mxu0 %v3057_v20  ;;  %v3083_v40 = vld [vmem:[%s4685_s1 + $0x3c4] ss:$16 sps:$4 sm:$0xff]   ;;  %v3086_v44 = vld [vmem:[%s4685_s1 + $0x3c0] ss:$16 sps:$4 sm:$0xff]  }
  0x15   :  { %1696 = vmatprep.subr.bf16.mxu1 %v3059_v21  ;;  %v3087_v45 = vld [vmem:[%s4685_s1 + $0x1a4] ss:$16 sps:$4 sm:$0xff]   ;;  %v3091_v47 = vld [vmem:[%s4685_s1 + $0x1a0] ss:$16 sps:$4 sm:$0xff]  }
  0x16   :  { %v3089_v46 = vld [vmem:[%s4685_s1 + $0x3a4] ss:$16 sps:$4 sm:$0xff]   ;;  %v3092_v48 = vld [vmem:[%s4685_s1 + $0x3a0] ss:$16 sps:$4 sm:$0xff]  }
  0x17   :  { %1656 = vmatpush1.bf16.msra.mxu0 %v3061_v22  ;;  %v3093_v50 = vld [vmem:[%s4685_s1 + $0x184] ss:$16 sps:$4 sm:$0xff]   ;;  %v3097_v53 = vld [vmem:[%s4685_s1 + $0x180] ss:$16 sps:$4 sm:$0xff]  }
  0x18   :  { %1697 = vmatpush1.bf16.msra.mxu1 %v3062_v23  ;;  %1657 = vmatprep.subr.bf16.mxu0 %v3063_v24  ;;  %v3095_v51 = vld [vmem:[%s4685_s1 + $0x384] ss:$16 sps:$4 sm:$0xff]   ;;  %v3098_v56 = vld [vmem:[%s4685_s1 + $0x380] ss:$16 sps:$4 sm:$0xff]  }
  0x19   :  { %1698 = vmatprep.subr.bf16.mxu1 %v3065_v25  ;;  %v28_v52 = vld [vmem:[%s4684_s0] sm:$0xff] }
  0x1a   :  { %v315_v54 = vrot.slane %v28_v52, %v314_v49  ;;  %v308_v55 = vcombine.high %v28_v52, %v28_v52  ;;  %v3099_v57 = vld [vmem:[%s4685_s1 + $0x164] ss:$16 sps:$4 sm:$0xff]   ;;  %v3103_v61 = vld [vmem:[%s4685_s1 + $0x160] ss:$16 sps:$4 sm:$0xff]  }
  0x1b   :  { %1658 = vmatpush1.bf16.msra.mxu0 %v3067_v26  ;;  %v3101_v58 = vld [vmem:[%s4685_s1 + $0x364] ss:$16 sps:$4 sm:$0xff]   ;;  %v3104_v0 = vld [vmem:[%s4685_s1 + $0x360] ss:$16 sps:$4 sm:$0xff]  }
  0x1c   :  { %1699 = vmatpush1.bf16.msra.mxu1 %v3068_v27  ;;  %1659 = vmatprep.subr.bf16.mxu0 %v3069_v28  ;;  %v323_v59 = vcombine.high %v315_v54, %v315_v54  ;;  %v322_v60 = vrot.slane %v308_v55, %v314_v49  ;;  %v3105_v1 = vld [vmem:[%s4685_s1 + $0x144] ss:$16 sps:$4 sm:$0xff]   ;;  %v3109_v4 = vld [vmem:[%s4685_s1 + $0x140] ss:$16 sps:$4 sm:$0xff]   ;;  %v3793_v14 = vrot.slane %v315_v54, %v314_v49 }
  0x1d   :  { %1700 = vmatprep.subr.bf16.mxu1 %v3071_v29  ;;  %v3107_v2 = vld [vmem:[%s4685_s1 + $0x344] ss:$16 sps:$4 sm:$0xff]   ;;  %v3110_v5 = vld [vmem:[%s4685_s1 + $0x340] ss:$16 sps:$4 sm:$0xff]  }
  0x1e   :  { %v3747_v62 = vrot.slane %v323_v59, %v314_v49  ;;  %v3749_v63 = vrot.slane %v322_v60, %v314_v49  ;;  %v3111_v6 = vld [vmem:[%s4685_s1 + $0x124] ss:$16 sps:$4 sm:$0xff]   ;;  %v3115_v8 = vld [vmem:[%s4685_s1 + $0x120] ss:$16 sps:$4 sm:$0xff]   ;;  %v324_v12 = vcombine.high %v322_v60, %v322_v60  ;;  %v3808_v19 = vcombine.high %v3793_v14, %v3793_v14 }
  0x1f   :  { %1660 = vmatpush1.bf16.msra.mxu0 %v3073_v30  ;;  %v3113_v7 = vld [vmem:[%s4685_s1 + $0x324] ss:$16 sps:$4 sm:$0xff]   ;;  %v3116_v9 = vld [vmem:[%s4685_s1 + $0x320] ss:$16 sps:$4 sm:$0xff]  }
  0x20   :  { %1701 = vmatpush1.bf16.msra.mxu1 %v3074_v31  ;;  %1661 = vmatprep.subr.bf16.mxu0 %v3075_v32  ;;  %v3762_v3 = vcombine.high %v3747_v62, %v3747_v62  ;;  %v3117_v10 = vld [vmem:[%s4685_s1 + $0x104] ss:$16 sps:$4 sm:$0xff]   ;;  %v3121_v13 = vld [vmem:[%s4685_s1 + $0x100] ss:$16 sps:$4 sm:$0xff]   ;;  %v3804_v18 = vrot.slane %v324_v12, %v314_v49 }
  0x21   :  { %1702 = vmatprep.subr.bf16.mxu1 %v3077_v33  ;;  %1677 = vmatprep.mubr.bf16.mxu0 %v3747_v62  ;;  %v3119_v11 = vld [vmem:[%s4685_s1 + $0x304] ss:$16 sps:$4 sm:$0xff]   ;;  %v3122_v15 = vld [vmem:[%s4685_s1 + $0x300] ss:$16 sps:$4 sm:$0xff]  }
  0x22   :  { %1718 = vmatprep.mubr.bf16.mxu1 %v3762_v3  ;;  %v3125_v16 = vld [vmem:[%s4685_s1 + $0x4e4] ss:$16 sps:$4 sm:$0xff]   ;;  %v3123_v20 = vld [vmem:[%s4685_s1 + $0x4e0] ss:$16 sps:$4 sm:$0xff]   ;;  %v3824_v24 = vcombine.high %v3804_v18, %v3804_v18 }
  0x23   :  { %1662 = vmatpush2.bf16.msra.mxu0 %v3079_v34  ;;  %v3128_v17 = vld [vmem:[%s4685_s1 + $0x6e4] ss:$16 sps:$4 sm:$0xff]   ;;  %v3126_v21 = vld [vmem:[%s4685_s1 + $0x6e0] ss:$16 sps:$4 sm:$0xff]  }
  0x24   :  { %1703 = vmatpush2.bf16.msra.mxu1 %v3080_v35  ;;  %1663 = vmatprep.subr.bf16.mxu0 %v3081_v39  ;;  %v3131_v22 = vld [vmem:[%s4685_s1 + $0x4c4] ss:$16 sps:$4 sm:$0xff]   ;;  %v3129_v25 = vld [vmem:[%s4685_s1 + $0x4c0] ss:$16 sps:$4 sm:$0xff]  }
  0x25   :  { %1704 = vmatprep.subr.bf16.mxu1 %v3083_v40  ;;  %v3134_v23 = vld [vmem:[%s4685_s1 + $0x6c4] ss:$16 sps:$4 sm:$0xff]   ;;  %v3132_v26 = vld [vmem:[%s4685_s1 + $0x6c0] ss:$16 sps:$4 sm:$0xff]  }
  0x26   :  { %v3137_v27 = vld [vmem:[%s4685_s1 + $0x4a4] ss:$16 sps:$4 sm:$0xff]   ;;  %v3135_v29 = vld [vmem:[%s4685_s1 + $0x4a0] ss:$16 sps:$4 sm:$0xff]  }
  0x27   :  { %1664 = vmatpush2.bf16.msra.mxu0 %v3085_v41  ;;  %v3140_v28 = vld [vmem:[%s4685_s1 + $0x6a4] ss:$16 sps:$4 sm:$0xff]   ;;  %v3138_v30 = vld [vmem:[%s4685_s1 + $0x6a0] ss:$16 sps:$4 sm:$0xff]  }
  0x28   :  { %1705 = vmatpush2.bf16.msra.mxu1 %v3086_v44  ;;  %1665 = vmatprep.subr.bf16.mxu0 %v3087_v45  ;;  %v3143_v31 = vld [vmem:[%s4685_s1 + $0x484] ss:$16 sps:$4 sm:$0xff]   ;;  %v3141_v33 = vld [vmem:[%s4685_s1 + $0x480] ss:$16 sps:$4 sm:$0xff]  }
  0x29   :  { %1706 = vmatprep.subr.bf16.mxu1 %v3089_v46  ;;  %v3146_v32 = vld [vmem:[%s4685_s1 + $0x684] ss:$16 sps:$4 sm:$0xff]   ;;  %v3144_v34 = vld [vmem:[%s4685_s1 + $0x680] ss:$16 sps:$4 sm:$0xff]  }
  0x2a   :  { %v3149_v35 = vld [vmem:[%s4685_s1 + $0x464] ss:$16 sps:$4 sm:$0xff]   ;;  %v3147_v37 = vld [vmem:[%s4685_s1 + $0x460] ss:$16 sps:$4 sm:$0xff]  }
  0x2b   :  { %1666 = vmatpush2.bf16.msra.mxu0 %v3091_v47  ;;  %v3152_v36 = vld [vmem:[%s4685_s1 + $0x664] ss:$16 sps:$4 sm:$0xff]   ;;  %v3150_v38 = vld [vmem:[%s4685_s1 + $0x660] ss:$16 sps:$4 sm:$0xff]  }
  0x2c   :  { %1707 = vmatpush2.bf16.msra.mxu1 %v3092_v48  ;;  %1667 = vmatprep.subr.bf16.mxu0 %v3093_v50  ;;  %v3155_v39 = vld [vmem:[%s4685_s1 + $0x444] ss:$16 sps:$4 sm:$0xff]   ;;  %v3153_v41 = vld [vmem:[%s4685_s1 + $0x440] ss:$16 sps:$4 sm:$0xff]  }
  0x2d   :  { %1708 = vmatprep.subr.bf16.mxu1 %v3095_v51  ;;  %v3158_v40 = vld [vmem:[%s4685_s1 + $0x644] ss:$16 sps:$4 sm:$0xff]   ;;  %v3156_v43 = vld [vmem:[%s4685_s1 + $0x640] ss:$16 sps:$4 sm:$0xff]  }
  0x2e   :  { %v3161_v44 = vld [vmem:[%s4685_s1 + $0x424] ss:$16 sps:$4 sm:$0xff]   ;;  %v3159_v46 = vld [vmem:[%s4685_s1 + $0x420] ss:$16 sps:$4 sm:$0xff]  }
  0x2f   :  { %1668 = vmatpush2.bf16.msra.mxu0 %v3097_v53  ;;  %v3164_v45 = vld [vmem:[%s4685_s1 + $0x624] ss:$16 sps:$4 sm:$0xff]   ;;  %v3162_v47 = vld [vmem:[%s4685_s1 + $0x620] ss:$16 sps:$4 sm:$0xff]  }
  0x30   :  { %1709 = vmatpush2.bf16.msra.mxu1 %v3098_v56  ;;  %1669 = vmatprep.subr.bf16.mxu0 %v3099_v57  ;;  %v3167_v48 = vld [vmem:[%s4685_s1 + $0x404] ss:$16 sps:$4 sm:$0xff]   ;;  %v3165_v50 = vld [vmem:[%s4685_s1 + $0x400] ss:$16 sps:$4 sm:$0xff]  }
  0x31   :  { %1710 = vmatprep.subr.bf16.mxu1 %v3101_v58  ;;  %v3170_v49 = vld [vmem:[%s4685_s1 + $0x604] ss:$16 sps:$4 sm:$0xff]   ;;  %v3168_v51 = vld [vmem:[%s4685_s1 + $0x600] ss:$16 sps:$4 sm:$0xff]  }
  0x32   :  { %v3173_v52 = vld [vmem:[%s4685_s1 + $0x5e4] ss:$16 sps:$4 sm:$0xff]   ;;  %v3171_v54 = vld [vmem:[%s4685_s1 + $0x5e0] ss:$16 sps:$4 sm:$0xff]  }
  0x33   :  { %1670 = vmatpush2.bf16.msra.mxu0 %v3103_v61  ;;  %v3176_v53 = vld [vmem:[%s4685_s1 + $0x7e4] ss:$16 sps:$4 sm:$0xff]   ;;  %v3174_v55 = vld [vmem:[%s4685_s1 + $0x7e0] ss:$16 sps:$4 sm:$0xff]  }
  0x34   :  { %1711 = vmatpush2.bf16.msra.mxu1 %v3104_v0  ;;  %1671 = vmatprep.subr.bf16.mxu0 %v3105_v1  ;;  %v3179_v56 = vld [vmem:[%s4685_s1 + $0x5c4] ss:$16 sps:$4 sm:$0xff]   ;;  %v3177_v58 = vld [vmem:[%s4685_s1 + $0x5c0] ss:$16 sps:$4 sm:$0xff]  }
  0x35   :  { %1712 = vmatprep.subr.bf16.mxu1 %v3107_v2  ;;  %v3182_v57 = vld [vmem:[%s4685_s1 + $0x7c4] ss:$16 sps:$4 sm:$0xff]   ;;  %v3180_v59 = vld [vmem:[%s4685_s1 + $0x7c0] ss:$16 sps:$4 sm:$0xff]  }
  0x36   :  { %v3185_v60 = vld [vmem:[%s4685_s1 + $0x5a4] ss:$16 sps:$4 sm:$0xff]   ;;  %v3183_v0 = vld [vmem:[%s4685_s1 + $0x5a0] ss:$16 sps:$4 sm:$0xff]  }
  0x37   :  { %1672 = vmatpush2.bf16.msra.mxu0 %v3109_v4  ;;  %v3188_v61 = vld [vmem:[%s4685_s1 + $0x7a4] ss:$16 sps:$4 sm:$0xff]   ;;  %v3186_v1 = vld [vmem:[%s4685_s1 + $0x7a0] ss:$16 sps:$4 sm:$0xff]  }
  0x38   :  { %1713 = vmatpush2.bf16.msra.mxu1 %v3110_v5  ;;  %1673 = vmatprep.subr.bf16.mxu0 %v3111_v6  ;;  %v3191_v2 = vld [vmem:[%s4685_s1 + $0x584] ss:$16 sps:$4 sm:$0xff]   ;;  %v3189_v5 = vld [vmem:[%s4685_s1 + $0x580] ss:$16 sps:$4 sm:$0xff]  }
  0x39   :  { %1714 = vmatprep.subr.bf16.mxu1 %v3113_v7  ;;  %v3194_v4 = vld [vmem:[%s4685_s1 + $0x784] ss:$16 sps:$4 sm:$0xff]   ;;  %v3192_v6 = vld [vmem:[%s4685_s1 + $0x780] ss:$16 sps:$4 sm:$0xff]  }
  0x3a   :  { %v3197_v7 = vld [vmem:[%s4685_s1 + $0x564] ss:$16 sps:$4 sm:$0xff]  }
  0x3b   :  { %1674 = vmatpush2.bf16.msra.mxu0 %v3115_v8  ;;  %v3200_v8 = vld [vmem:[%s4685_s1 + $0x764] ss:$16 sps:$4 sm:$0xff]  }
  0x3c   :  { %1715 = vmatpush2.bf16.msra.mxu1 %v3116_v9  ;;  %1675 = vmatprep.subr.bf16.mxu0 %v3117_v10  ;;  %v3195_v9 = vld [vmem:[%s4685_s1 + $0x560] ss:$16 sps:$4 sm:$0xff]   ;;  %v3206_v12 = vld [vmem:[%s4685_s1 + $0x744] ss:$16 sps:$4 sm:$0xff]  }
  0x3d   :  { %1716 = vmatprep.subr.bf16.mxu1 %v3119_v11  ;;  %v3198_v10 = vld [vmem:[%s4685_s1 + $0x760] ss:$16 sps:$4 sm:$0xff]   ;;  %v3203_v11 = vld [vmem:[%s4685_s1 + $0x544] ss:$16 sps:$4 sm:$0xff]  }
  0x3f   :  { %1676 = vmatpush2.bf16.msra.mxu0 %v3121_v13  ;;  %v3201_v13 = vld [vmem:[%s4685_s1 + $0x540] ss:$16 sps:$4 sm:$0xff]  }
  0x40   :  { %1717 = vmatpush2.bf16.msra.mxu1 %v3122_v15  ;;  %1727 = vmatprep.subr.bf16.mxu0 %v3125_v16  ;;  %v3204_v15 = vld [vmem:[%s4685_s1 + $0x740] ss:$16 sps:$4 sm:$0xff]   ;;  %v3209_v16 = vld [vmem:[%s4685_s1 + $0x524] ss:$16 sps:$4 sm:$0xff]  }
  0x41   :  { %1768 = vmatprep.subr.bf16.mxu1 %v3128_v17  ;;  %v3212_v17 = vld [vmem:[%s4685_s1 + $0x724] ss:$16 sps:$4 sm:$0xff]  }
  0x42   :  { %1678 = vmatmul.mubr.bf16.vlgmr.msra.gmra.mxu0 %v3793_v14 }
  0x43   :  { %1719 = vmatmul.mubr.bf16.vlgmr.msra.gmra.mxu1 %v3808_v19  ;;  %1728 = vmatpush1.bf16.msra.mxu0 %v3123_v20  ;;  %v3207_v20 = vld [vmem:[%s4685_s1 + $0x520] ss:$16 sps:$4 sm:$0xff]  }
  0x44   :  { %1769 = vmatpush1.bf16.msra.mxu1 %v3126_v21  ;;  %1729 = vmatprep.subr.bf16.mxu0 %v3131_v22  ;;  %v3210_v21 = vld [vmem:[%s4685_s1 + $0x720] ss:$16 sps:$4 sm:$0xff]   ;;  %v3215_v22 = vld [vmem:[%s4685_s1 + $0x504] ss:$16 sps:$4 sm:$0xff]  }
  0x45   :  { %1770 = vmatprep.subr.bf16.mxu1 %v3134_v23  ;;  %1759 = vmatprep.mubr.bf16.mxu0 %v3804_v18  ;;  %v3218_v23 = vld [vmem:[%s4685_s1 + $0x704] ss:$16 sps:$4 sm:$0xff]  }
  0x46   :  { %1800 = vmatprep.mubr.bf16.mxu1 %v3824_v24 }
  0x47   :  { %1730 = vmatpush1.bf16.msra.mxu0 %v3129_v25  ;;  %v3213_v25 = vld [vmem:[%s4685_s1 + $0x500] ss:$16 sps:$4 sm:$0xff]  }
  0x48   :  { %1771 = vmatpush1.bf16.msra.mxu1 %v3132_v26  ;;  %1731 = vmatprep.subr.bf16.mxu0 %v3137_v27  ;;  %v3216_v26 = vld [vmem:[%s4685_s1 + $0x700] ss:$16 sps:$4 sm:$0xff]   ;;  %v3222_v27 = vld [vmem:[%s4685_s1 + $0xec] ss:$16 sps:$4 sm:$0xff]  }
  0x49   :  { %1772 = vmatprep.subr.bf16.mxu1 %v3140_v28  ;;  %v3225_v28 = vld [vmem:[%s4685_s1 + $0x2ec] ss:$16 sps:$4 sm:$0xff]  }
  0x4b   :  { %1732 = vmatpush1.bf16.msra.mxu0 %v3135_v29  ;;  %v4012_v29 = vcombine.high %v3749_v63, %v3749_v63 }
  0x4c   :  { %1773 = vmatpush1.bf16.msra.mxu1 %v3138_v30  ;;  %1733 = vmatprep.subr.bf16.mxu0 %v3143_v31  ;;  %v3220_v30 = vld [vmem:[%s4685_s1 + $0xe8] ss:$16 sps:$4 sm:$0xff]  }
  0x4d   :  { %1774 = vmatprep.subr.bf16.mxu1 %v3146_v32  ;;  %v3223_v31 = vld [vmem:[%s4685_s1 + $0x2e8] ss:$16 sps:$4 sm:$0xff]   ;;  %v3228_v32 = vld [vmem:[%s4685_s1 + $0xcc] ss:$16 sps:$4 sm:$0xff]  }
  0x4f   :  { %1734 = vmatpush1.bf16.msra.mxu0 %v3141_v33  ;;  %v3231_v33 = vld [vmem:[%s4685_s1 + $0x2cc] ss:$16 sps:$4 sm:$0xff]  }
  0x50   :  { %1775 = vmatpush1.bf16.msra.mxu1 %v3144_v34  ;;  %1735 = vmatprep.subr.bf16.mxu0 %v3149_v35  ;;  %v3226_v34 = vld [vmem:[%s4685_s1 + $0xc8] ss:$16 sps:$4 sm:$0xff]  }
  0x51   :  { %1776 = vmatprep.subr.bf16.mxu1 %v3152_v36  ;;  %v3229_v35 = vld [vmem:[%s4685_s1 + $0x2c8] ss:$16 sps:$4 sm:$0xff]   ;;  %v3234_v36 = vld [vmem:[%s4685_s1 + $0xac] ss:$16 sps:$4 sm:$0xff]  }
  0x53   :  { %1736 = vmatpush1.bf16.msra.mxu0 %v3147_v37  ;;  %v3237_v37 = vld [vmem:[%s4685_s1 + $0x2ac] ss:$16 sps:$4 sm:$0xff]  }
  0x54   :  { %1777 = vmatpush1.bf16.msra.mxu1 %v3150_v38  ;;  %1737 = vmatprep.subr.bf16.mxu0 %v3155_v39  ;;  %v3232_v38 = vld [vmem:[%s4685_s1 + $0xa8] ss:$16 sps:$4 sm:$0xff]  }
  0x55   :  { %1778 = vmatprep.subr.bf16.mxu1 %v3158_v40  ;;  %v3235_v39 = vld [vmem:[%s4685_s1 + $0x2a8] ss:$16 sps:$4 sm:$0xff]   ;;  %v3240_v40 = vld [vmem:[%s4685_s1 + $0x8c] ss:$16 sps:$4 sm:$0xff]  }
  0x57   :  { %1738 = vmatpush1.bf16.msra.mxu0 %v3153_v41  ;;  %v3241_v41 = vld [vmem:[%s4685_s1 + $0x288] ss:$16 sps:$4 sm:$0xff]  }
  0x58   :  { %1779 = vmatpush1.bf16.msra.mxu1 %v3156_v43  ;;  %1739 = vmatprep.subr.bf16.mxu0 %v3161_v44  ;;  %v3246_v43 = vld [vmem:[%s4685_s1 + $0x6c] ss:$16 sps:$4 sm:$0xff]  }
  0x59   :  { %1780 = vmatprep.subr.bf16.mxu1 %v3164_v45  ;;  %v3249_v44 = vld [vmem:[%s4685_s1 + $0x26c] ss:$16 sps:$4 sm:$0xff]   ;;  %v3244_v45 = vld [vmem:[%s4685_s1 + $0x68] ss:$16 sps:$4 sm:$0xff]  }
  0x5b   :  { %1740 = vmatpush1.bf16.msra.mxu0 %v3159_v46  ;;  %v3247_v46 = vld [vmem:[%s4685_s1 + $0x268] ss:$16 sps:$4 sm:$0xff]  }
  0x5c   :  { %1781 = vmatpush1.bf16.msra.mxu1 %v3162_v47  ;;  %1741 = vmatprep.subr.bf16.mxu0 %v3167_v48  ;;  %v3252_v47 = vld [vmem:[%s4685_s1 + $0x4c] ss:$16 sps:$4 sm:$0xff]  }
  0x5d   :  { %1782 = vmatprep.subr.bf16.mxu1 %v3170_v49  ;;  %v3255_v48 = vld [vmem:[%s4685_s1 + $0x24c] ss:$16 sps:$4 sm:$0xff]   ;;  %v3250_v49 = vld [vmem:[%s4685_s1 + $0x48] ss:$16 sps:$4 sm:$0xff]  }
  0x5f   :  { %1742 = vmatpush1.bf16.msra.mxu0 %v3165_v50  ;;  %v3253_v50 = vld [vmem:[%s4685_s1 + $0x248] ss:$16 sps:$4 sm:$0xff]  }
  0x60   :  { %1783 = vmatpush1.bf16.msra.mxu1 %v3168_v51  ;;  %1743 = vmatprep.subr.bf16.mxu0 %v3173_v52  ;;  %v3258_v51 = vld [vmem:[%s4685_s1 + $0x2c] ss:$16 sps:$4 sm:$0xff]  }
  0x61   :  { %1784 = vmatprep.subr.bf16.mxu1 %v3176_v53  ;;  %v3261_v52 = vld [vmem:[%s4685_s1 + $0x22c] ss:$16 sps:$4 sm:$0xff]   ;;  %v3256_v53 = vld [vmem:[%s4685_s1 + $0x28] ss:$16 sps:$4 sm:$0xff]  }
  0x63   :  { %1744 = vmatpush2.bf16.msra.mxu0 %v3171_v54  ;;  %v3259_v54 = vld [vmem:[%s4685_s1 + $0x228] ss:$16 sps:$4 sm:$0xff]  }
  0x64   :  { %1785 = vmatpush2.bf16.msra.mxu1 %v3174_v55  ;;  %1745 = vmatprep.subr.bf16.mxu0 %v3179_v56  ;;  %v3264_v55 = vld [vmem:[%s4685_s1 + $0xc] ss:$16 sps:$4 sm:$0xff]  }
  0x65   :  { %1786 = vmatprep.subr.bf16.mxu1 %v3182_v57  ;;  %v3267_v56 = vld [vmem:[%s4685_s1 + $0x20c] ss:$16 sps:$4 sm:$0xff]   ;;  %v3262_v57 = vld [vmem:[%s4685_s1 + $0x8] ss:$16 sps:$4 sm:$0xff]  }
  0x67   :  { %1746 = vmatpush2.bf16.msra.mxu0 %v3177_v58  ;;  %v3265_v58 = vld [vmem:[%s4685_s1 + $0x208] ss:$16 sps:$4 sm:$0xff]  }
  0x68   :  { %1787 = vmatpush2.bf16.msra.mxu1 %v3180_v59  ;;  %1747 = vmatprep.subr.bf16.mxu0 %v3185_v60  ;;  %v3270_v59 = vld [vmem:[%s4685_s1 + $0x1ec] ss:$16 sps:$4 sm:$0xff]  }
  0x69   :  { %1788 = vmatprep.subr.bf16.mxu1 %v3188_v61  ;;  %v3273_v60 = vld [vmem:[%s4685_s1 + $0x3ec] ss:$16 sps:$4 sm:$0xff]   ;;  %v3268_v61 = vld [vmem:[%s4685_s1 + $0x1e8] ss:$16 sps:$4 sm:$0xff]  }
  0x6b   :  { %1748 = vmatpush2.bf16.msra.mxu0 %v3183_v0  ;;  %v3271_v0 = vld [vmem:[%s4685_s1 + $0x3e8] ss:$16 sps:$4 sm:$0xff]  }
  0x6c   :  { %1789 = vmatpush2.bf16.msra.mxu1 %v3186_v1  ;;  %1749 = vmatprep.subr.bf16.mxu0 %v3191_v2  ;;  %v3276_v1 = vld [vmem:[%s4685_s1 + $0x1cc] ss:$16 sps:$4 sm:$0xff]  }
  0x6d   :  { %1790 = vmatprep.subr.bf16.mxu1 %v3194_v4  ;;  %v3279_v2 = vld [vmem:[%s4685_s1 + $0x3cc] ss:$16 sps:$4 sm:$0xff]   ;;  %v3274_v4 = vld [vmem:[%s4685_s1 + $0x1c8] ss:$16 sps:$4 sm:$0xff]  }
  0x6f   :  { %1750 = vmatpush2.bf16.msra.mxu0 %v3189_v5  ;;  %v3277_v5 = vld [vmem:[%s4685_s1 + $0x3c8] ss:$16 sps:$4 sm:$0xff]  }
  0x70   :  { %1791 = vmatpush2.bf16.msra.mxu1 %v3192_v6  ;;  %1751 = vmatprep.subr.bf16.mxu0 %v3197_v7  ;;  %v3282_v6 = vld [vmem:[%s4685_s1 + $0x1ac] ss:$16 sps:$4 sm:$0xff]  }
  0x71   :  { %1792 = vmatprep.subr.bf16.mxu1 %v3200_v8  ;;  %v3285_v7 = vld [vmem:[%s4685_s1 + $0x3ac] ss:$16 sps:$4 sm:$0xff]   ;;  %v3280_v8 = vld [vmem:[%s4685_s1 + $0x1a8] ss:$16 sps:$4 sm:$0xff]  }
  0x73   :  { %1752 = vmatpush2.bf16.msra.mxu0 %v3195_v9  ;;  %v3283_v9 = vld [vmem:[%s4685_s1 + $0x3a8] ss:$16 sps:$4 sm:$0xff]  }
  0x74   :  { %1793 = vmatpush2.bf16.msra.mxu1 %v3198_v10  ;;  %1753 = vmatprep.subr.bf16.mxu0 %v3203_v11  ;;  %v3288_v10 = vld [vmem:[%s4685_s1 + $0x18c] ss:$16 sps:$4 sm:$0xff]  }
  0x75   :  { %1794 = vmatprep.subr.bf16.mxu1 %v3206_v12  ;;  %v3291_v11 = vld [vmem:[%s4685_s1 + $0x38c] ss:$16 sps:$4 sm:$0xff]   ;;  %v3286_v12 = vld [vmem:[%s4685_s1 + $0x188] ss:$16 sps:$4 sm:$0xff]  }
  0x77   :  { %1754 = vmatpush2.bf16.msra.mxu0 %v3201_v13  ;;  %v3289_v13 = vld [vmem:[%s4685_s1 + $0x388] ss:$16 sps:$4 sm:$0xff]  }
  0x78   :  { %1795 = vmatpush2.bf16.msra.mxu1 %v3204_v15  ;;  %1755 = vmatprep.subr.bf16.mxu0 %v3209_v16  ;;  %v3294_v15 = vld [vmem:[%s4685_s1 + $0x16c] ss:$16 sps:$4 sm:$0xff]  }
  0x79   :  { %1796 = vmatprep.subr.bf16.mxu1 %v3212_v17  ;;  %v3297_v16 = vld [vmem:[%s4685_s1 + $0x36c] ss:$16 sps:$4 sm:$0xff]   ;;  %v3292_v17 = vld [vmem:[%s4685_s1 + $0x168] ss:$16 sps:$4 sm:$0xff]  }
  0x7b   :  { %1756 = vmatpush2.bf16.msra.mxu0 %v3207_v20  ;;  %v3295_v20 = vld [vmem:[%s4685_s1 + $0x368] ss:$16 sps:$4 sm:$0xff]  }
  0x7c   :  { %1797 = vmatpush2.bf16.msra.mxu1 %v3210_v21  ;;  %1757 = vmatprep.subr.bf16.mxu0 %v3215_v22  ;;  %v3300_v21 = vld [vmem:[%s4685_s1 + $0x14c] ss:$16 sps:$4 sm:$0xff]  }
  0x7d   :  { %1798 = vmatprep.subr.bf16.mxu1 %v3218_v23  ;;  %v3303_v22 = vld [vmem:[%s4685_s1 + $0x34c] ss:$16 sps:$4 sm:$0xff]   ;;  %v3298_v23 = vld [vmem:[%s4685_s1 + $0x148] ss:$16 sps:$4 sm:$0xff]  }
  0x7f   :  { %1758 = vmatpush2.bf16.msra.mxu0 %v3213_v25  ;;  %v3301_v25 = vld [vmem:[%s4685_s1 + $0x348] ss:$16 sps:$4 sm:$0xff]  }
  0x80   :  { %1799 = vmatpush2.bf16.msra.mxu1 %v3216_v26  ;;  %1809 = vmatprep.subr.bf16.mxu0 %v3222_v27  ;;  %v3306_v26 = vld [vmem:[%s4685_s1 + $0x12c] ss:$16 sps:$4 sm:$0xff]  }
  0x81   :  { %1850 = vmatprep.subr.bf16.mxu1 %v3225_v28  ;;  %v3309_v27 = vld [vmem:[%s4685_s1 + $0x32c] ss:$16 sps:$4 sm:$0xff]   ;;  %v3304_v28 = vld [vmem:[%s4685_s1 + $0x128] ss:$16 sps:$4 sm:$0xff]  }
  0x82   :  { %1760 = vmatmul.mubr.bf16.vlgmr.msra.gmra.mxu0 %v3749_v63 }
  0x83   :  { %1801 = vmatmul.mubr.bf16.vlgmr.msra.gmra.mxu1 %v4012_v29  ;;  %1810 = vmatpush1.bf16.msra.mxu0 %v3220_v30  ;;  %v3307_v30 = vld [vmem:[%s4685_s1 + $0x328] ss:$16 sps:$4 sm:$0xff]  }
  0x84   :  { %1851 = vmatpush1.bf16.msra.mxu1 %v3223_v31  ;;  %1811 = vmatprep.subr.bf16.mxu0 %v3228_v32  ;;  %v3312_v31 = vld [vmem:[%s4685_s1 + $0x10c] ss:$16 sps:$4 sm:$0xff]  }
  0x85   :  { %1852 = vmatprep.subr.bf16.mxu1 %v3231_v33  ;;  %1841 = vmatprep.mubr.bf16.mxu0 %v3747_v62  ;;  %v3243_v62 = vld [vmem:[%s4685_s1 + $0x28c] ss:$16 sps:$4 sm:$0xff]   ;;  %v3310_v33 = vld [vmem:[%s4685_s1 + $0x108] ss:$16 sps:$4 sm:$0xff]  }
  0x86   :  { %1882 = vmatprep.mubr.bf16.mxu1 %v3762_v3  ;;  %v3238_v3 = vld [vmem:[%s4685_s1 + $0x88] ss:$16 sps:$4 sm:$0xff]   ;;  %v3315_v32 = vld [vmem:[%s4685_s1 + $0x30c] ss:$16 sps:$4 sm:$0xff]  }
  0x87   :  { %1812 = vmatpush1.bf16.msra.mxu0 %v3226_v34  ;;  %v3313_v34 = vld [vmem:[%s4685_s1 + $0x308] ss:$16 sps:$4 sm:$0xff]  }
  0x88   :  { %1853 = vmatpush1.bf16.msra.mxu1 %v3229_v35  ;;  %1813 = vmatprep.subr.bf16.mxu0 %v3234_v36  ;;  %v3318_v35 = vld [vmem:[%s4685_s1 + $0x4ec] ss:$16 sps:$4 sm:$0xff]  }
  0x89   :  { %1854 = vmatprep.subr.bf16.mxu1 %v3237_v37  ;;  %v3321_v36 = vld [vmem:[%s4685_s1 + $0x6ec] ss:$16 sps:$4 sm:$0xff]   ;;  %v3316_v37 = vld [vmem:[%s4685_s1 + $0x4e8] ss:$16 sps:$4 sm:$0xff]  }
  0x8b   :  { %1814 = vmatpush1.bf16.msra.mxu0 %v3232_v38  ;;  %v3319_v38 = vld [vmem:[%s4685_s1 + $0x6e8] ss:$16 sps:$4 sm:$0xff]  }
  0x8c   :  { %1855 = vmatpush1.bf16.msra.mxu1 %v3235_v39  ;;  %1815 = vmatprep.subr.bf16.mxu0 %v3240_v40  ;;  %v3324_v39 = vld [vmem:[%s4685_s1 + $0x4cc] ss:$16 sps:$4 sm:$0xff]  }
  0x8d   :  { %1856 = vmatprep.subr.bf16.mxu1 %v3243_v62  ;;  %v3327_v40 = vld [vmem:[%s4685_s1 + $0x6cc] ss:$16 sps:$4 sm:$0xff]   ;;  %v3322_v62 = vld [vmem:[%s4685_s1 + $0x4c8] ss:$16 sps:$4 sm:$0xff]  }
  0x8f   :  { %1816 = vmatpush1.bf16.msra.mxu0 %v3238_v3  ;;  %v3325_v3 = vld [vmem:[%s4685_s1 + $0x6c8] ss:$16 sps:$4 sm:$0xff]  }
  0x90   :  { %1857 = vmatpush1.bf16.msra.mxu1 %v3241_v41  ;;  %1817 = vmatprep.subr.bf16.mxu0 %v3246_v43  ;;  %v3330_v41 = vld [vmem:[%s4685_s1 + $0x4ac] ss:$16 sps:$4 sm:$0xff]  }
  0x91   :  { %1858 = vmatprep.subr.bf16.mxu1 %v3249_v44  ;;  %v3333_v43 = vld [vmem:[%s4685_s1 + $0x6ac] ss:$16 sps:$4 sm:$0xff]   ;;  %v3328_v44 = vld [vmem:[%s4685_s1 + $0x4a8] ss:$16 sps:$4 sm:$0xff]  }
  0x93   :  { %1818 = vmatpush1.bf16.msra.mxu0 %v3244_v45  ;;  %v3339_v45 = vld [vmem:[%s4685_s1 + $0x68c] ss:$16 sps:$4 sm:$0xff]  }
  0x94   :  { %1859 = vmatpush1.bf16.msra.mxu1 %v3247_v46  ;;  %1819 = vmatprep.subr.bf16.mxu0 %v3252_v47  ;;  %v3334_v46 = vld [vmem:[%s4685_s1 + $0x488] ss:$16 sps:$4 sm:$0xff]   ;;  %v3345_v47 = vld [vmem:[%s4685_s1 + $0x66c] ss:$16 sps:$4 sm:$0xff]  }
  0x95   :  { %1860 = vmatprep.subr.bf16.mxu1 %v3255_v48  ;;  %v3340_v48 = vld [vmem:[%s4685_s1 + $0x468] ss:$16 sps:$4 sm:$0xff]  }
  0x97   :  { %1820 = vmatpush1.bf16.msra.mxu0 %v3250_v49  ;;  %v3343_v49 = vld [vmem:[%s4685_s1 + $0x668] ss:$16 sps:$4 sm:$0xff]  }
  0x98   :  { %1861 = vmatpush1.bf16.msra.mxu1 %v3253_v50  ;;  %1821 = vmatprep.subr.bf16.mxu0 %v3258_v51  ;;  %v3348_v50 = vld [vmem:[%s4685_s1 + $0x44c] ss:$16 sps:$4 sm:$0xff]  }
  0x99   :  { %1862 = vmatprep.subr.bf16.mxu1 %v3261_v52  ;;  %v3351_v51 = vld [vmem:[%s4685_s1 + $0x64c] ss:$16 sps:$4 sm:$0xff]   ;;  %v3346_v52 = vld [vmem:[%s4685_s1 + $0x448] ss:$16 sps:$4 sm:$0xff]  }
  0x9b   :  { %1822 = vmatpush1.bf16.msra.mxu0 %v3256_v53  ;;  %v3349_v53 = vld [vmem:[%s4685_s1 + $0x648] ss:$16 sps:$4 sm:$0xff]  }
  0x9c   :  { %1863 = vmatpush1.bf16.msra.mxu1 %v3259_v54  ;;  %1823 = vmatprep.subr.bf16.mxu0 %v3264_v55  ;;  %v3354_v54 = vld [vmem:[%s4685_s1 + $0x42c] ss:$16 sps:$4 sm:$0xff]  }
  0x9d   :  { %1864 = vmatprep.subr.bf16.mxu1 %v3267_v56  ;;  %v3357_v55 = vld [vmem:[%s4685_s1 + $0x62c] ss:$16 sps:$4 sm:$0xff]  }
  0x9f   :  { %1824 = vmatpush1.bf16.msra.mxu0 %v3262_v57 }
  0xa0   :  { %1865 = vmatpush1.bf16.msra.mxu1 %v3265_v58  ;;  %1825 = vmatprep.subr.bf16.mxu0 %v3270_v59 }
  0xa1   :  { %1866 = vmatprep.subr.bf16.mxu1 %v3273_v60 }
  0xa3   :  { %1826 = vmatpush2.bf16.msra.mxu0 %v3268_v61 }
  0xa4   :  { %1867 = vmatpush2.bf16.msra.mxu1 %v3271_v0  ;;  %1827 = vmatprep.subr.bf16.mxu0 %v3276_v1 }
  0xa5   :  { %1868 = vmatprep.subr.bf16.mxu1 %v3279_v2 }
  0xa7   :  { %1828 = vmatpush2.bf16.msra.mxu0 %v3274_v4 }
  0xa8   :  { %1869 = vmatpush2.bf16.msra.mxu1 %v3277_v5  ;;  %1829 = vmatprep.subr.bf16.mxu0 %v3282_v6 }
  0xa9   :  { %1870 = vmatprep.subr.bf16.mxu1 %v3285_v7 }
  0xab   :  { %1830 = vmatpush2.bf16.msra.mxu0 %v3280_v8 }
  0xac   :  { %1871 = vmatpush2.bf16.msra.mxu1 %v3283_v9  ;;  %1831 = vmatprep.subr.bf16.mxu0 %v3288_v10 }
  0xad   :  { %1872 = vmatprep.subr.bf16.mxu1 %v3291_v11 }
  0xaf   :  { %1832 = vmatpush2.bf16.msra.mxu0 %v3286_v12 }
  0xb0   :  { %1873 = vmatpush2.bf16.msra.mxu1 %v3289_v13  ;;  %1833 = vmatprep.subr.bf16.mxu0 %v3294_v15 }
  0xb1   :  { %1874 = vmatprep.subr.bf16.mxu1 %v3297_v16 }
  0xb3   :  { %1834 = vmatpush2.bf16.msra.mxu0 %v3292_v17 }
  0xb4   :  { %1875 = vmatpush2.bf16.msra.mxu1 %v3295_v20  ;;  %1835 = vmatprep.subr.bf16.mxu0 %v3300_v21 }
  0xb5   :  { %1876 = vmatprep.subr.bf16.mxu1 %v3303_v22 }
  0xb7   :  { %1836 = vmatpush2.bf16.msra.mxu0 %v3298_v23 }
  0xb8   :  { %1877 = vmatpush2.bf16.msra.mxu1 %v3301_v25  ;;  %1837 = vmatprep.subr.bf16.mxu0 %v3306_v26 }
  0xb9   :  { %1878 = vmatprep.subr.bf16.mxu1 %v3309_v27 }
  0xbb   :  { %1838 = vmatpush2.bf16.msra.mxu0 %v3304_v28 }
  0xbc   :  { %1879 = vmatpush2.bf16.msra.mxu1 %v3307_v30  ;;  %1839 = vmatprep.subr.bf16.mxu0 %v3312_v31 }
  0xbd   :  { %1880 = vmatprep.subr.bf16.mxu1 %v3315_v32 }
  0xbf   :  { %1840 = vmatpush2.bf16.msra.mxu0 %v3310_v33 }
  0xc0   :  { %1881 = vmatpush2.bf16.msra.mxu1 %v3313_v34  ;;  %1891 = vmatprep.subr.bf16.mxu0 %v3318_v35 }
  0xc1   :  { %1932 = vmatprep.subr.bf16.mxu1 %v3321_v36 }
  0xc2   :  { %1842 = vmatmul.mubr.bf16.vlgmr.msra.gmra.mxu0 %v3793_v14  ;;  %v3331_v14 = vld [vmem:[%s4685_s1 + $0x6a8] ss:$16 sps:$4 sm:$0xff]  }
  0xc3   :  { %1883 = vmatmul.mubr.bf16.vlgmr.msra.gmra.mxu1 %v3808_v19  ;;  %1892 = vmatpush1.bf16.msra.mxu0 %v3316_v37  ;;  %v3336_v19 = vld [vmem:[%s4685_s1 + $0x48c] ss:$16 sps:$4 sm:$0xff]  }
  0xc4   :  { %1933 = vmatpush1.bf16.msra.mxu1 %v3319_v38  ;;  %1893 = vmatprep.subr.bf16.mxu0 %v3324_v39 }
  0xc5   :  { %1934 = vmatprep.subr.bf16.mxu1 %v3327_v40  ;;  %1923 = vmatprep.mubr.bf16.mxu0 %v3804_v18  ;;  %v3337_v18 = vld [vmem:[%s4685_s1 + $0x688] ss:$16 sps:$4 sm:$0xff]  }
  0xc6   :  { %1964 = vmatprep.mubr.bf16.mxu1 %v3824_v24  ;;  %v3342_v24 = vld [vmem:[%s4685_s1 + $0x46c] ss:$16 sps:$4 sm:$0xff]  }
  0xc7   :  { %1894 = vmatpush1.bf16.msra.mxu0 %v3322_v62 }
  0xc8   :  { %1935 = vmatpush1.bf16.msra.mxu1 %v3325_v3  ;;  %1895 = vmatprep.subr.bf16.mxu0 %v3330_v41 }
  0xc9   :  { %1936 = vmatprep.subr.bf16.mxu1 %v3333_v43 }
  0xcb   :  { %1896 = vmatpush1.bf16.msra.mxu0 %v3328_v44 }
  0xcc   :  { %1937 = vmatpush1.bf16.msra.mxu1 %v3331_v14  ;;  %1897 = vmatprep.subr.bf16.mxu0 %v3336_v19 }
  0xcd   :  { %1938 = vmatprep.subr.bf16.mxu1 %v3339_v45 }
  0xcf   :  { %1898 = vmatpush1.bf16.msra.mxu0 %v3334_v46 }
  0xd0   :  { %1939 = vmatpush1.bf16.msra.mxu1 %v3337_v18  ;;  %1899 = vmatprep.subr.bf16.mxu0 %v3342_v24 }
  0xd1   :  { %1940 = vmatprep.subr.bf16.mxu1 %v3345_v47 }
  0xd3   :  { %1900 = vmatpush1.bf16.msra.mxu0 %v3340_v48 }
  0xd4   :  { %1941 = vmatpush1.bf16.msra.mxu1 %v3343_v49  ;;  %1901 = vmatprep.subr.bf16.mxu0 %v3348_v50 }
  0xd5   :  { %1942 = vmatprep.subr.bf16.mxu1 %v3351_v51 }
  0xd6   :  { %12 = vsyncpa [#allocation3], 0  ;;  %v3352_v56 = vld [vmem:[%s4685_s1 + $0x428] ss:$16 sps:$4 sm:$0xff]   ;;  %v3360_v58 = vld [vmem:[%s4685_s1 + $0x40c] ss:$16 sps:$4 sm:$0xff]  }
  0xd7   :  { %1902 = vmatpush1.bf16.msra.mxu0 %v3346_v52  ;;  %v3355_v57 = vld [vmem:[%s4685_s1 + $0x628] ss:$16 sps:$4 sm:$0xff]   ;;  %v3363_v59 = vld [vmem:[%s4685_s1 + $0x60c] ss:$16 sps:$4 sm:$0xff]   ;;  %s3547_s23 = smov [#allocation2]   ;;  %vm2650_vm6 = vcmask 17408  }
  0xd8   :  { %1943 = vmatpush1.bf16.msra.mxu1 %v3349_v53  ;;  %1903 = vmatprep.subr.bf16.mxu0 %v3354_v54  ;;  %v3358_v60 = vld [vmem:[%s4685_s1 + $0x408] ss:$16 sps:$4 sm:$0xff]   ;;  %v3366_v0 = vld [vmem:[%s4685_s1 + $0x5ec] ss:$16 sps:$4 sm:$0xff]   ;;  %s2658_s24 = sshll.u32 %s3547_s23, 4  ;;  %s2659_s24 = int_to_ptr.vmem [resolvable:$true] %s2658_s24 }
  0xd9   :  { %1944 = vmatprep.subr.bf16.mxu1 %v3357_v55  ;;  %v3361_v61 = vld [vmem:[%s4685_s1 + $0x608] ss:$16 sps:$4 sm:$0xff]   ;;  %v3369_v1 = vld [vmem:[%s4685_s1 + $0x7ec] ss:$16 sps:$4 sm:$0xff]   ;;  %s3524_s25 = scalar_lea.vmem %s2659_s24, 32  ;;  %p3529_p1 = scmp.lt.s32.totalorder %s2659_s24, %s2659_s24 }
  0xda   :  { %v3364_v2 = vld [vmem:[%s4685_s1 + $0x5e8] ss:$16 sps:$4 sm:$0xff]   ;;  %v3372_v5 = vld [vmem:[%s4685_s1 + $0x5cc] ss:$16 sps:$4 sm:$0xff]   ;;  %p3525_p0 = scmp.ne.s32.totalorder %s2659_s24, %s3524_s25  ;;  %p3530_p2 = scmp.lt.s32.totalorder %s3524_s25, %s3524_s25 }
  0xdb   :  { %1904 = vmatpush1.bf16.msra.mxu0 %v3352_v56  ;;  %v3367_v4 = vld [vmem:[%s4685_s1 + $0x7e8] ss:$16 sps:$4 sm:$0xff]   ;;  %v3375_v6 = vld [vmem:[%s4685_s1 + $0x7cc] ss:$16 sps:$4 sm:$0xff]  }
  0xdc   :  { %1945 = vmatpush1.bf16.msra.mxu1 %v3355_v57  ;;  %1905 = vmatprep.subr.bf16.mxu0 %v3360_v58  ;;  %v3370_v7 = vld [vmem:[%s4685_s1 + $0x5c8] ss:$16 sps:$4 sm:$0xff]   ;;  %v3378_v9 = vld [vmem:[%s4685_s1 + $0x5ac] ss:$16 sps:$4 sm:$0xff]   ;;  %p3531_p3 = por %p3530_p2, %p3529_p1 }
  0xdd   :  { %1946 = vmatprep.subr.bf16.mxu1 %v3363_v59  ;;  %v3373_v8 = vld [vmem:[%s4685_s1 + $0x7c8] ss:$16 sps:$4 sm:$0xff]   ;;  %v3381_v10 = vld [vmem:[%s4685_s1 + $0x7ac] ss:$16 sps:$4 sm:$0xff]  }
  0xde   :  { %v3376_v11 = vld [vmem:[%s4685_s1 + $0x5a8] ss:$16 sps:$4 sm:$0xff]   ;;  %v3384_v13 = vld [vmem:[%s4685_s1 + $0x58c] ss:$16 sps:$4 sm:$0xff]   ;;  %p3532_p4 = pnand %p3531_p3, %p3525_p0 }
  0xdf   :  { %1906 = vmatpush1.bf16.msra.mxu0 %v3358_v60  ;;  %v3379_v12 = vld [vmem:[%s4685_s1 + $0x7a8] ss:$16 sps:$4 sm:$0xff]   ;;  %v3387_v15 = vld [vmem:[%s4685_s1 + $0x78c] ss:$16 sps:$4 sm:$0xff]  }
  0xe0   :  { %1947 = vmatpush1.bf16.msra.mxu1 %v3361_v61  ;;  %1907 = vmatprep.subr.bf16.mxu0 %v3366_v0  ;;  %v3382_v16 = vld [vmem:[%s4685_s1 + $0x588] ss:$16 sps:$4 sm:$0xff]   ;;  %v3390_v20 = vld [vmem:[%s4685_s1 + $0x56c] ss:$16 sps:$4 sm:$0xff]  }
  0xe1   :  { %1948 = vmatprep.subr.bf16.mxu1 %v3369_v1  ;;  %v3385_v17 = vld [vmem:[%s4685_s1 + $0x788] ss:$16 sps:$4 sm:$0xff]   ;;  %v3393_v21 = vld [vmem:[%s4685_s1 + $0x76c] ss:$16 sps:$4 sm:$0xff]  }
  0xe2   :  { %v3388_v22 = vld [vmem:[%s4685_s1 + $0x568] ss:$16 sps:$4 sm:$0xff]   ;;  %v3396_v25 = vld [vmem:[%s4685_s1 + $0x54c] ss:$16 sps:$4 sm:$0xff]  }
  0xe3   :  { %1908 = vmatpush2.bf16.msra.mxu0 %v3364_v2  ;;  %v3391_v23 = vld [vmem:[%s4685_s1 + $0x768] ss:$16 sps:$4 sm:$0xff]   ;;  %v3399_v26 = vld [vmem:[%s4685_s1 + $0x74c] ss:$16 sps:$4 sm:$0xff]  }
  0xe4   :  { %1949 = vmatpush2.bf16.msra.mxu1 %v3367_v4  ;;  %1909 = vmatprep.subr.bf16.mxu0 %v3372_v5  ;;  %v3394_v27 = vld [vmem:[%s4685_s1 + $0x548] ss:$16 sps:$4 sm:$0xff]   ;;  %v3402_v30 = vld [vmem:[%s4685_s1 + $0x52c] ss:$16 sps:$4 sm:$0xff]  }
  0xe5   :  { %1950 = vmatprep.subr.bf16.mxu1 %v3375_v6  ;;  %v3397_v28 = vld [vmem:[%s4685_s1 + $0x748] ss:$16 sps:$4 sm:$0xff]   ;;  %v3405_v31 = vld [vmem:[%s4685_s1 + $0x72c] ss:$16 sps:$4 sm:$0xff]  }
  0xe6   :  { %v3400_v32 = vld [vmem:[%s4685_s1 + $0x528] ss:$16 sps:$4 sm:$0xff]   ;;  %v3408_v34 = vld [vmem:[%s4685_s1 + $0x50c] ss:$16 sps:$4 sm:$0xff]  }
  0xe7   :  { %1910 = vmatpush2.bf16.msra.mxu0 %v3370_v7  ;;  %v3403_v33 = vld [vmem:[%s4685_s1 + $0x728] ss:$16 sps:$4 sm:$0xff]   ;;  %v3411_v35 = vld [vmem:[%s4685_s1 + $0x70c] ss:$16 sps:$4 sm:$0xff]  }
  0xe8   :  { %1951 = vmatpush2.bf16.msra.mxu1 %v3373_v8  ;;  %1911 = vmatprep.subr.bf16.mxu0 %v3378_v9  ;;  %v3406_v36 = vld [vmem:[%s4685_s1 + $0x508] ss:$16 sps:$4 sm:$0xff]   ;;  %v3414_v38 = vld [vmem:[%s4687_s3 + $0x74] ss:$8 sps:$4 sm:$0xff]   ;;  %v3417_v40 = vld [vmem:[%s4687_s3 + $0x64] ss:$8 sps:$4 sm:$0xff]  }
  0xe9   :  { %1952 = vmatprep.subr.bf16.mxu1 %v3381_v10  ;;  %v3409_v37 = vld [vmem:[%s4685_s1 + $0x708] ss:$16 sps:$4 sm:$0xff]   ;;  %v3420_v14 = vld [vmem:[%s4687_s3 + $0x54] ss:$8 sps:$4 sm:$0xff]   ;;  %v3423_v18 = vld [vmem:[%s4687_s3 + $0x44] ss:$8 sps:$4 sm:$0xff]  }
  0xea   :  { %v3412_v39 = vld [vmem:[%s4687_s3 + $0x70] ss:$8 sps:$4 sm:$0xff]   ;;  %v3415_v41 = vld [vmem:[%s4687_s3 + $0x60] ss:$8 sps:$4 sm:$0xff]   ;;  %v3462_v47 = vld [vmem:[%s4687_s3 + $0x174] ss:$8 sps:$4 sm:$0xff]  }
  0xeb   :  { %1912 = vmatpush2.bf16.msra.mxu0 %v3376_v11  ;;  %v3460_v24 = vld [vmem:[%s4687_s3 + $0x170] ss:$8 sps:$4 sm:$0xff]   ;;  %v3465_v48 = vld [vmem:[%s4687_s3 + $0x164] ss:$8 sps:$4 sm:$0xff]   ;;  %v3421_v49 = vld [vmem:[%s4687_s3 + $0x40] ss:$8 sps:$4 sm:$0xff]  }
  0xec   :  { %1953 = vmatpush2.bf16.msra.mxu1 %v3379_v12  ;;  %1913 = vmatprep.subr.bf16.mxu0 %v3384_v13  ;;  %v3463_v50 = vld [vmem:[%s4687_s3 + $0x160] ss:$8 sps:$4 sm:$0xff]   ;;  %v3426_v51 = vld [vmem:[%s4687_s3 + $0x34] ss:$8 sps:$4 sm:$0xff]   ;;  %v3424_v53 = vld [vmem:[%s4687_s3 + $0x30] ss:$8 sps:$4 sm:$0xff]  }
  0xed   :  { %1954 = vmatprep.subr.bf16.mxu1 %v3387_v15  ;;  %v3468_v52 = vld [vmem:[%s4687_s3 + $0x154] ss:$8 sps:$4 sm:$0xff]   ;;  %v3466_v54 = vld [vmem:[%s4687_s3 + $0x150] ss:$8 sps:$4 sm:$0xff]   ;;  %v3429_v55 = vld [vmem:[%s4687_s3 + $0x24] ss:$8 sps:$4 sm:$0xff]  }
  0xee   :  { %v3471_v56 = vld [vmem:[%s4687_s3 + $0x144] ss:$8 sps:$4 sm:$0xff]   ;;  %v3427_v57 = vld [vmem:[%s4687_s3 + $0x20] ss:$8 sps:$4 sm:$0xff]   ;;  %v3432_v59 = vld [vmem:[%s4687_s3 + $0x14] ss:$8 sps:$4 sm:$0xff]  }
  0xef   :  { %1914 = vmatpush2.bf16.msra.mxu0 %v3382_v16  ;;  %v3469_v58 = vld [vmem:[%s4687_s3 + $0x140] ss:$8 sps:$4 sm:$0xff]   ;;  %v3474_v60 = vld [vmem:[%s4687_s3 + $0x134] ss:$8 sps:$4 sm:$0xff]   ;;  %v3430_v61 = vld [vmem:[%s4687_s3 + $0x10] ss:$8 sps:$4 sm:$0xff]  }
  0xf0   :  { %1955 = vmatpush2.bf16.msra.mxu1 %v3385_v17  ;;  %1915 = vmatprep.subr.bf16.mxu0 %v3390_v20  ;;  %v3472_v0 = vld [vmem:[%s4687_s3 + $0x130] ss:$8 sps:$4 sm:$0xff]   ;;  %v3435_v1 = vld [vmem:[%s4687_s3 + $0x4] ss:$8 sps:$4 sm:$0xff]   ;;  %v3433_v4 = vld [vmem:[%s4687_s3] ss:$8 sps:$4 sm:$0xff]  }
  0xf1   :  { %1956 = vmatprep.subr.bf16.mxu1 %v3393_v21  ;;  %v3477_v2 = vld [vmem:[%s4687_s3 + $0x124] ss:$8 sps:$4 sm:$0xff]   ;;  %v3475_v5 = vld [vmem:[%s4687_s3 + $0x120] ss:$8 sps:$4 sm:$0xff]   ;;  %v3438_v6 = vld [vmem:[%s4687_s3 + $0xf4] ss:$8 sps:$4 sm:$0xff]  }
  0xf2   :  { %v3480_v7 = vld [vmem:[%s4687_s3 + $0x114] ss:$8 sps:$4 sm:$0xff]   ;;  %v3436_v8 = vld [vmem:[%s4687_s3 + $0xf0] ss:$8 sps:$4 sm:$0xff]   ;;  %v3441_v10 = vld [vmem:[%s4687_s3 + $0xe4] ss:$8 sps:$4 sm:$0xff]  }
  0xf3   :  { %1916 = vmatpush2.bf16.msra.mxu0 %v3388_v22  ;;  %v3478_v9 = vld [vmem:[%s4687_s3 + $0x110] ss:$8 sps:$4 sm:$0xff]   ;;  %v3483_v11 = vld [vmem:[%s4687_s3 + $0x104] ss:$8 sps:$4 sm:$0xff]   ;;  %v3439_v12 = vld [vmem:[%s4687_s3 + $0xe0] ss:$8 sps:$4 sm:$0xff]  }
  0xf4   :  { %1957 = vmatpush2.bf16.msra.mxu1 %v3391_v23  ;;  %1917 = vmatprep.subr.bf16.mxu0 %v3396_v25  ;;  %v3481_v13 = vld [vmem:[%s4687_s3 + $0x100] ss:$8 sps:$4 sm:$0xff]   ;;  %v3444_v15 = vld [vmem:[%s4687_s3 + $0xd4] ss:$8 sps:$4 sm:$0xff]   ;;  %v3442_v17 = vld [vmem:[%s4687_s3 + $0xd0] ss:$8 sps:$4 sm:$0xff]  }
  0xf5   :  { %1958 = vmatprep.subr.bf16.mxu1 %v3399_v26  ;;  %v3486_v16 = vld [vmem:[%s4687_s3 + $0x1f4] ss:$8 sps:$4 sm:$0xff]   ;;  %v3484_v20 = vld [vmem:[%s4687_s3 + $0x1f0] ss:$8 sps:$4 sm:$0xff]   ;;  %v3447_v21 = vld [vmem:[%s4687_s3 + $0xc4] ss:$8 sps:$4 sm:$0xff]  }
  0xf6   :  { %v3489_v22 = vld [vmem:[%s4687_s3 + $0x1e4] ss:$8 sps:$4 sm:$0xff]   ;;  %v3445_v23 = vld [vmem:[%s4687_s3 + $0xc0] ss:$8 sps:$4 sm:$0xff]   ;;  %v3450_v26 = vld [vmem:[%s4687_s3 + $0xb4] ss:$8 sps:$4 sm:$0xff]  }
  0xf7   :  { %1918 = vmatpush2.bf16.msra.mxu0 %v3394_v27  ;;  %v3487_v25 = vld [vmem:[%s4687_s3 + $0x1e0] ss:$8 sps:$4 sm:$0xff]   ;;  %v3492_v27 = vld [vmem:[%s4687_s3 + $0x1d4] ss:$8 sps:$4 sm:$0xff]  }
  0xf8   :  { %1959 = vmatpush2.bf16.msra.mxu1 %v3397_v28  ;;  %1919 = vmatprep.subr.bf16.mxu0 %v3402_v30  ;;  %v3448_v28 = vld [vmem:[%s4687_s3 + $0xb0] ss:$8 sps:$4 sm:$0xff]  }
  0xf9   :  { %1960 = vmatprep.subr.bf16.mxu1 %v3405_v31  ;;  %v3490_v30 = vld [vmem:[%s4687_s3 + $0x1d0] ss:$8 sps:$4 sm:$0xff]   ;;  %v3453_v31 = vld [vmem:[%s4687_s3 + $0xa4] ss:$8 sps:$4 sm:$0xff]  }
  0xfb   :  { %1920 = vmatpush2.bf16.msra.mxu0 %v3400_v32  ;;  %v3495_v32 = vld [vmem:[%s4687_s3 + $0x1c4] ss:$8 sps:$4 sm:$0xff]  }
  0xfc   :  { %1961 = vmatpush2.bf16.msra.mxu1 %v3403_v33  ;;  %1921 = vmatprep.subr.bf16.mxu0 %v3408_v34  ;;  %v3451_v33 = vld [vmem:[%s4687_s3 + $0xa0] ss:$8 sps:$4 sm:$0xff]  }
  0xfd   :  { %1962 = vmatprep.subr.bf16.mxu1 %v3411_v35  ;;  %v3493_v34 = vld [vmem:[%s4687_s3 + $0x1c0] ss:$8 sps:$4 sm:$0xff]   ;;  %v3456_v35 = vld [vmem:[%s4687_s3 + $0x94] ss:$8 sps:$4 sm:$0xff]  }
  0xff   :  { %1922 = vmatpush2.bf16.msra.mxu0 %v3406_v36  ;;  %v3498_v36 = vld [vmem:[%s4687_s3 + $0x1b4] ss:$8 sps:$4 sm:$0xff]  }
 0x100   :  { %1963 = vmatpush2.bf16.msra.mxu1 %v3409_v37  ;;  %2385 = vmatprep.subr.bf16.mxu0 %v3414_v38  ;;  %v289_v37 = vsub.s32 0, %v3705_v42  ;;  %v4576_v38 = vld [vmem:[%s4686_s2] sm:$0xf] }
 0x101   :  { %2426 = vmatprep.subr.bf16.mxu1 %v3462_v47 }
 0x102   :  { %v4409_v62 = vpop.f32.mrf.mxu0  ;;  %1924 = vmatmul.mubr.bf16.vlgmr.msra.gmra.mxu0 %v3749_v63  ;;  %v3418_v63 = vld [vmem:[%s4687_s3 + $0x50] ss:$8 sps:$4 sm:$0xff]  }
 0x103   :  { %v4411_v3 = vpop.f32.mrf.mxu1  ;;  %1965 = vmatmul.mubr.bf16.vlgmr.msra.gmra.mxu1 %v4012_v29  ;;  %2386 = vmatpush1.bf16.msra.mxu0 %v3412_v39  ;;  %v293_v39 = vsub.s32 1, %v3705_v42 }
 0x104   :  { %v4418_v43 = vpop.f32.mrf.mxu0  ;;  %2387 = vmatprep.subr.bf16.mxu0 %v3417_v40  ;;  %2427 = vmatpush1.bf16.msra.mxu1 %v3460_v24  ;;  %v3454_v40 = vld [vmem:[%s4687_s3 + $0x90] ss:$8 sps:$4 sm:$0xff]   ;;  %v3501_v24 = vld [vmem:[%s4687_s3 + $0x1a4] ss:$8 sps:$4 sm:$0xff]  }
 0x105   :  { %v4420_v44 = vpop.f32.mrf.mxu1  ;;  %2428 = vmatprep.subr.bf16.mxu1 %v3465_v48 }
 0x106   :  { %v1683_v19 = vpop.f32.mrf.mxu0 }
 0x107   :  { %v1724_v45 = vpop.f32.mrf.mxu1  ;;  %2388 = vmatpush1.bf16.msra.mxu0 %v3415_v41  ;;  %v3496_v41 = vld [vmem:[%s4687_s3 + $0x1b0] ss:$8 sps:$4 sm:$0xff]   ;;  %v290_v19 = vrot.slane %v4576_v38, %v289_v37 }
 0x108   :  { %v1684_v29 = vpop.f32.mrf.mxu0  ;;  %2389 = vmatprep.subr.bf16.mxu0 %v3420_v14  ;;  %2429 = vmatpush1.bf16.msra.mxu1 %v3463_v50  ;;  %v3459_v14 = vld [vmem:[%s4687_s3 + $0x84] ss:$8 sps:$4 sm:$0xff]   ;;  %v294_v45 = vrot.slane %v4576_v38, %v293_v39 }
 0x109   :  { %v1725_v46 = vpop.f32.mrf.mxu1  ;;  %2430 = vmatprep.subr.bf16.mxu1 %v3468_v52  ;;  %v1680_v29 = vadd.f32 %v4409_v62, %v290_v19 }
 0x10a   :  { %v1682_v46 = vadd.f32 %v4418_v43, %v294_v45 }
 0x10b   :  { %2390 = vmatpush1.bf16.msra.mxu0 %v3418_v63  ;;  %v3457_v63 = vld [vmem:[%s4687_s3 + $0x80] ss:$8 sps:$4 sm:$0xff]  }
 0x10c   :  { %2391 = vmatprep.subr.bf16.mxu0 %v3423_v18  ;;  %2431 = vmatpush1.bf16.msra.mxu1 %v3466_v54  ;;  %v1721_v18 = vadd.f32 %v4411_v3, %v1680_v29  ;;  %v1723_v50 = vadd.f32 %v4420_v44, %v1682_v46  ;;  %v3504_v3 = vld [vmem:[%s4687_s3 + $0x194] ss:$8 sps:$4 sm:$0xff]  }
 0x10d   :  { %2432 = vmatprep.subr.bf16.mxu1 %v3471_v56  ;;  %v3502_v56 = vld [vmem:[%s4687_s3 + $0x190] ss:$8 sps:$4 sm:$0xff]  }
 0x10f   :  { %2392 = vmatpush1.bf16.msra.mxu0 %v3421_v49  ;;  %v3499_v49 = vld [vmem:[%s4687_s3 + $0x1a0] ss:$8 sps:$4 sm:$0xff]  }
 0x110   :  { %2393 = vmatprep.subr.bf16.mxu0 %v3426_v51  ;;  %2433 = vmatpush1.bf16.msra.mxu1 %v3469_v58 }
 0x111   :  { %2434 = vmatprep.subr.bf16.mxu1 %v3474_v60 }
 0x113   :  { %2394 = vmatpush1.bf16.msra.mxu0 %v3424_v53 }
 0x114   :  { %2395 = vmatprep.subr.bf16.mxu0 %v3429_v55  ;;  %2435 = vmatpush1.bf16.msra.mxu1 %v3472_v0 }
 0x115   :  { %2436 = vmatprep.subr.bf16.mxu1 %v3477_v2 }
 0x117   :  { %2396 = vmatpush1.bf16.msra.mxu0 %v3427_v57 }
 0x118   :  { %2397 = vmatprep.subr.bf16.mxu0 %v3432_v59  ;;  %2437 = vmatpush1.bf16.msra.mxu1 %v3475_v5 }
 0x119   :  { %2438 = vmatprep.subr.bf16.mxu1 %v3480_v7 }
 0x11b   :  { %2398 = vmatpush1.bf16.msra.mxu0 %v3430_v61  ;;  %v3507_v61 = vld [vmem:[%s4687_s3 + $0x184] ss:$8 sps:$4 sm:$0xff]  }
 0x11c   :  { %2399 = vmatprep.subr.bf16.mxu0 %v3435_v1  ;;  %2439 = vmatpush1.bf16.msra.mxu1 %v3478_v9  ;;  %v3505_v1 = vld [vmem:[%s4687_s3 + $0x180] ss:$8 sps:$4 sm:$0xff]  }
 0x11d   :  { %2440 = vmatprep.subr.bf16.mxu1 %v3483_v11 }
 0x11f   :  { %2400 = vmatpush1.bf16.msra.mxu0 %v3433_v4 }
 0x120   :  { %2401 = vmatprep.subr.bf16.mxu0 %v3438_v6  ;;  %2441 = vmatpush1.bf16.msra.mxu1 %v3481_v13 }
 0x121   :  { %2442 = vmatprep.subr.bf16.mxu1 %v3486_v16  ;;  %v3509_v16 = vld [vmem:[%s4689_s5 + $0x38] sm:$0xff]  }
 0x123   :  { %2402 = vmatpush2.bf16.msra.mxu0 %v3436_v8 }
 0x124   :  { %2403 = vmatprep.subr.bf16.mxu0 %v3441_v10  ;;  %2443 = vmatpush2.bf16.msra.mxu1 %v3484_v20  ;;  %v3511_v20 = vld [vmem:[%s4689_s5 + $0x30] sm:$0xff]  }
 0x125   :  { %2444 = vmatprep.subr.bf16.mxu1 %v3489_v22  ;;  %v3513_v22 = vld [vmem:[%s4689_s5 + $0x28] sm:$0xff]  }
 0x127   :  { %2404 = vmatpush2.bf16.msra.mxu0 %v3439_v12 }
 0x128   :  { %2405 = vmatprep.subr.bf16.mxu0 %v3444_v15  ;;  %2445 = vmatpush2.bf16.msra.mxu1 %v3487_v25  ;;  %v3508_v15 = vld [vmem:[%s4689_s5 + $0x78] sm:$0xff]   ;;  %v3515_v25 = vld [vmem:[%s4689_s5 + $0x20] sm:$0xff]  }
 0x129   :  { %2446 = vmatprep.subr.bf16.mxu1 %v3492_v27  ;;  %v3517_v27 = vld [vmem:[%s4689_s5 + $0x18] sm:$0xff]  }
 0x12b   :  { %2406 = vmatpush2.bf16.msra.mxu0 %v3442_v17  ;;  %v3510_v17 = vld [vmem:[%s4689_s5 + $0x70] sm:$0xff]  }
 0x12c   :  { %2407 = vmatprep.subr.bf16.mxu0 %v3447_v21  ;;  %2447 = vmatpush2.bf16.msra.mxu1 %v3490_v30  ;;  %v3512_v21 = vld [vmem:[%s4689_s5 + $0x68] sm:$0xff]   ;;  %v297_v30 = vsub.s32 2, %v3705_v42 }
 0x12d   :  { %2448 = vmatprep.subr.bf16.mxu1 %v3495_v32 }
 0x12e   :  { %v298_v32 = vrot.slane %v4576_v38, %v297_v30 }
 0x12f   :  { %2408 = vmatpush2.bf16.msra.mxu0 %v3445_v23  ;;  %v3514_v23 = vld [vmem:[%s4689_s5 + $0x60] sm:$0xff]  }
 0x130   :  { %2409 = vmatprep.subr.bf16.mxu0 %v3450_v26  ;;  %2449 = vmatpush2.bf16.msra.mxu1 %v3493_v34  ;;  %v3516_v26 = vld [vmem:[%s4689_s5 + $0x58] sm:$0xff]  }
 0x131   :  { %2450 = vmatprep.subr.bf16.mxu1 %v3498_v36 }
 0x133   :  { %2410 = vmatpush2.bf16.msra.mxu0 %v3448_v28  ;;  %v3518_v28 = vld [vmem:[%s4689_s5 + $0x50] sm:$0xff]  }
 0x134   :  { %2411 = vmatprep.subr.bf16.mxu0 %v3453_v31  ;;  %2451 = vmatpush2.bf16.msra.mxu1 %v3496_v41  ;;  %v301_v31 = vsub.s32 3, %v3705_v42 }
 0x135   :  { %2452 = vmatprep.subr.bf16.mxu1 %v3501_v24 }
 0x137   :  { %2412 = vmatpush2.bf16.msra.mxu0 %v3451_v33  ;;  %v302_v33 = vrot.slane %v4576_v38, %v301_v31 }
 0x138   :  { %2413 = vmatprep.subr.bf16.mxu0 %v3456_v35  ;;  %2453 = vmatpush2.bf16.msra.mxu1 %v3499_v49 }
 0x139   :  { %2454 = vmatprep.subr.bf16.mxu1 %v3504_v3 }
 0x13b   :  { %2414 = vmatpush2.bf16.msra.mxu0 %v3454_v40 }
 0x13c   :  { %2415 = vmatprep.subr.bf16.mxu0 %v3459_v14  ;;  %2455 = vmatpush2.bf16.msra.mxu1 %v3502_v56  ;;  %v3521_v56 = vld [vmem:[%s4689_s5 + $0x8] sm:$0xff]  }
 0x13d   :  { %2456 = vmatprep.subr.bf16.mxu1 %v3507_v61 }
 0x13f   :  { %2416 = vmatpush2.bf16.msra.mxu0 %v3457_v63 }
 0x140   :  { %2457 = vmatpush2.bf16.msra.mxu1 %v3505_v1  ;;  %3003 = vmatprep.subr.bf16.mxu0 %v3508_v15 }
 0x142   :  { %v1761_v47 = vpop.f32.mrf.mxu0 }
 0x143   :  { %v1802_v48 = vpop.f32.mrf.mxu1  ;;  %v1762_v51 = vadd.f32 %v1761_v47, %v1721_v18 }
 0x144   :  { %v1763_v62 = vpop.f32.mrf.mxu0 }
 0x145   :  { %v1804_v52 = vpop.f32.mrf.mxu1  ;;  %v1803_v43 = vadd.f32 %v1802_v48, %v1762_v51  ;;  %v1764_v53 = vadd.f32 %v1763_v62, %v1723_v50 }
 0x146   :  { %v1765_v54 = vpop.f32.mrf.mxu0 }
 0x147   :  { %v1806_v55 = vpop.f32.mrf.mxu1  ;;  %vm1973_vm0 = vcmp.gt.f32.partialorder %v1803_v43, 0.0  ;;  %v1977_v57 = vmul.f32 0.01, %v1803_v43  ;;  %v1805_v44 = vadd.f32 %v1804_v52, %v1764_v53  ;;  %v3519_v53 = vld [vmem:[%s4689_s5 + $0x10] sm:$0xff]   ;;  %v3520_v54 = vld [vmem:[%s4689_s5 + $0x48] sm:$0xff]  }
 0x148   :  { %v1766_v58 = vpop.f32.mrf.mxu0 }
 0x149   :  { %v1807_v59 = vpop.f32.mrf.mxu1  ;;  %vm1974_vm1 = vcmp.gt.f32.partialorder %v1805_v44, 0.0  ;;  %v1978_v60 = vmul.f32 0.01, %v1805_v44  ;;  %v1981_v0 = vsel %vm1973_vm0, %v1803_v43, %v1977_v57 }
 0x14a   :  { %v1985_v5 = vpack.c.bf16 %v1981_v0, %v1981_v0  ;;  %v3523_v59 = vld [vmem:[%s4689_s5] sm:$0xff]  }
 0x14b   :  { %v1982_v2 = vsel %vm1974_vm1, %v1805_v44, %v1978_v60  ;;  %v3522_v44 = vld [vmem:[%s4689_s5 + $0x40] sm:$0xff]  }
 0x14c   :  { %v1986_v4 = vpack.c.bf16 %v1982_v2, %v1982_v2  ;;  %v2053_v60 = vld [vmem:[%s4688_s4] sm:$0x3] }
 0x14d   :  { %v2058_v61 = vrot.slane %v2053_v60, %v289_v37  ;;  %v2062_v0 = vrot.slane %v2053_v60, %v293_v39  ;;  %v2986_v37 = vld [vmem:[%s4690_s6] ss:$0 sm:$0xff] }
 0x14e   :  { %2417 = vmatprep.mubr.bf16.mxu0 %v1986_v4 }
 0x14f   :  { %2418 = vmatmul.mubr.bf16.vlgmr.msra.gmra.mxu0 %v1985_v5 }
 0x150   :  { %3004 = vmatpush3.bf16.msra.mxu0 %v3509_v16 }
 0x151   :  { %3005 = vmatprep.subr.bf16.mxu0 %v3510_v17 }
 0x154   :  { %3006 = vmatpush3.bf16.msra.mxu0 %v3511_v20 }
 0x155   :  { %3007 = vmatprep.subr.bf16.mxu0 %v3512_v21 }
 0x158   :  { %3008 = vmatpush3.bf16.msra.mxu0 %v3513_v22 }
 0x159   :  { %3009 = vmatprep.subr.bf16.mxu0 %v3514_v23 }
 0x15c   :  { %3010 = vmatpush3.bf16.msra.mxu0 %v3515_v25 }
 0x15d   :  { %3011 = vmatprep.subr.bf16.mxu0 %v3516_v26 }
 0x160   :  { %3012 = vmatpush3.bf16.msra.mxu0 %v3517_v27 }
 0x161   :  { %3013 = vmatprep.subr.bf16.mxu0 %v3518_v28 }
 0x164   :  { %3014 = vmatpush3.bf16.msra.mxu0 %v3519_v53 }
 0x165   :  { %3015 = vmatprep.subr.bf16.mxu0 %v3520_v54 }
 0x168   :  { %3016 = vmatpush3.bf16.msra.mxu0 %v3521_v56 }
 0x169   :  { %3017 = vmatprep.subr.bf16.mxu0 %v3522_v44 }
 0x16c   :  { %3018 = vmatpush3.bf16.msra.mxu0 %v3523_v59 }
 0x182   :  { %v1843_v6 = vpop.f32.mrf.mxu0 }
 0x183   :  { %v1884_v7 = vpop.f32.mrf.mxu1  ;;  %v1844_v34 = vadd.f32 %v1843_v6, %v298_v32 }
 0x184   :  { %v1845_v8 = vpop.f32.mrf.mxu0 }
 0x185   :  { %v1886_v9 = vpop.f32.mrf.mxu1  ;;  %v1846_v35 = vadd.f32 %v1845_v8, %v302_v33  ;;  %v1885_v36 = vadd.f32 %v1884_v7, %v1844_v34 }
 0x186   :  { %v1847_v10 = vpop.f32.mrf.mxu0 }
 0x187   :  { %v1888_v11 = vpop.f32.mrf.mxu1  ;;  %v1887_v14 = vadd.f32 %v1886_v9, %v1846_v35 }
 0x188   :  { %v1848_v12 = vpop.f32.mrf.mxu0 }
 0x189   :  { %v1889_v13 = vpop.f32.mrf.mxu1 }
 0x1c2   :  { %v1925_v40 = vpop.f32.mrf.mxu0 }
 0x1c3   :  { %v1966_v41 = vpop.f32.mrf.mxu1  ;;  %v1926_v19 = vadd.f32 %v1925_v40, %v1885_v36 }
 0x1c4   :  { %v1927_v45 = vpop.f32.mrf.mxu0 }
 0x1c5   :  { %v1968_v63 = vpop.f32.mrf.mxu1  ;;  %v1967_v29 = vadd.f32 %v1966_v41, %v1926_v19  ;;  %v1928_v46 = vadd.f32 %v1927_v45, %v1887_v14 }
 0x1c6   :  { %v1929_v18 = vpop.f32.mrf.mxu0 }
 0x1c7   :  { %v1970_v24 = vpop.f32.mrf.mxu1  ;;  %vm1975_vm2 = vcmp.gt.f32.partialorder %v1967_v29, 0.0  ;;  %v1979_v47 = vmul.f32 0.01, %v1967_v29  ;;  %v1969_v48 = vadd.f32 %v1968_v63, %v1928_v46 }
 0x1c8   :  { %v1930_v49 = vpop.f32.mrf.mxu0 }
 0x1c9   :  { %v1971_v50 = vpop.f32.mrf.mxu1  ;;  %vm1976_vm3 = vcmp.gt.f32.partialorder %v1969_v48, 0.0  ;;  %v1980_v38 = vmul.f32 0.01, %v1969_v48  ;;  %v1983_v51 = vsel %vm1975_vm2, %v1967_v29, %v1979_v47 }
 0x1ca   :  { %v1987_v43 = vpack.c.bf16 %v1983_v51, %v1983_v51 }
 0x1cb   :  { %v1984_v62 = vsel %vm1976_vm3, %v1969_v48, %v1980_v38 }
 0x1cc   :  { %v1988_v52 = vpack.c.bf16 %v1984_v62, %v1984_v62 }
 0x1ce   :  { %2458 = vmatprep.mubr.bf16.mxu1 %v1988_v52 }
 0x1cf   :  { %2459 = vmatmul.mubr.bf16.vlgmr.msra.gmra.mxu1 %v1987_v43 }
 0x20f   :  { %v2419_v3 = vpop.f32.mrf.mxu0 }
 0x210   :  { %v2420_v1 = vadd.f32 %v2419_v3, %v2058_v61 }
 0x211   :  { %v2421_v55 = vpop.f32.mrf.mxu0 }
 0x212   :  { %v2422_v4 = vadd.f32 %v2421_v55, %v2062_v0 }
 0x213   :  { %v2423_v57 = vpop.f32.mrf.mxu0 }
 0x215   :  { %v2424_v58 = vpop.f32.mrf.mxu0 }
 0x28f   :  { %v2460_v2 = vpop.f32.mrf.mxu1 }
 0x290   :  { %v2461_v5 = vadd.f32 %v2460_v2, %v2420_v1 }
 0x291   :  { %v2462_v6 = vpop.f32.mrf.mxu1 }
 0x292   :  { %vm2467_vm4 = vcmp.gt.f32.partialorder %v2461_v5, 0.0  ;;  %v2469_v7 = vmul.f32 0.01, %v2461_v5  ;;  %v2463_v8 = vadd.f32 %v2462_v6, %v2422_v4 }
 0x293   :  { %v2464_v9 = vpop.f32.mrf.mxu1 }
 0x294   :  { %vm2468_vm5 = vcmp.gt.f32.partialorder %v2463_v8, 0.0  ;;  %v2470_v10 = vmul.f32 0.01, %v2463_v8  ;;  %v2471_v11 = vsel %vm2467_vm4, %v2461_v5, %v2469_v7 }
 0x295   :  { %v2465_v12 = vpop.f32.mrf.mxu1  ;;  %v2473_v16 = vpack.c.bf16 %v2471_v11, %v2471_v11 }
 0x296   :  { %v2472_v13 = vsel %vm2468_vm5, %v2463_v8, %v2470_v10 }
 0x297   :  { %v2474_v15 = vpack.c.bf16 %v2472_v13, %v2472_v13 }
 0x299   :  { %2642 = vmatprep.mubr.bf16.mxu0 %v2474_v15 }
 0x29a   :  { %2643 = vmatmul.mubr.bf16.vlgmr.msra.gmra.mxu0 %v2473_v16 }
 0x35a   :  { %v3019_v42 = vpop.f32.mrf.mxu0 }
 0x35c   :  { %v3020_v39 = vpop.f32.mrf.mxu0 }
 0x35d   :  { %v3021_v17 = vadd.f32 %v3020_v39, %v3019_v42 }
 0x35e   :  { %v3022_v20 = vpop.f32.mrf.mxu0 }
 0x35f   :  { %v2645_v21 = vadd.f32 %v3021_v17, %v2986_v37 }
 0x360   :  { %v3023_v22 = vpop.f32.mrf.mxu0 }
 0x361   :  { %2651 = vst.msk [vmem:[#allocation2] sm:$0x3] %vm2650_vm6, %v2645_v21 }
 0x362   :  { %3535 = shalt.err (!%p3532_p4)
}
 0x363   :  { %2661 = dma.vmem_to_hbm [thread:$0]  %s2659_s24, 32, %s4691_s7, [#allocation3]  }
 0x364   :  { %3544 = dma.done.wait [#allocation3], 32  }
 0x365   :  { %3545 = vsyncadd [#allocation3], 4294967264 }
 0x366   :  { %2665 = vsyncpa [#allocation3], 1 }

</bundles_post_ra>
